<compile_context>
chip_gen: v7x
topology: tpu7x:2x2x1
jax: 0.10.0
libtpu: 0.0.40
codegen_flags: <defaults>
</compile_context>

<pallas_src>
import functools

import jax
import jax.numpy as jnp
from jax.experimental import pallas as pl
from jax.experimental.pallas import tpu as pltpu


def _fused_downsamp_kernel(xs_ref, w2_ref, b2_ref, w1_ref, b1_ref, o_ref, d2_ref,
                           *, ho_true):
    """One (row-strip, channel-block) step of
         conv2 (5x5 dw, pad 2) -> [::2, ::2] -> conv1 (5x5 dw, pad 2) -> [::2, 1::2].

    xs_ref: (16, TH+3, Wq, CB)   4x4 spatial-parity planes of the padded input, row strip
                                 (strip-local row l == padded-parity row strip*TH + l - 1)
    w2_ref, w1_ref: (25, CB)     per-channel 5x5 taps, tap index = 5*ki + kj
    b2_ref, b1_ref: (1, CB)
    o_ref:  (TH, Wo, CB)         output rows [strip*TH, strip*TH+TH)
    d2_ref: (4, TH+2, Wo+2, CB)  VMEM scratch: 2x2 parity split of the padded intermediate,
                                 d2[2p+q][u, v, c] == d2pad[2*(strip*TH+u)+p, 2v+q, c]
    """
    TH, Wo, CB = o_ref.shape
    f32 = jnp.float32

    row0 = pl.program_id(0) * TH                       # global first output row of strip

    # ---- hoisted per-channel weights / biases (loaded & broadcast once per step) ----
    b2 = b2_ref[...].astype(f32).reshape(1, 1, CB)
    b1 = b1_ref[...].astype(f32).reshape(1, 1, CB)
    w2 = [w2_ref[pl.ds(k, 1), :].astype(f32).reshape(1, 1, CB) for k in range(25)]
    w1 = [w1_ref[pl.ds(k, 1), :].astype(f32).reshape(1, 1, CB) for k in range(25)]

    # ---- zero ONLY the column halo of the intermediate scratch (conv1 zero padding) ----
    zcol = jnp.zeros((TH + 2, 1, CB), f32)
    for pp in range(4):
        d2_ref[pp, :, pl.ds(0, 1), :] = zcol
        d2_ref[pp, :, pl.ds(Wo + 1, 1), :] = zcol

    # ---- stage 1: conv2 at the stride-2 sample points, one scratch row at a time ------
    # d2[2pa+pb][u, 1+j] = b2 + sum_{mi,mj} w2[5mi+mj] *
    #     xs[((2pa+mi)%4)*4 + (2pb+mj)%4][u + (2pa+mi)//4, j + (2pb+mj)//4]
    # Rows whose global index is outside the interior [1, ho_true] are conv1's zero
    # padding and are stored as zeros instead (per-row select).
    def _stage1_row(u, carry):
        u_glob = row0 + u
        valid = jnp.logical_and(u_glob >= 1, u_glob <= ho_true)
        for pa in range(2):
            for pb in range(2):
                acc0 = jnp.zeros((1, Wo, CB), f32)
                acc1 = jnp.zeros((1, Wo, CB), f32)
                for mi in range(5):
                    dr = 2 * pa + mi
                    base_plane = (dr % 4) * 4
                    drow = dr // 4
                    for mj in range(5):
                        dc = 2 * pb + mj
                        tap = xs_ref[base_plane + (dc % 4),
                                     pl.ds(u + drow, 1),
                                     pl.ds(dc // 4, Wo), :].astype(f32)
                        w = w2[5 * mi + mj]
                        if (5 * mi + mj) % 2 == 0:
                            acc0 = acc0 + tap * w
                        else:
                            acc1 = acc1 + tap * w
                val = acc0 + acc1 + b2
                val = jnp.where(valid, val, jnp.zeros_like(val))
                d2_ref[pa * 2 + pb, pl.ds(u, 1), pl.ds(1, Wo), :] = val
        return carry

    jax.lax.fori_loop(0, TH + 2, _stage1_row, 0)

    # ---- stage 2: conv1 sampled at rows ::2 and cols 1::2, one output row at a time ----
    # out[i, j] = b1 + sum_{ki,kj} w1[5ki+kj] *
    #     d2[(ki%2)*2 + (1+kj)%2][i + ki//2, j + (1+kj)//2]
    def _stage2_row(i, carry):
        acc0 = jnp.zeros((1, Wo, CB), f32)
        acc1 = jnp.zeros((1, Wo, CB), f32)
        for ki in range(5):
            pbase = (ki % 2) * 2
            drow = ki // 2
            for kj in range(5):
                q = (1 + kj) % 2
                c0 = (1 + kj) // 2
                tap = d2_ref[pbase + q, pl.ds(i + drow, 1), pl.ds(c0, Wo), :]
                w = w1[5 * ki + kj]
                if (5 * ki + kj) % 2 == 0:
                    acc0 = acc0 + tap * w
                else:
                    acc1 = acc1 + tap * w
        o_ref[pl.ds(i, 1), :, :] = (acc0 + acc1 + b1).astype(o_ref.dtype)
        return carry

    jax.lax.fori_loop(0, TH, _stage2_row, 0)


def _pick_strip_rows(Ho, Wq, Wo, CB, itemsize, budget_bytes):
    """Largest output-row strip whose (double-buffered blocks + scratch) fit the budget."""
    per_row = (2 * 16 * Wq * CB * itemsize        # input strip rows (x2 buffers)
               + 2 * Wo * CB * itemsize           # output rows (x2 buffers)
               + 4 * (Wo + 2) * CB * 4)           # f32 intermediate scratch rows
    fixed = (2 * 16 * 3 * Wq * CB * itemsize      # 3 halo rows of the input strip
             + 4 * 2 * (Wo + 2) * CB * 4          # 2 halo rows of the scratch
             + 2 * 26 * CB * 4 * 2)               # weights / biases
    th = (budget_bytes - fixed) // per_row
    return int(max(1, min(Ho, th)))


def downsamp_4_2_forward(x, params, *, max_rows_per_strip=None,
                         vmem_budget_bytes=20 << 20):
    """Forward pass of Downsamp_4_2 (depthwise_multiplier=1).  x: (N, C, H, W) NCHW."""
    N, C, H, W = x.shape
    assert H % 4 == 0 and W % 4 == 0, "Pallas Downsamp_4_2 requires H, W divisible by 4"
    Ho, Wo = H // 4, W // 4
    Hq, Wq = Ho + 1, Wo + 1
    itemsize = jnp.dtype(x.dtype).itemsize

    # ---- fold batch into the channel (lane) axis: c' = n*C + c, pad to the block size --
    Cf = N * C
    CB = 128 if Cf >= 128 else Cf
    n_cb = -(-Cf // CB)
    Cpad = n_cb * CB

    xt = jnp.transpose(x, (2, 3, 0, 1)).reshape(H, W, Cf)          # (H, W, N*C)
    if Cpad != Cf:
        xt = jnp.pad(xt, ((0, 0), (0, 0), (0, Cpad - Cf)))
    xpad = jnp.pad(xt, ((2, 2), (2, 2), (0, 0)))                   # (H+4, W+4, Cpad)
    # 4x4 spatial parity planes: xq[4r+s, t, u, c] == xpad[4t+r, 4u+s, c]
    xq = (xpad.reshape(Hq, 4, Wq, 4, Cpad)
              .transpose(1, 3, 0, 2, 4)
              .reshape(16, Hq, Wq, Cpad))

    # ---- pick the output-row strip size from the VMEM budget ---------------------------
    TH = _pick_strip_rows(Ho, Wq, Wo, CB, itemsize, vmem_budget_bytes)
    if Ho >= 16:
        TH = min(TH, -(-Ho // 4))      # keep >= 4 strips so v7x's 2 TCs / pipeline have slack
    if max_rows_per_strip is not None:
        TH = max(1, min(TH, int(max_rows_per_strip)))
    n_strips = -(-Ho // TH)
    Ho_pad = n_strips * TH

    # ---- row-extend by the stencil halo and gather overlapping row strips --------------
    # xq_ext row tau holds xq row tau-1; rows 0 and >= Hq+1 are zeros.
    pad_hi = Ho_pad + 3 - (Hq + 1)
    xq_ext = jnp.pad(xq, ((0, 0), (1, pad_hi), (0, 0), (0, 0)))
    row_idx = (jnp.arange(n_strips)[:, None] * TH
               + jnp.arange(TH + 3)[None, :]).reshape(-1)
    xs = jnp.take(xq_ext, row_idx, axis=1).reshape(16, n_strips, TH + 3, Wq, Cpad)

    # ---- depthwise weights: (C, 1, 5, 5) -> (25, Cpad), channels on lanes ---------------
    def prep_w(w):
        w = jnp.tile(w.reshape(C, 25), (N, 1))                     # (N*C, 25)
        if Cpad != Cf:
            w = jnp.pad(w, ((0, Cpad - Cf), (0, 0)))
        return w.T                                                 # (25, Cpad)

    def prep_b(b):
        b = jnp.tile(b.reshape(C), (N,))
        if Cpad != Cf:
            b = jnp.pad(b, (0, Cpad - Cf))
        return b.reshape(1, Cpad)

    w2, b2 = prep_w(params["conv2_w"]), prep_b(params["conv2_b"])
    w1, b1 = prep_w(params["conv1_w"]), prep_b(params["conv1_b"])

    # ---- explicit VMEM limit from the actual block sizes -------------------------------
    in_block = 16 * (TH + 3) * Wq * CB * itemsize
    out_block = TH * Wo * CB * itemsize
    d2_bytes = 4 * (TH + 2) * (Wo + 2) * CB * 4
    est = 2 * in_block + 2 * out_block + d2_bytes + 2 * 26 * CB * 4 * 2
    vmem_limit = int(min(max(1.5 * est + (4 << 20), 32 << 20), 56 << 20))

    kernel = functools.partial(_fused_downsamp_kernel, ho_true=Ho)

    out = pl.pallas_call(
        kernel,
        out_shape=jax.ShapeDtypeStruct((Ho_pad, Wo, Cpad), x.dtype),
        grid_spec=pltpu.PrefetchScalarGridSpec(
            num_scalar_prefetch=0,
            grid=(n_strips, n_cb),
            in_specs=[
                pl.BlockSpec((16, None, TH + 3, Wq, CB), lambda s, cb: (0, s, 0, 0, cb)),
                pl.BlockSpec((25, CB), lambda s, cb: (0, cb)),
                pl.BlockSpec((1, CB), lambda s, cb: (0, cb)),
                pl.BlockSpec((25, CB), lambda s, cb: (0, cb)),
                pl.BlockSpec((1, CB), lambda s, cb: (0, cb)),
            ],
            out_specs=pl.BlockSpec((TH, Wo, CB), lambda s, cb: (s, 0, cb)),
            scratch_shapes=[pltpu.VMEM((4, TH + 2, Wo + 2, CB), jnp.float32)],
        ),
        compiler_params=pltpu.CompilerParams(
            dimension_semantics=("parallel", "parallel"),
            vmem_limit_bytes=vmem_limit),
    )(xs, w2, b2, w1, b1)

    out = out[:Ho, :, :Cf]                                          # drop row/channel padding
    return jnp.transpose(out.reshape(Ho, Wo, N, C), (2, 3, 0, 1))   # back to NCHW


def init_params(key, channels, depthwise_multiplier=1):
    assert depthwise_multiplier == 1  # TODO(synk): multiplier > 1 changes out-channel fanout
    k1, k2, k3, k4 = jax.random.split(key, 4)
    scale = 1.0 / jnp.sqrt(25.0)
    return {
        "conv1_w": jax.random.uniform(k1, (channels, 1, 5, 5), jnp.float32, -scale, scale),
        "conv1_b": jax.random.uniform(k2, (channels,), jnp.float32, -scale, scale),
        "conv2_w": jax.random.uniform(k3, (channels, 1, 5, 5), jnp.float32, -scale, scale),
        "conv2_b": jax.random.uniform(k4, (channels,), jnp.float32, -scale, scale),
    }


def _ref_dwconv(x, weight, bias):
    """Pure f32 elementwise reference for a 5x5 depthwise conv, padding 2."""
    N, C, H, W = x.shape
    xp = jnp.pad(x, ((0, 0), (0, 0), (2, 2), (2, 2)))
    out = jnp.zeros(x.shape, jnp.float32)
    for ki in range(5):
        for kj in range(5):
            out = out + xp[:, :, ki:ki + H, kj:kj + W] * weight[:, 0, ki, kj].reshape(1, C, 1, 1)
    return out + bias.reshape(1, C, 1, 1)


def _ref_forward(x, params):
    H, W = x.shape[2], x.shape[3]
    x_d2 = _ref_dwconv(x, params["conv2_w"], params["conv2_b"])[:, :, 0:H:2, 0:W:2]
    return _ref_dwconv(x_d2, params["conv1_w"], params["conv1_b"])[
        :, :, 0:H // 2:2, 1:W // 2:2]


if __name__ == "__main__":
    key = jax.random.PRNGKey(0)
    kx, kp, kx2, kp2 = jax.random.split(key, 4)

    # Spec-sized test: N=2, C=4, H=W=16.
    N, C, H, W = 2, 4, 16, 16
    x = jax.random.normal(kx, (N, C, H, W), jnp.float32)
    params = init_params(kp, C)

    out = jax.block_until_ready(jax.jit(downsamp_4_2_forward)(x, params))
    ref = _ref_forward(x, params)
    assert out.shape == (N, C, H // 4, W // 4), out.shape
    assert jnp.allclose(out, ref, atol=1e-4, rtol=1e-4)

    # Exercise the multi-strip (halo'd row tile) path.
    out2 = jax.block_until_ready(
        jax.jit(functools.partial(downsamp_4_2_forward, max_rows_per_strip=2))(x, params))
    assert jnp.allclose(out2, ref, atol=1e-4, rtol=1e-4)

    # Exercise channel padding + multiple 128-lane channel blocks (C' = 130 -> 2 blocks).
    N2, C2 = 1, 130
    x2 = jax.random.normal(kx2, (N2, C2, H, W), jnp.float32)
    params2 = init_params(kp2, C2)
    out3 = jax.block_until_ready(jax.jit(downsamp_4_2_forward)(x2, params2))
    ref3 = _ref_forward(x2, params2)
    assert out3.shape == (N2, C2, H // 4, W // 4), out3.shape
    assert jnp.allclose(out3, ref3, atol=1e-4, rtol=1e-4)

    print("KERNEL_OK")
</pallas_src>

<mosaic_0001>
module attributes {stable_mosaic.version = 11 : i64} {
  func.func @_fused_downsamp_kernel(%arg0: i32, %arg1: i32, %arg2: memref<16x1x7x5x8xf32, #tpu.memory_space<vmem>>, %arg3: memref<25x8xf32, #tpu.memory_space<vmem>>, %arg4: memref<1x8xf32, #tpu.memory_space<vmem>>, %arg5: memref<25x8xf32, #tpu.memory_space<vmem>>, %arg6: memref<1x8xf32, #tpu.memory_space<vmem>>, %arg7: memref<4x4x8xf32, #tpu.memory_space<vmem>>, %arg8: memref<4x6x6x8xf32, #tpu.memory_space<vmem>>) attributes {dimension_semantics = [#tpu.dimension_semantics<parallel>, #tpu.dimension_semantics<parallel>], iteration_bounds = array<i64: 1, 1>, scalar_prefetch = 0 : i64, scratch_operands = 1 : i64, tpu.core_type = #tpu.core_type<tc>, window_params = [{transform_indices = @transform_0, window_bounds = array<i64: 16, 1, 7, 5, 8>}, {transform_indices = @transform_1, window_bounds = array<i64: 25, 8>}, {transform_indices = @transform_2, window_bounds = array<i64: 1, 8>}, {transform_indices = @transform_3, window_bounds = array<i64: 25, 8>}, {transform_indices = @transform_4, window_bounds = array<i64: 1, 8>}, {transform_indices = @transform_5, window_bounds = array<i64: 4, 4, 8>}]} {
    %c4_i32 = arith.constant 4 : i32
    %0 = arith.muli %arg0, %c4_i32 : i32
    %c0 = arith.constant 0 : index
    %c0_0 = arith.constant 0 : index
    %1 = vector.load %arg4[%c0, %c0_0] : memref<1x8xf32, #tpu.memory_space<vmem>>, vector<1x8xf32>
    %2 = vector.shape_cast %1 : vector<1x8xf32> to vector<1x1x8xf32>
    %c0_1 = arith.constant 0 : index
    %c0_2 = arith.constant 0 : index
    %3 = vector.load %arg6[%c0_1, %c0_2] : memref<1x8xf32, #tpu.memory_space<vmem>>, vector<1x8xf32>
    %4 = vector.shape_cast %3 : vector<1x8xf32> to vector<1x1x8xf32>
    %c0_3 = arith.constant 0 : index
    %c0_4 = arith.constant 0 : index
    %5 = vector.load %arg3[%c0_3, %c0_4] : memref<25x8xf32, #tpu.memory_space<vmem>>, vector<1x8xf32>
    %6 = vector.shape_cast %5 : vector<1x8xf32> to vector<1x1x8xf32>
    %c1 = arith.constant 1 : index
    %c0_5 = arith.constant 0 : index
    %7 = vector.load %arg3[%c1, %c0_5] : memref<25x8xf32, #tpu.memory_space<vmem>>, vector<1x8xf32>
    %8 = vector.shape_cast %7 : vector<1x8xf32> to vector<1x1x8xf32>
    %c2 = arith.constant 2 : index
    %c0_6 = arith.constant 0 : index
    %9 = vector.load %arg3[%c2, %c0_6] : memref<25x8xf32, #tpu.memory_space<vmem>>, vector<1x8xf32>
    %10 = vector.shape_cast %9 : vector<1x8xf32> to vector<1x1x8xf32>
    %c3 = arith.constant 3 : index
    %c0_7 = arith.constant 0 : index
    %11 = vector.load %arg3[%c3, %c0_7] : memref<25x8xf32, #tpu.memory_space<vmem>>, vector<1x8xf32>
    %12 = vector.shape_cast %11 : vector<1x8xf32> to vector<1x1x8xf32>
    %c4 = arith.constant 4 : index
    %c0_8 = arith.constant 0 : index
    %13 = vector.load %arg3[%c4, %c0_8] : memref<25x8xf32, #tpu.memory_space<vmem>>, vector<1x8xf32>
    %14 = vector.shape_cast %13 : vector<1x8xf32> to vector<1x1x8xf32>
    %c5 = arith.constant 5 : index
    %c0_9 = arith.constant 0 : index
    %15 = vector.load %arg3[%c5, %c0_9] : memref<25x8xf32, #tpu.memory_space<vmem>>, vector<1x8xf32>
    %16 = vector.shape_cast %15 : vector<1x8xf32> to vector<1x1x8xf32>
    %c6 = arith.constant 6 : index
    %c0_10 = arith.constant 0 : index
    %17 = vector.load %arg3[%c6, %c0_10] : memref<25x8xf32, #tpu.memory_space<vmem>>, vector<1x8xf32>
    %18 = vector.shape_cast %17 : vector<1x8xf32> to vector<1x1x8xf32>
    %c7 = arith.constant 7 : index
    %c0_11 = arith.constant 0 : index
    %19 = vector.load %arg3[%c7, %c0_11] : memref<25x8xf32, #tpu.memory_space<vmem>>, vector<1x8xf32>
    %20 = vector.shape_cast %19 : vector<1x8xf32> to vector<1x1x8xf32>
    %c8 = arith.constant 8 : index
    %c0_12 = arith.constant 0 : index
    %21 = vector.load %arg3[%c8, %c0_12] : memref<25x8xf32, #tpu.memory_space<vmem>>, vector<1x8xf32>
    %22 = vector.shape_cast %21 : vector<1x8xf32> to vector<1x1x8xf32>
    %c9 = arith.constant 9 : index
    %c0_13 = arith.constant 0 : index
    %23 = vector.load %arg3[%c9, %c0_13] : memref<25x8xf32, #tpu.memory_space<vmem>>, vector<1x8xf32>
    %24 = vector.shape_cast %23 : vector<1x8xf32> to vector<1x1x8xf32>
    %c10 = arith.constant 10 : index
    %c0_14 = arith.constant 0 : index
    %25 = vector.load %arg3[%c10, %c0_14] : memref<25x8xf32, #tpu.memory_space<vmem>>, vector<1x8xf32>
    %26 = vector.shape_cast %25 : vector<1x8xf32> to vector<1x1x8xf32>
    %c11 = arith.constant 11 : index
    %c0_15 = arith.constant 0 : index
    %27 = vector.load %arg3[%c11, %c0_15] : memref<25x8xf32, #tpu.memory_space<vmem>>, vector<1x8xf32>
    %28 = vector.shape_cast %27 : vector<1x8xf32> to vector<1x1x8xf32>
    %c12 = arith.constant 12 : index
    %c0_16 = arith.constant 0 : index
    %29 = vector.load %arg3[%c12, %c0_16] : memref<25x8xf32, #tpu.memory_space<vmem>>, vector<1x8xf32>
    %30 = vector.shape_cast %29 : vector<1x8xf32> to vector<1x1x8xf32>
    %c13 = arith.constant 13 : index
    %c0_17 = arith.constant 0 : index
    %31 = vector.load %arg3[%c13, %c0_17] : memref<25x8xf32, #tpu.memory_space<vmem>>, vector<1x8xf32>
    %32 = vector.shape_cast %31 : vector<1x8xf32> to vector<1x1x8xf32>
    %c14 = arith.constant 14 : index
    %c0_18 = arith.constant 0 : index
    %33 = vector.load %arg3[%c14, %c0_18] : memref<25x8xf32, #tpu.memory_space<vmem>>, vector<1x8xf32>
    %34 = vector.shape_cast %33 : vector<1x8xf32> to vector<1x1x8xf32>
    %c15 = arith.constant 15 : index
    %c0_19 = arith.constant 0 : index
    %35 = vector.load %arg3[%c15, %c0_19] : memref<25x8xf32, #tpu.memory_space<vmem>>, vector<1x8xf32>
    %36 = vector.shape_cast %35 : vector<1x8xf32> to vector<1x1x8xf32>
    %c16 = arith.constant 16 : index
    %c0_20 = arith.constant 0 : index
    %37 = vector.load %arg3[%c16, %c0_20] : memref<25x8xf32, #tpu.memory_space<vmem>>, vector<1x8xf32>
    %38 = vector.shape_cast %37 : vector<1x8xf32> to vector<1x1x8xf32>
    %c17 = arith.constant 17 : index
    %c0_21 = arith.constant 0 : index
    %39 = vector.load %arg3[%c17, %c0_21] : memref<25x8xf32, #tpu.memory_space<vmem>>, vector<1x8xf32>
    %40 = vector.shape_cast %39 : vector<1x8xf32> to vector<1x1x8xf32>
    %c18 = arith.constant 18 : index
    %c0_22 = arith.constant 0 : index
    %41 = vector.load %arg3[%c18, %c0_22] : memref<25x8xf32, #tpu.memory_space<vmem>>, vector<1x8xf32>
    %42 = vector.shape_cast %41 : vector<1x8xf32> to vector<1x1x8xf32>
    %c19 = arith.constant 19 : index
    %c0_23 = arith.constant 0 : index
    %43 = vector.load %arg3[%c19, %c0_23] : memref<25x8xf32, #tpu.memory_space<vmem>>, vector<1x8xf32>
    %44 = vector.shape_cast %43 : vector<1x8xf32> to vector<1x1x8xf32>
    %c20 = arith.constant 20 : index
    %c0_24 = arith.constant 0 : index
    %45 = vector.load %arg3[%c20, %c0_24] : memref<25x8xf32, #tpu.memory_space<vmem>>, vector<1x8xf32>
    %46 = vector.shape_cast %45 : vector<1x8xf32> to vector<1x1x8xf32>
    %c21 = arith.constant 21 : index
    %c0_25 = arith.constant 0 : index
    %47 = vector.load %arg3[%c21, %c0_25] : memref<25x8xf32, #tpu.memory_space<vmem>>, vector<1x8xf32>
    %48 = vector.shape_cast %47 : vector<1x8xf32> to vector<1x1x8xf32>
    %c22 = arith.constant 22 : index
    %c0_26 = arith.constant 0 : index
    %49 = vector.load %arg3[%c22, %c0_26] : memref<25x8xf32, #tpu.memory_space<vmem>>, vector<1x8xf32>
    %50 = vector.shape_cast %49 : vector<1x8xf32> to vector<1x1x8xf32>
    %c23 = arith.constant 23 : index
    %c0_27 = arith.constant 0 : index
    %51 = vector.load %arg3[%c23, %c0_27] : memref<25x8xf32, #tpu.memory_space<vmem>>, vector<1x8xf32>
    %52 = vector.shape_cast %51 : vector<1x8xf32> to vector<1x1x8xf32>
    %c24 = arith.constant 24 : index
    %c0_28 = arith.constant 0 : index
    %53 = vector.load %arg3[%c24, %c0_28] : memref<25x8xf32, #tpu.memory_space<vmem>>, vector<1x8xf32>
    %54 = vector.shape_cast %53 : vector<1x8xf32> to vector<1x1x8xf32>
    %c0_29 = arith.constant 0 : index
    %c0_30 = arith.constant 0 : index
    %55 = vector.load %arg5[%c0_29, %c0_30] : memref<25x8xf32, #tpu.memory_space<vmem>>, vector<1x8xf32>
    %56 = vector.shape_cast %55 : vector<1x8xf32> to vector<1x1x8xf32>
    %c1_31 = arith.constant 1 : index
    %c0_32 = arith.constant 0 : index
    %57 = vector.load %arg5[%c1_31, %c0_32] : memref<25x8xf32, #tpu.memory_space<vmem>>, vector<1x8xf32>
    %58 = vector.shape_cast %57 : vector<1x8xf32> to vector<1x1x8xf32>
    %c2_33 = arith.constant 2 : index
    %c0_34 = arith.constant 0 : index
    %59 = vector.load %arg5[%c2_33, %c0_34] : memref<25x8xf32, #tpu.memory_space<vmem>>, vector<1x8xf32>
    %60 = vector.shape_cast %59 : vector<1x8xf32> to vector<1x1x8xf32>
    %c3_35 = arith.constant 3 : index
    %c0_36 = arith.constant 0 : index
    %61 = vector.load %arg5[%c3_35, %c0_36] : memref<25x8xf32, #tpu.memory_space<vmem>>, vector<1x8xf32>
    %62 = vector.shape_cast %61 : vector<1x8xf32> to vector<1x1x8xf32>
    %c4_37 = arith.constant 4 : index
    %c0_38 = arith.constant 0 : index
    %63 = vector.load %arg5[%c4_37, %c0_38] : memref<25x8xf32, #tpu.memory_space<vmem>>, vector<1x8xf32>
    %64 = vector.shape_cast %63 : vector<1x8xf32> to vector<1x1x8xf32>
    %c5_39 = arith.constant 5 : index
    %c0_40 = arith.constant 0 : index
    %65 = vector.load %arg5[%c5_39, %c0_40] : memref<25x8xf32, #tpu.memory_space<vmem>>, vector<1x8xf32>
    %66 = vector.shape_cast %65 : vector<1x8xf32> to vector<1x1x8xf32>
    %c6_41 = arith.constant 6 : index
    %c0_42 = arith.constant 0 : index
    %67 = vector.load %arg5[%c6_41, %c0_42] : memref<25x8xf32, #tpu.memory_space<vmem>>, vector<1x8xf32>
    %68 = vector.shape_cast %67 : vector<1x8xf32> to vector<1x1x8xf32>
    %c7_43 = arith.constant 7 : index
    %c0_44 = arith.constant 0 : index
    %69 = vector.load %arg5[%c7_43, %c0_44] : memref<25x8xf32, #tpu.memory_space<vmem>>, vector<1x8xf32>
    %70 = vector.shape_cast %69 : vector<1x8xf32> to vector<1x1x8xf32>
    %c8_45 = arith.constant 8 : index
    %c0_46 = arith.constant 0 : index
    %71 = vector.load %arg5[%c8_45, %c0_46] : memref<25x8xf32, #tpu.memory_space<vmem>>, vector<1x8xf32>
    %72 = vector.shape_cast %71 : vector<1x8xf32> to vector<1x1x8xf32>
    %c9_47 = arith.constant 9 : index
    %c0_48 = arith.constant 0 : index
    %73 = vector.load %arg5[%c9_47, %c0_48] : memref<25x8xf32, #tpu.memory_space<vmem>>, vector<1x8xf32>
    %74 = vector.shape_cast %73 : vector<1x8xf32> to vector<1x1x8xf32>
    %c10_49 = arith.constant 10 : index
    %c0_50 = arith.constant 0 : index
    %75 = vector.load %arg5[%c10_49, %c0_50] : memref<25x8xf32, #tpu.memory_space<vmem>>, vector<1x8xf32>
    %76 = vector.shape_cast %75 : vector<1x8xf32> to vector<1x1x8xf32>
    %c11_51 = arith.constant 11 : index
    %c0_52 = arith.constant 0 : index
    %77 = vector.load %arg5[%c11_51, %c0_52] : memref<25x8xf32, #tpu.memory_space<vmem>>, vector<1x8xf32>
    %78 = vector.shape_cast %77 : vector<1x8xf32> to vector<1x1x8xf32>
    %c12_53 = arith.constant 12 : index
    %c0_54 = arith.constant 0 : index
    %79 = vector.load %arg5[%c12_53, %c0_54] : memref<25x8xf32, #tpu.memory_space<vmem>>, vector<1x8xf32>
    %80 = vector.shape_cast %79 : vector<1x8xf32> to vector<1x1x8xf32>
    %c13_55 = arith.constant 13 : index
    %c0_56 = arith.constant 0 : index
    %81 = vector.load %arg5[%c13_55, %c0_56] : memref<25x8xf32, #tpu.memory_space<vmem>>, vector<1x8xf32>
    %82 = vector.shape_cast %81 : vector<1x8xf32> to vector<1x1x8xf32>
    %c14_57 = arith.constant 14 : index
    %c0_58 = arith.constant 0 : index
    %83 = vector.load %arg5[%c14_57, %c0_58] : memref<25x8xf32, #tpu.memory_space<vmem>>, vector<1x8xf32>
    %84 = vector.shape_cast %83 : vector<1x8xf32> to vector<1x1x8xf32>
    %c15_59 = arith.constant 15 : index
    %c0_60 = arith.constant 0 : index
    %85 = vector.load %arg5[%c15_59, %c0_60] : memref<25x8xf32, #tpu.memory_space<vmem>>, vector<1x8xf32>
    %86 = vector.shape_cast %85 : vector<1x8xf32> to vector<1x1x8xf32>
    %c16_61 = arith.constant 16 : index
    %c0_62 = arith.constant 0 : index
    %87 = vector.load %arg5[%c16_61, %c0_62] : memref<25x8xf32, #tpu.memory_space<vmem>>, vector<1x8xf32>
    %88 = vector.shape_cast %87 : vector<1x8xf32> to vector<1x1x8xf32>
    %c17_63 = arith.constant 17 : index
    %c0_64 = arith.constant 0 : index
    %89 = vector.load %arg5[%c17_63, %c0_64] : memref<25x8xf32, #tpu.memory_space<vmem>>, vector<1x8xf32>
    %90 = vector.shape_cast %89 : vector<1x8xf32> to vector<1x1x8xf32>
    %c18_65 = arith.constant 18 : index
    %c0_66 = arith.constant 0 : index
    %91 = vector.load %arg5[%c18_65, %c0_66] : memref<25x8xf32, #tpu.memory_space<vmem>>, vector<1x8xf32>
    %92 = vector.shape_cast %91 : vector<1x8xf32> to vector<1x1x8xf32>
    %c19_67 = arith.constant 19 : index
    %c0_68 = arith.constant 0 : index
    %93 = vector.load %arg5[%c19_67, %c0_68] : memref<25x8xf32, #tpu.memory_space<vmem>>, vector<1x8xf32>
    %94 = vector.shape_cast %93 : vector<1x8xf32> to vector<1x1x8xf32>
    %c20_69 = arith.constant 20 : index
    %c0_70 = arith.constant 0 : index
    %95 = vector.load %arg5[%c20_69, %c0_70] : memref<25x8xf32, #tpu.memory_space<vmem>>, vector<1x8xf32>
    %96 = vector.shape_cast %95 : vector<1x8xf32> to vector<1x1x8xf32>
    %c21_71 = arith.constant 21 : index
    %c0_72 = arith.constant 0 : index
    %97 = vector.load %arg5[%c21_71, %c0_72] : memref<25x8xf32, #tpu.memory_space<vmem>>, vector<1x8xf32>
    %98 = vector.shape_cast %97 : vector<1x8xf32> to vector<1x1x8xf32>
    %c22_73 = arith.constant 22 : index
    %c0_74 = arith.constant 0 : index
    %99 = vector.load %arg5[%c22_73, %c0_74] : memref<25x8xf32, #tpu.memory_space<vmem>>, vector<1x8xf32>
    %100 = vector.shape_cast %99 : vector<1x8xf32> to vector<1x1x8xf32>
    %c23_75 = arith.constant 23 : index
    %c0_76 = arith.constant 0 : index
    %101 = vector.load %arg5[%c23_75, %c0_76] : memref<25x8xf32, #tpu.memory_space<vmem>>, vector<1x8xf32>
    %102 = vector.shape_cast %101 : vector<1x8xf32> to vector<1x1x8xf32>
    %c24_77 = arith.constant 24 : index
    %c0_78 = arith.constant 0 : index
    %103 = vector.load %arg5[%c24_77, %c0_78] : memref<25x8xf32, #tpu.memory_space<vmem>>, vector<1x8xf32>
    %104 = vector.shape_cast %103 : vector<1x8xf32> to vector<1x1x8xf32>
    %cst = arith.constant 0.000000e+00 : f32
    %105 = vector.broadcast %cst : f32 to vector<6x1x8xf32>
    %c0_79 = arith.constant 0 : index
    %c0_80 = arith.constant 0 : index
    %c0_81 = arith.constant 0 : index
    %c0_82 = arith.constant 0 : index
    %106 = vector.load %arg8[%c0_79, %c0_80, %c0_81, %c0_82] : memref<4x6x6x8xf32, #tpu.memory_space<vmem>>, vector<1x6x1x8xf32>
    %107 = vector.shape_cast %106 : vector<1x6x1x8xf32> to vector<6x1x8xf32>
    %108 = vector.shape_cast %105 : vector<6x1x8xf32> to vector<1x6x1x8xf32>
    tpu.vector_store %arg8[%c0_79, %c0_80, %c0_81, %c0_82], %108 {strides = array<i32>} : memref<4x6x6x8xf32, #tpu.memory_space<vmem>>, vector<1x6x1x8xf32>,
    %c0_83 = arith.constant 0 : index
    %c0_84 = arith.constant 0 : index
    %c5_85 = arith.constant 5 : index
    %c0_86 = arith.constant 0 : index
    %109 = vector.load %arg8[%c0_83, %c0_84, %c5_85, %c0_86] : memref<4x6x6x8xf32, #tpu.memory_space<vmem>>, vector<1x6x1x8xf32>
    %110 = vector.shape_cast %109 : vector<1x6x1x8xf32> to vector<6x1x8xf32>
    %111 = vector.shape_cast %105 : vector<6x1x8xf32> to vector<1x6x1x8xf32>
    tpu.vector_store %arg8[%c0_83, %c0_84, %c5_85, %c0_86], %111 {strides = array<i32>} : memref<4x6x6x8xf32, #tpu.memory_space<vmem>>, vector<1x6x1x8xf32>,
    %c1_87 = arith.constant 1 : index
    %c0_88 = arith.constant 0 : index
    %c0_89 = arith.constant 0 : index
    %c0_90 = arith.constant 0 : index
    %112 = vector.load %arg8[%c1_87, %c0_88, %c0_89, %c0_90] : memref<4x6x6x8xf32, #tpu.memory_space<vmem>>, vector<1x6x1x8xf32>
    %113 = vector.shape_cast %112 : vector<1x6x1x8xf32> to vector<6x1x8xf32>
    %114 = vector.shape_cast %105 : vector<6x1x8xf32> to vector<1x6x1x8xf32>
    tpu.vector_store %arg8[%c1_87, %c0_88, %c0_89, %c0_90], %114 {strides = array<i32>} : memref<4x6x6x8xf32, #tpu.memory_space<vmem>>, vector<1x6x1x8xf32>,
    %c1_91 = arith.constant 1 : index
    %c0_92 = arith.constant 0 : index
    %c5_93 = arith.constant 5 : index
    %c0_94 = arith.constant 0 : index
    %115 = vector.load %arg8[%c1_91, %c0_92, %c5_93, %c0_94] : memref<4x6x6x8xf32, #tpu.memory_space<vmem>>, vector<1x6x1x8xf32>
    %116 = vector.shape_cast %115 : vector<1x6x1x8xf32> to vector<6x1x8xf32>
    %117 = vector.shape_cast %105 : vector<6x1x8xf32> to vector<1x6x1x8xf32>
    tpu.vector_store %arg8[%c1_91, %c0_92, %c5_93, %c0_94], %117 {strides = array<i32>} : memref<4x6x6x8xf32, #tpu.memory_space<vmem>>, vector<1x6x1x8xf32>,
    %c2_95 = arith.constant 2 : index
    %c0_96 = arith.constant 0 : index
    %c0_97 = arith.constant 0 : index
    %c0_98 = arith.constant 0 : index
    %118 = vector.load %arg8[%c2_95, %c0_96, %c0_97, %c0_98] : memref<4x6x6x8xf32, #tpu.memory_space<vmem>>, vector<1x6x1x8xf32>
    %119 = vector.shape_cast %118 : vector<1x6x1x8xf32> to vector<6x1x8xf32>
    %120 = vector.shape_cast %105 : vector<6x1x8xf32> to vector<1x6x1x8xf32>
    tpu.vector_store %arg8[%c2_95, %c0_96, %c0_97, %c0_98], %120 {strides = array<i32>} : memref<4x6x6x8xf32, #tpu.memory_space<vmem>>, vector<1x6x1x8xf32>,
    %c2_99 = arith.constant 2 : index
    %c0_100 = arith.constant 0 : index
    %c5_101 = arith.constant 5 : index
    %c0_102 = arith.constant 0 : index
    %121 = vector.load %arg8[%c2_99, %c0_100, %c5_101, %c0_102] : memref<4x6x6x8xf32, #tpu.memory_space<vmem>>, vector<1x6x1x8xf32>
    %122 = vector.shape_cast %121 : vector<1x6x1x8xf32> to vector<6x1x8xf32>
    %123 = vector.shape_cast %105 : vector<6x1x8xf32> to vector<1x6x1x8xf32>
    tpu.vector_store %arg8[%c2_99, %c0_100, %c5_101, %c0_102], %123 {strides = array<i32>} : memref<4x6x6x8xf32, #tpu.memory_space<vmem>>, vector<1x6x1x8xf32>,
    %c3_103 = arith.constant 3 : index
    %c0_104 = arith.constant 0 : index
    %c0_105 = arith.constant 0 : index
    %c0_106 = arith.constant 0 : index
    %124 = vector.load %arg8[%c3_103, %c0_104, %c0_105, %c0_106] : memref<4x6x6x8xf32, #tpu.memory_space<vmem>>, vector<1x6x1x8xf32>
    %125 = vector.shape_cast %124 : vector<1x6x1x8xf32> to vector<6x1x8xf32>
    %126 = vector.shape_cast %105 : vector<6x1x8xf32> to vector<1x6x1x8xf32>
    tpu.vector_store %arg8[%c3_103, %c0_104, %c0_105, %c0_106], %126 {strides = array<i32>} : memref<4x6x6x8xf32, #tpu.memory_space<vmem>>, vector<1x6x1x8xf32>,
    %c3_107 = arith.constant 3 : index
    %c0_108 = arith.constant 0 : index
    %c5_109 = arith.constant 5 : index
    %c0_110 = arith.constant 0 : index
    %127 = vector.load %arg8[%c3_107, %c0_108, %c5_109, %c0_110] : memref<4x6x6x8xf32, #tpu.memory_space<vmem>>, vector<1x6x1x8xf32>
    %128 = vector.shape_cast %127 : vector<1x6x1x8xf32> to vector<6x1x8xf32>
    %129 = vector.shape_cast %105 : vector<6x1x8xf32> to vector<1x6x1x8xf32>
    tpu.vector_store %arg8[%c3_107, %c0_108, %c5_109, %c0_110], %129 {strides = array<i32>} : memref<4x6x6x8xf32, #tpu.memory_space<vmem>>, vector<1x6x1x8xf32>,
    %c0_i32 = arith.constant 0 : i32
    %c6_i32 = arith.constant 6 : i32
    %130 = arith.addi %c0_i32, %c6_i32 : i32
    %c1_i32 = arith.constant 1 : i32
    scf.for %arg9 = %c0_i32 to %130 step %c1_i32  : i32 {
      %132 = arith.addi %0, %arg9 : i32
      %c1_i32_116 = arith.constant 1 : i32
      %133 = arith.cmpi sge, %132, %c1_i32_116 : i32
      %c4_i32_117 = arith.constant 4 : i32
      %134 = arith.cmpi sle, %132, %c4_i32_117 : i32
      %135 = arith.andi %133, %134 : i1
      %cst_118 = arith.constant 0.000000e+00 : f32
      %136 = vector.broadcast %cst_118 : f32 to vector<1x4x8xf32>
      %cst_119 = arith.constant 0.000000e+00 : f32
      %137 = vector.broadcast %cst_119 : f32 to vector<1x4x8xf32>
      %c0_i32_120 = arith.constant 0 : i32
      %138 = arith.addi %arg9, %c0_i32_120 : i32
      %c0_121 = arith.constant 0 : index
      %c0_122 = arith.constant 0 : index
      %139 = arith.index_cast %138 : i32 to index
      %c0_123 = arith.constant 0 : index
      %c0_124 = arith.constant 0 : index
      %140 = vector.load %arg2[%c0_121, %c0_122, %139, %c0_123, %c0_124] : memref<16x1x7x5x8xf32, #tpu.memory_space<vmem>>, vector<1x1x1x4x8xf32>
      %141 = vector.shape_cast %140 : vector<1x1x1x4x8xf32> to vector<1x4x8xf32>
      %142 = vector.broadcast %6 : vector<1x1x8xf32> to vector<1x4x8xf32>
      %143 = arith.mulf %141, %142 : vector<1x4x8xf32>
      %144 = arith.addf %136, %143 : vector<1x4x8xf32>
      %c0_i32_125 = arith.constant 0 : i32
      %145 = arith.addi %arg9, %c0_i32_125 : i32
      %c1_126 = arith.constant 1 : index
      %c0_127 = arith.constant 0 : index
      %146 = arith.index_cast %145 : i32 to index
      %c0_128 = arith.constant 0 : index
      %c0_129 = arith.constant 0 : index
      %147 = vector.load %arg2[%c1_126, %c0_127, %146, %c0_128, %c0_129] : memref<16x1x7x5x8xf32, #tpu.memory_space<vmem>>, vector<1x1x1x4x8xf32>
      %148 = vector.shape_cast %147 : vector<1x1x1x4x8xf32> to vector<1x4x8xf32>
      %149 = vector.broadcast %8 : vector<1x1x8xf32> to vector<1x4x8xf32>
      %150 = arith.mulf %148, %149 : vector<1x4x8xf32>
      %151 = arith.addf %137, %150 : vector<1x4x8xf32>
      %c0_i32_130 = arith.constant 0 : i32
      %152 = arith.addi %arg9, %c0_i32_130 : i32
      %c2_131 = arith.constant 2 : index
      %c0_132 = arith.constant 0 : index
      %153 = arith.index_cast %152 : i32 to index
      %c0_133 = arith.constant 0 : index
      %c0_134 = arith.constant 0 : index
      %154 = vector.load %arg2[%c2_131, %c0_132, %153, %c0_133, %c0_134] : memref<16x1x7x5x8xf32, #tpu.memory_space<vmem>>, vector<1x1x1x4x8xf32>
      %155 = vector.shape_cast %154 : vector<1x1x1x4x8xf32> to vector<1x4x8xf32>
      %156 = vector.broadcast %10 : vector<1x1x8xf32> to vector<1x4x8xf32>
      %157 = arith.mulf %155, %156 : vector<1x4x8xf32>
      %158 = arith.addf %144, %157 : vector<1x4x8xf32>
      %c0_i32_135 = arith.constant 0 : i32
      %159 = arith.addi %arg9, %c0_i32_135 : i32
      %c3_136 = arith.constant 3 : index
      %c0_137 = arith.constant 0 : index
      %160 = arith.index_cast %159 : i32 to index
      %c0_138 = arith.constant 0 : index
      %c0_139 = arith.constant 0 : index
      %161 = vector.load %arg2[%c3_136, %c0_137, %160, %c0_138, %c0_139] : memref<16x1x7x5x8xf32, #tpu.memory_space<vmem>>, vector<1x1x1x4x8xf32>
      %162 = vector.shape_cast %161 : vector<1x1x1x4x8xf32> to vector<1x4x8xf32>
      %163 = vector.broadcast %12 : vector<1x1x8xf32> to vector<1x4x8xf32>
      %164 = arith.mulf %162, %163 : vector<1x4x8xf32>
      %165 = arith.addf %151, %164 : vector<1x4x8xf32>
      %c0_i32_140 = arith.constant 0 : i32
      %166 = arith.addi %arg9, %c0_i32_140 : i32
      %c0_141 = arith.constant 0 : index
      %c0_142 = arith.constant 0 : index
      %167 = arith.index_cast %166 : i32 to index
      %c1_143 = arith.constant 1 : index
      %c0_144 = arith.constant 0 : index
      %168 = vector.load %arg2[%c0_141, %c0_142, %167, %c1_143, %c0_144] : memref<16x1x7x5x8xf32, #tpu.memory_space<vmem>>, vector<1x1x1x4x8xf32>
      %169 = vector.shape_cast %168 : vector<1x1x1x4x8xf32> to vector<1x4x8xf32>
      %170 = vector.broadcast %14 : vector<1x1x8xf32> to vector<1x4x8xf32>
      %171 = arith.mulf %169, %170 : vector<1x4x8xf32>
      %172 = arith.addf %158, %171 : vector<1x4x8xf32>
      %c0_i32_145 = arith.constant 0 : i32
      %173 = arith.addi %arg9, %c0_i32_145 : i32
      %c4_146 = arith.constant 4 : index
      %c0_147 = arith.constant 0 : index
      %174 = arith.index_cast %173 : i32 to index
      %c0_148 = arith.constant 0 : index
      %c0_149 = arith.constant 0 : index
      %175 = vector.load %arg2[%c4_146, %c0_147, %174, %c0_148, %c0_149] : memref<16x1x7x5x8xf32, #tpu.memory_space<vmem>>, vector<1x1x1x4x8xf32>
      %176 = vector.shape_cast %175 : vector<1x1x1x4x8xf32> to vector<1x4x8xf32>
      %177 = vector.broadcast %16 : vector<1x1x8xf32> to vector<1x4x8xf32>
      %178 = arith.mulf %176, %177 : vector<1x4x8xf32>
      %179 = arith.addf %165, %178 : vector<1x4x8xf32>
      %c0_i32_150 = arith.constant 0 : i32
      %180 = arith.addi %arg9, %c0_i32_150 : i32
      %c5_151 = arith.constant 5 : index
      %c0_152 = arith.constant 0 : index
      %181 = arith.index_cast %180 : i32 to index
      %c0_153 = arith.constant 0 : index
      %c0_154 = arith.constant 0 : index
      %182 = vector.load %arg2[%c5_151, %c0_152, %181, %c0_153, %c0_154] : memref<16x1x7x5x8xf32, #tpu.memory_space<vmem>>, vector<1x1x1x4x8xf32>
      %183 = vector.shape_cast %182 : vector<1x1x1x4x8xf32> to vector<1x4x8xf32>
      %184 = vector.broadcast %18 : vector<1x1x8xf32> to vector<1x4x8xf32>
      %185 = arith.mulf %183, %184 : vector<1x4x8xf32>
      %186 = arith.addf %172, %185 : vector<1x4x8xf32>
      %c0_i32_155 = arith.constant 0 : i32
      %187 = arith.addi %arg9, %c0_i32_155 : i32
      %c6_156 = arith.constant 6 : index
      %c0_157 = arith.constant 0 : index
      %188 = arith.index_cast %187 : i32 to index
      %c0_158 = arith.constant 0 : index
      %c0_159 = arith.constant 0 : index
      %189 = vector.load %arg2[%c6_156, %c0_157, %188, %c0_158, %c0_159] : memref<16x1x7x5x8xf32, #tpu.memory_space<vmem>>, vector<1x1x1x4x8xf32>
      %190 = vector.shape_cast %189 : vector<1x1x1x4x8xf32> to vector<1x4x8xf32>
      %191 = vector.broadcast %20 : vector<1x1x8xf32> to vector<1x4x8xf32>
      %192 = arith.mulf %190, %191 : vector<1x4x8xf32>
      %193 = arith.addf %179, %192 : vector<1x4x8xf32>
      %c0_i32_160 = arith.constant 0 : i32
      %194 = arith.addi %arg9, %c0_i32_160 : i32
      %c7_161 = arith.constant 7 : index
      %c0_162 = arith.constant 0 : index
      %195 = arith.index_cast %194 : i32 to index
      %c0_163 = arith.constant 0 : index
      %c0_164 = arith.constant 0 : index
      %196 = vector.load %arg2[%c7_161, %c0_162, %195, %c0_163, %c0_164] : memref<16x1x7x5x8xf32, #tpu.memory_space<vmem>>, vector<1x1x1x4x8xf32>
      %197 = vector.shape_cast %196 : vector<1x1x1x4x8xf32> to vector<1x4x8xf32>
      %198 = vector.broadcast %22 : vector<1x1x8xf32> to vector<1x4x8xf32>
      %199 = arith.mulf %197, %198 : vector<1x4x8xf32>
      %200 = arith.addf %186, %199 : vector<1x4x8xf32>
      %c0_i32_165 = arith.constant 0 : i32
      %201 = arith.addi %arg9, %c0_i32_165 : i32
      %c4_166 = arith.constant 4 : index
      %c0_167 = arith.constant 0 : index
      %202 = arith.index_cast %201 : i32 to index
      %c1_168 = arith.constant 1 : index
      %c0_169 = arith.constant 0 : index
      %203 = vector.load %arg2[%c4_166, %c0_167, %202, %c1_168, %c0_169] : memref<16x1x7x5x8xf32, #tpu.memory_space<vmem>>, vector<1x1x1x4x8xf32>
      %204 = vector.shape_cast %203 : vector<1x1x1x4x8xf32> to vector<1x4x8xf32>
      %205 = vector.broadcast %24 : vector<1x1x8xf32> to vector<1x4x8xf32>
      %206 = arith.mulf %204, %205 : vector<1x4x8xf32>
      %207 = arith.addf %193, %206 : vector<1x4x8xf32>
      %c0_i32_170 = arith.constant 0 : i32
      %208 = arith.addi %arg9, %c0_i32_170 : i32
      %c8_171 = arith.constant 8 : index
      %c0_172 = arith.constant 0 : index
      %209 = arith.index_cast %208 : i32 to index
      %c0_173 = arith.constant 0 : index
      %c0_174 = arith.constant 0 : index
      %210 = vector.load %arg2[%c8_171, %c0_172, %209, %c0_173, %c0_174] : memref<16x1x7x5x8xf32, #tpu.memory_space<vmem>>, vector<1x1x1x4x8xf32>
      %211 = vector.shape_cast %210 : vector<1x1x1x4x8xf32> to vector<1x4x8xf32>
      %212 = vector.broadcast %26 : vector<1x1x8xf32> to vector<1x4x8xf32>
      %213 = arith.mulf %211, %212 : vector<1x4x8xf32>
      %214 = arith.addf %200, %213 : vector<1x4x8xf32>
      %c0_i32_175 = arith.constant 0 : i32
      %215 = arith.addi %arg9, %c0_i32_175 : i32
      %c9_176 = arith.constant 9 : index
      %c0_177 = arith.constant 0 : index
      %216 = arith.index_cast %215 : i32 to index
      %c0_178 = arith.constant 0 : index
      %c0_179 = arith.constant 0 : index
      %217 = vector.load %arg2[%c9_176, %c0_177, %216, %c0_178, %c0_179] : memref<16x1x7x5x8xf32, #tpu.memory_space<vmem>>, vector<1x1x1x4x8xf32>
      %218 = vector.shape_cast %217 : vector<1x1x1x4x8xf32> to vector<1x4x8xf32>
      %219 = vector.broadcast %28 : vector<1x1x8xf32> to vector<1x4x8xf32>
      %220 = arith.mulf %218, %219 : vector<1x4x8xf32>
      %221 = arith.addf %207, %220 : vector<1x4x8xf32>
      %c0_i32_180 = arith.constant 0 : i32
      %222 = arith.addi %arg9, %c0_i32_180 : i32
      %c10_181 = arith.constant 10 : index
      %c0_182 = arith.constant 0 : index
      %223 = arith.index_cast %222 : i32 to index
      %c0_183 = arith.constant 0 : index
      %c0_184 = arith.constant 0 : index
      %224 = vector.load %arg2[%c10_181, %c0_182, %223, %c0_183, %c0_184] : memref<16x1x7x5x8xf32, #tpu.memory_space<vmem>>, vector<1x1x1x4x8xf32>
      %225 = vector.shape_cast %224 : vector<1x1x1x4x8xf32> to vector<1x4x8xf32>
      %226 = vector.broadcast %30 : vector<1x1x8xf32> to vector<1x4x8xf32>
      %227 = arith.mulf %225, %226 : vector<1x4x8xf32>
      %228 = arith.addf %214, %227 : vector<1x4x8xf32>
      %c0_i32_185 = arith.constant 0 : i32
      %229 = arith.addi %arg9, %c0_i32_185 : i32
      %c11_186 = arith.constant 11 : index
      %c0_187 = arith.constant 0 : index
      %230 = arith.index_cast %229 : i32 to index
      %c0_188 = arith.constant 0 : index
      %c0_189 = arith.constant 0 : index
      %231 = vector.load %arg2[%c11_186, %c0_187, %230, %c0_188, %c0_189] : memref<16x1x7x5x8xf32, #tpu.memory_space<vmem>>, vector<1x1x1x4x8xf32>
      %232 = vector.shape_cast %231 : vector<1x1x1x4x8xf32> to vector<1x4x8xf32>
      %233 = vector.broadcast %32 : vector<1x1x8xf32> to vector<1x4x8xf32>
      %234 = arith.mulf %232, %233 : vector<1x4x8xf32>
      %235 = arith.addf %221, %234 : vector<1x4x8xf32>
      %c0_i32_190 = arith.constant 0 : i32
      %236 = arith.addi %arg9, %c0_i32_190 : i32
      %c8_191 = arith.constant 8 : index
      %c0_192 = arith.constant 0 : index
      %237 = arith.index_cast %236 : i32 to index
      %c1_193 = arith.constant 1 : index
      %c0_194 = arith.constant 0 : index
      %238 = vector.load %arg2[%c8_191, %c0_192, %237, %c1_193, %c0_194] : memref<16x1x7x5x8xf32, #tpu.memory_space<vmem>>, vector<1x1x1x4x8xf32>
      %239 = vector.shape_cast %238 : vector<1x1x1x4x8xf32> to vector<1x4x8xf32>
      %240 = vector.broadcast %34 : vector<1x1x8xf32> to vector<1x4x8xf32>
      %241 = arith.mulf %239, %240 : vector<1x4x8xf32>
      %242 = arith.addf %228, %241 : vector<1x4x8xf32>
      %c0_i32_195 = arith.constant 0 : i32
      %243 = arith.addi %arg9, %c0_i32_195 : i32
      %c12_196 = arith.constant 12 : index
      %c0_197 = arith.constant 0 : index
      %244 = arith.index_cast %243 : i32 to index
      %c0_198 = arith.constant 0 : index
      %c0_199 = arith.constant 0 : index
      %245 = vector.load %arg2[%c12_196, %c0_197, %244, %c0_198, %c0_199] : memref<16x1x7x5x8xf32, #tpu.memory_space<vmem>>, vector<1x1x1x4x8xf32>
      %246 = vector.shape_cast %245 : vector<1x1x1x4x8xf32> to vector<1x4x8xf32>
      %247 = vector.broadcast %36 : vector<1x1x8xf32> to vector<1x4x8xf32>
      %248 = arith.mulf %246, %247 : vector<1x4x8xf32>
      %249 = arith.addf %235, %248 : vector<1x4x8xf32>
      %c0_i32_200 = arith.constant 0 : i32
      %250 = arith.addi %arg9, %c0_i32_200 : i32
      %c13_201 = arith.constant 13 : index
      %c0_202 = arith.constant 0 : index
      %251 = arith.index_cast %250 : i32 to index
      %c0_203 = arith.constant 0 : index
      %c0_204 = arith.constant 0 : index
      %252 = vector.load %arg2[%c13_201, %c0_202, %251, %c0_203, %c0_204] : memref<16x1x7x5x8xf32, #tpu.memory_space<vmem>>, vector<1x1x1x4x8xf32>
      %253 = vector.shape_cast %252 : vector<1x1x1x4x8xf32> to vector<1x4x8xf32>
      %254 = vector.broadcast %38 : vector<1x1x8xf32> to vector<1x4x8xf32>
      %255 = arith.mulf %253, %254 : vector<1x4x8xf32>
      %256 = arith.addf %242, %255 : vector<1x4x8xf32>
      %c0_i32_205 = arith.constant 0 : i32
      %257 = arith.addi %arg9, %c0_i32_205 : i32
      %c14_206 = arith.constant 14 : index
      %c0_207 = arith.constant 0 : index
      %258 = arith.index_cast %257 : i32 to index
      %c0_208 = arith.constant 0 : index
      %c0_209 = arith.constant 0 : index
      %259 = vector.load %arg2[%c14_206, %c0_207, %258, %c0_208, %c0_209] : memref<16x1x7x5x8xf32, #tpu.memory_space<vmem>>, vector<1x1x1x4x8xf32>
      %260 = vector.shape_cast %259 : vector<1x1x1x4x8xf32> to vector<1x4x8xf32>
      %261 = vector.broadcast %40 : vector<1x1x8xf32> to vector<1x4x8xf32>
      %262 = arith.mulf %260, %261 : vector<1x4x8xf32>
      %263 = arith.addf %249, %262 : vector<1x4x8xf32>
      %c0_i32_210 = arith.constant 0 : i32
      %264 = arith.addi %arg9, %c0_i32_210 : i32
      %c15_211 = arith.constant 15 : index
      %c0_212 = arith.constant 0 : index
      %265 = arith.index_cast %264 : i32 to index
      %c0_213 = arith.constant 0 : index
      %c0_214 = arith.constant 0 : index
      %266 = vector.load %arg2[%c15_211, %c0_212, %265, %c0_213, %c0_214] : memref<16x1x7x5x8xf32, #tpu.memory_space<vmem>>, vector<1x1x1x4x8xf32>
      %267 = vector.shape_cast %266 : vector<1x1x1x4x8xf32> to vector<1x4x8xf32>
      %268 = vector.broadcast %42 : vector<1x1x8xf32> to vector<1x4x8xf32>
      %269 = arith.mulf %267, %268 : vector<1x4x8xf32>
      %270 = arith.addf %256, %269 : vector<1x4x8xf32>
      %c0_i32_215 = arith.constant 0 : i32
      %271 = arith.addi %arg9, %c0_i32_215 : i32
      %c12_216 = arith.constant 12 : index
      %c0_217 = arith.constant 0 : index
      %272 = arith.index_cast %271 : i32 to index
      %c1_218 = arith.constant 1 : index
      %c0_219 = arith.constant 0 : index
      %273 = vector.load %arg2[%c12_216, %c0_217, %272, %c1_218, %c0_219] : memref<16x1x7x5x8xf32, #tpu.memory_space<vmem>>, vector<1x1x1x4x8xf32>
      %274 = vector.shape_cast %273 : vector<1x1x1x4x8xf32> to vector<1x4x8xf32>
      %275 = vector.broadcast %44 : vector<1x1x8xf32> to vector<1x4x8xf32>
      %276 = arith.mulf %274, %275 : vector<1x4x8xf32>
      %277 = arith.addf %263, %276 : vector<1x4x8xf32>
      %c1_i32_220 = arith.constant 1 : i32
      %278 = arith.addi %arg9, %c1_i32_220 : i32
      %c0_221 = arith.constant 0 : index
      %c0_222 = arith.constant 0 : index
      %279 = arith.index_cast %278 : i32 to index
      %c0_223 = arith.constant 0 : index
      %c0_224 = arith.constant 0 : index
      %280 = vector.load %arg2[%c0_221, %c0_222, %279, %c0_223, %c0_224] : memref<16x1x7x5x8xf32, #tpu.memory_space<vmem>>, vector<1x1x1x4x8xf32>
      %281 = vector.shape_cast %280 : vector<1x1x1x4x8xf32> to vector<1x4x8xf32>
      %282 = vector.broadcast %46 : vector<1x1x8xf32> to vector<1x4x8xf32>
      %283 = arith.mulf %281, %282 : vector<1x4x8xf32>
      %284 = arith.addf %270, %283 : vector<1x4x8xf32>
      %c1_i32_225 = arith.constant 1 : i32
      %285 = arith.addi %arg9, %c1_i32_225 : i32
      %c1_226 = arith.constant 1 : index
      %c0_227 = arith.constant 0 : index
      %286 = arith.index_cast %285 : i32 to index
      %c0_228 = arith.constant 0 : index
      %c0_229 = arith.constant 0 : index
      %287 = vector.load %arg2[%c1_226, %c0_227, %286, %c0_228, %c0_229] : memref<16x1x7x5x8xf32, #tpu.memory_space<vmem>>, vector<1x1x1x4x8xf32>
      %288 = vector.shape_cast %287 : vector<1x1x1x4x8xf32> to vector<1x4x8xf32>
      %289 = vector.broadcast %48 : vector<1x1x8xf32> to vector<1x4x8xf32>
      %290 = arith.mulf %288, %289 : vector<1x4x8xf32>
      %291 = arith.addf %277, %290 : vector<1x4x8xf32>
      %c1_i32_230 = arith.constant 1 : i32
      %292 = arith.addi %arg9, %c1_i32_230 : i32
      %c2_231 = arith.constant 2 : index
      %c0_232 = arith.constant 0 : index
      %293 = arith.index_cast %292 : i32 to index
      %c0_233 = arith.constant 0 : index
      %c0_234 = arith.constant 0 : index
      %294 = vector.load %arg2[%c2_231, %c0_232, %293, %c0_233, %c0_234] : memref<16x1x7x5x8xf32, #tpu.memory_space<vmem>>, vector<1x1x1x4x8xf32>
      %295 = vector.shape_cast %294 : vector<1x1x1x4x8xf32> to vector<1x4x8xf32>
      %296 = vector.broadcast %50 : vector<1x1x8xf32> to vector<1x4x8xf32>
      %297 = arith.mulf %295, %296 : vector<1x4x8xf32>
      %298 = arith.addf %284, %297 : vector<1x4x8xf32>
      %c1_i32_235 = arith.constant 1 : i32
      %299 = arith.addi %arg9, %c1_i32_235 : i32
      %c3_236 = arith.constant 3 : index
      %c0_237 = arith.constant 0 : index
      %300 = arith.index_cast %299 : i32 to index
      %c0_238 = arith.constant 0 : index
      %c0_239 = arith.constant 0 : index
      %301 = vector.load %arg2[%c3_236, %c0_237, %300, %c0_238, %c0_239] : memref<16x1x7x5x8xf32, #tpu.memory_space<vmem>>, vector<1x1x1x4x8xf32>
      %302 = vector.shape_cast %301 : vector<1x1x1x4x8xf32> to vector<1x4x8xf32>
      %303 = vector.broadcast %52 : vector<1x1x8xf32> to vector<1x4x8xf32>
      %304 = arith.mulf %302, %303 : vector<1x4x8xf32>
      %305 = arith.addf %291, %304 : vector<1x4x8xf32>
      %c1_i32_240 = arith.constant 1 : i32
      %306 = arith.addi %arg9, %c1_i32_240 : i32
      %c0_241 = arith.constant 0 : index
      %c0_242 = arith.constant 0 : index
      %307 = arith.index_cast %306 : i32 to index
      %c1_243 = arith.constant 1 : index
      %c0_244 = arith.constant 0 : index
      %308 = vector.load %arg2[%c0_241, %c0_242, %307, %c1_243, %c0_244] : memref<16x1x7x5x8xf32, #tpu.memory_space<vmem>>, vector<1x1x1x4x8xf32>
      %309 = vector.shape_cast %308 : vector<1x1x1x4x8xf32> to vector<1x4x8xf32>
      %310 = vector.broadcast %54 : vector<1x1x8xf32> to vector<1x4x8xf32>
      %311 = arith.mulf %309, %310 : vector<1x4x8xf32>
      %312 = arith.addf %298, %311 : vector<1x4x8xf32>
      %313 = arith.addf %312, %305 : vector<1x4x8xf32>
      %314 = vector.broadcast %2 : vector<1x1x8xf32> to vector<1x4x8xf32>
      %315 = arith.addf %313, %314 : vector<1x4x8xf32>
      %cst_245 = arith.constant 0.000000e+00 : f32
      %316 = vector.broadcast %cst_245 : f32 to vector<1x4x8xf32>
      %317 = arith.select %135, %315, %316 : vector<1x4x8xf32>
      %c0_246 = arith.constant 0 : index
      %318 = arith.index_cast %arg9 : i32 to index
      %c1_247 = arith.constant 1 : index
      %c0_248 = arith.constant 0 : index
      %319 = vector.load %arg8[%c0_246, %318, %c1_247, %c0_248] : memref<4x6x6x8xf32, #tpu.memory_space<vmem>>, vector<1x1x4x8xf32>
      %320 = vector.shape_cast %319 : vector<1x1x4x8xf32> to vector<1x4x8xf32>
      %321 = vector.shape_cast %317 : vector<1x4x8xf32> to vector<1x1x4x8xf32>
      tpu.vector_store %arg8[%c0_246, %318, %c1_247, %c0_248], %321 {strides = array<i32>} : memref<4x6x6x8xf32, #tpu.memory_space<vmem>>, vector<1x1x4x8xf32>,
      %cst_249 = arith.constant 0.000000e+00 : f32
      %322 = vector.broadcast %cst_249 : f32 to vector<1x4x8xf32>
      %cst_250 = arith.constant 0.000000e+00 : f32
      %323 = vector.broadcast %cst_250 : f32 to vector<1x4x8xf32>
      %c0_i32_251 = arith.constant 0 : i32
      %324 = arith.addi %arg9, %c0_i32_251 : i32
      %c2_252 = arith.constant 2 : index
      %c0_253 = arith.constant 0 : index
      %325 = arith.index_cast %324 : i32 to index
      %c0_254 = arith.constant 0 : index
      %c0_255 = arith.constant 0 : index
      %326 = vector.load %arg2[%c2_252, %c0_253, %325, %c0_254, %c0_255] : memref<16x1x7x5x8xf32, #tpu.memory_space<vmem>>, vector<1x1x1x4x8xf32>
      %327 = vector.shape_cast %326 : vector<1x1x1x4x8xf32> to vector<1x4x8xf32>
      %328 = vector.broadcast %6 : vector<1x1x8xf32> to vector<1x4x8xf32>
      %329 = arith.mulf %327, %328 : vector<1x4x8xf32>
      %330 = arith.addf %322, %329 : vector<1x4x8xf32>
      %c0_i32_256 = arith.constant 0 : i32
      %331 = arith.addi %arg9, %c0_i32_256 : i32
      %c3_257 = arith.constant 3 : index
      %c0_258 = arith.constant 0 : index
      %332 = arith.index_cast %331 : i32 to index
      %c0_259 = arith.constant 0 : index
      %c0_260 = arith.constant 0 : index
      %333 = vector.load %arg2[%c3_257, %c0_258, %332, %c0_259, %c0_260] : memref<16x1x7x5x8xf32, #tpu.memory_space<vmem>>, vector<1x1x1x4x8xf32>
      %334 = vector.shape_cast %333 : vector<1x1x1x4x8xf32> to vector<1x4x8xf32>
      %335 = vector.broadcast %8 : vector<1x1x8xf32> to vector<1x4x8xf32>
      %336 = arith.mulf %334, %335 : vector<1x4x8xf32>
      %337 = arith.addf %323, %336 : vector<1x4x8xf32>
      %c0_i32_261 = arith.constant 0 : i32
      %338 = arith.addi %arg9, %c0_i32_261 : i32
      %c0_262 = arith.constant 0 : index
      %c0_263 = arith.constant 0 : index
      %339 = arith.index_cast %338 : i32 to index
      %c1_264 = arith.constant 1 : index
      %c0_265 = arith.constant 0 : index
      %340 = vector.load %arg2[%c0_262, %c0_263, %339, %c1_264, %c0_265] : memref<16x1x7x5x8xf32, #tpu.memory_space<vmem>>, vector<1x1x1x4x8xf32>
      %341 = vector.shape_cast %340 : vector<1x1x1x4x8xf32> to vector<1x4x8xf32>
      %342 = vector.broadcast %10 : vector<1x1x8xf32> to vector<1x4x8xf32>
      %343 = arith.mulf %341, %342 : vector<1x4x8xf32>
      %344 = arith.addf %330, %343 : vector<1x4x8xf32>
      %c0_i32_266 = arith.constant 0 : i32
      %345 = arith.addi %arg9, %c0_i32_266 : i32
      %c1_267 = arith.constant 1 : index
      %c0_268 = arith.constant 0 : index
      %346 = arith.index_cast %345 : i32 to index
      %c1_269 = arith.constant 1 : index
      %c0_270 = arith.constant 0 : index
      %347 = vector.load %arg2[%c1_267, %c0_268, %346, %c1_269, %c0_270] : memref<16x1x7x5x8xf32, #tpu.memory_space<vmem>>, vector<1x1x1x4x8xf32>
      %348 = vector.shape_cast %347 : vector<1x1x1x4x8xf32> to vector<1x4x8xf32>
      %349 = vector.broadcast %12 : vector<1x1x8xf32> to vector<1x4x8xf32>
      %350 = arith.mulf %348, %349 : vector<1x4x8xf32>
      %351 = arith.addf %337, %350 : vector<1x4x8xf32>
      %c0_i32_271 = arith.constant 0 : i32
      %352 = arith.addi %arg9, %c0_i32_271 : i32
      %c2_272 = arith.constant 2 : index
      %c0_273 = arith.constant 0 : index
      %353 = arith.index_cast %352 : i32 to index
      %c1_274 = arith.constant 1 : index
      %c0_275 = arith.constant 0 : index
      %354 = vector.load %arg2[%c2_272, %c0_273, %353, %c1_274, %c0_275] : memref<16x1x7x5x8xf32, #tpu.memory_space<vmem>>, vector<1x1x1x4x8xf32>
      %355 = vector.shape_cast %354 : vector<1x1x1x4x8xf32> to vector<1x4x8xf32>
      %356 = vector.broadcast %14 : vector<1x1x8xf32> to vector<1x4x8xf32>
      %357 = arith.mulf %355, %356 : vector<1x4x8xf32>
      %358 = arith.addf %344, %357 : vector<1x4x8xf32>
      %c0_i32_276 = arith.constant 0 : i32
      %359 = arith.addi %arg9, %c0_i32_276 : i32
      %c6_277 = arith.constant 6 : index
      %c0_278 = arith.constant 0 : index
      %360 = arith.index_cast %359 : i32 to index
      %c0_279 = arith.constant 0 : index
      %c0_280 = arith.constant 0 : index
      %361 = vector.load %arg2[%c6_277, %c0_278, %360, %c0_279, %c0_280] : memref<16x1x7x5x8xf32, #tpu.memory_space<vmem>>, vector<1x1x1x4x8xf32>
      %362 = vector.shape_cast %361 : vector<1x1x1x4x8xf32> to vector<1x4x8xf32>
      %363 = vector.broadcast %16 : vector<1x1x8xf32> to vector<1x4x8xf32>
      %364 = arith.mulf %362, %363 : vector<1x4x8xf32>
      %365 = arith.addf %351, %364 : vector<1x4x8xf32>
      %c0_i32_281 = arith.constant 0 : i32
      %366 = arith.addi %arg9, %c0_i32_281 : i32
      %c7_282 = arith.constant 7 : index
      %c0_283 = arith.constant 0 : index
      %367 = arith.index_cast %366 : i32 to index
      %c0_284 = arith.constant 0 : index
      %c0_285 = arith.constant 0 : index
      %368 = vector.load %arg2[%c7_282, %c0_283, %367, %c0_284, %c0_285] : memref<16x1x7x5x8xf32, #tpu.memory_space<vmem>>, vector<1x1x1x4x8xf32>
      %369 = vector.shape_cast %368 : vector<1x1x1x4x8xf32> to vector<1x4x8xf32>
      %370 = vector.broadcast %18 : vector<1x1x8xf32> to vector<1x4x8xf32>
      %371 = arith.mulf %369, %370 : vector<1x4x8xf32>
      %372 = arith.addf %358, %371 : vector<1x4x8xf32>
      %c0_i32_286 = arith.constant 0 : i32
      %373 = arith.addi %arg9, %c0_i32_286 : i32
      %c4_287 = arith.constant 4 : index
      %c0_288 = arith.constant 0 : index
      %374 = arith.index_cast %373 : i32 to index
      %c1_289 = arith.constant 1 : index
      %c0_290 = arith.constant 0 : index
      %375 = vector.load %arg2[%c4_287, %c0_288, %374, %c1_289, %c0_290] : memref<16x1x7x5x8xf32, #tpu.memory_space<vmem>>, vector<1x1x1x4x8xf32>
      %376 = vector.shape_cast %375 : vector<1x1x1x4x8xf32> to vector<1x4x8xf32>
      %377 = vector.broadcast %20 : vector<1x1x8xf32> to vector<1x4x8xf32>
      %378 = arith.mulf %376, %377 : vector<1x4x8xf32>
      %379 = arith.addf %365, %378 : vector<1x4x8xf32>
      %c0_i32_291 = arith.constant 0 : i32
      %380 = arith.addi %arg9, %c0_i32_291 : i32
      %c5_292 = arith.constant 5 : index
      %c0_293 = arith.constant 0 : index
      %381 = arith.index_cast %380 : i32 to index
      %c1_294 = arith.constant 1 : index
      %c0_295 = arith.constant 0 : index
      %382 = vector.load %arg2[%c5_292, %c0_293, %381, %c1_294, %c0_295] : memref<16x1x7x5x8xf32, #tpu.memory_space<vmem>>, vector<1x1x1x4x8xf32>
      %383 = vector.shape_cast %382 : vector<1x1x1x4x8xf32> to vector<1x4x8xf32>
      %384 = vector.broadcast %22 : vector<1x1x8xf32> to vector<1x4x8xf32>
      %385 = arith.mulf %383, %384 : vector<1x4x8xf32>
      %386 = arith.addf %372, %385 : vector<1x4x8xf32>
      %c0_i32_296 = arith.constant 0 : i32
      %387 = arith.addi %arg9, %c0_i32_296 : i32
      %c6_297 = arith.constant 6 : index
      %c0_298 = arith.constant 0 : index
      %388 = arith.index_cast %387 : i32 to index
      %c1_299 = arith.constant 1 : index
      %c0_300 = arith.constant 0 : index
      %389 = vector.load %arg2[%c6_297, %c0_298, %388, %c1_299, %c0_300] : memref<16x1x7x5x8xf32, #tpu.memory_space<vmem>>, vector<1x1x1x4x8xf32>
      %390 = vector.shape_cast %389 : vector<1x1x1x4x8xf32> to vector<1x4x8xf32>
      %391 = vector.broadcast %24 : vector<1x1x8xf32> to vector<1x4x8xf32>
      %392 = arith.mulf %390, %391 : vector<1x4x8xf32>
      %393 = arith.addf %379, %392 : vector<1x4x8xf32>
      %c0_i32_301 = arith.constant 0 : i32
      %394 = arith.addi %arg9, %c0_i32_301 : i32
      %c10_302 = arith.constant 10 : index
      %c0_303 = arith.constant 0 : index
      %395 = arith.index_cast %394 : i32 to index
      %c0_304 = arith.constant 0 : index
      %c0_305 = arith.constant 0 : index
      %396 = vector.load %arg2[%c10_302, %c0_303, %395, %c0_304, %c0_305] : memref<16x1x7x5x8xf32, #tpu.memory_space<vmem>>, vector<1x1x1x4x8xf32>
      %397 = vector.shape_cast %396 : vector<1x1x1x4x8xf32> to vector<1x4x8xf32>
      %398 = vector.broadcast %26 : vector<1x1x8xf32> to vector<1x4x8xf32>
      %399 = arith.mulf %397, %398 : vector<1x4x8xf32>
      %400 = arith.addf %386, %399 : vector<1x4x8xf32>
      %c0_i32_306 = arith.constant 0 : i32
      %401 = arith.addi %arg9, %c0_i32_306 : i32
      %c11_307 = arith.constant 11 : index
      %c0_308 = arith.constant 0 : index
      %402 = arith.index_cast %401 : i32 to index
      %c0_309 = arith.constant 0 : index
      %c0_310 = arith.constant 0 : index
      %403 = vector.load %arg2[%c11_307, %c0_308, %402, %c0_309, %c0_310] : memref<16x1x7x5x8xf32, #tpu.memory_space<vmem>>, vector<1x1x1x4x8xf32>
      %404 = vector.shape_cast %403 : vector<1x1x1x4x8xf32> to vector<1x4x8xf32>
      %405 = vector.broadcast %28 : vector<1x1x8xf32> to vector<1x4x8xf32>
      %406 = arith.mulf %404, %405 : vector<1x4x8xf32>
      %407 = arith.addf %393, %406 : vector<1x4x8xf32>
      %c0_i32_311 = arith.constant 0 : i32
      %408 = arith.addi %arg9, %c0_i32_311 : i32
      %c8_312 = arith.constant 8 : index
      %c0_313 = arith.constant 0 : index
      %409 = arith.index_cast %408 : i32 to index
      %c1_314 = arith.constant 1 : index
      %c0_315 = arith.constant 0 : index
      %410 = vector.load %arg2[%c8_312, %c0_313, %409, %c1_314, %c0_315] : memref<16x1x7x5x8xf32, #tpu.memory_space<vmem>>, vector<1x1x1x4x8xf32>
      %411 = vector.shape_cast %410 : vector<1x1x1x4x8xf32> to vector<1x4x8xf32>
      %412 = vector.broadcast %30 : vector<1x1x8xf32> to vector<1x4x8xf32>
      %413 = arith.mulf %411, %412 : vector<1x4x8xf32>
      %414 = arith.addf %400, %413 : vector<1x4x8xf32>
      %c0_i32_316 = arith.constant 0 : i32
      %415 = arith.addi %arg9, %c0_i32_316 : i32
      %c9_317 = arith.constant 9 : index
      %c0_318 = arith.constant 0 : index
      %416 = arith.index_cast %415 : i32 to index
      %c1_319 = arith.constant 1 : index
      %c0_320 = arith.constant 0 : index
      %417 = vector.load %arg2[%c9_317, %c0_318, %416, %c1_319, %c0_320] : memref<16x1x7x5x8xf32, #tpu.memory_space<vmem>>, vector<1x1x1x4x8xf32>
      %418 = vector.shape_cast %417 : vector<1x1x1x4x8xf32> to vector<1x4x8xf32>
      %419 = vector.broadcast %32 : vector<1x1x8xf32> to vector<1x4x8xf32>
      %420 = arith.mulf %418, %419 : vector<1x4x8xf32>
      %421 = arith.addf %407, %420 : vector<1x4x8xf32>
      %c0_i32_321 = arith.constant 0 : i32
      %422 = arith.addi %arg9, %c0_i32_321 : i32
      %c10_322 = arith.constant 10 : index
      %c0_323 = arith.constant 0 : index
      %423 = arith.index_cast %422 : i32 to index
      %c1_324 = arith.constant 1 : index
      %c0_325 = arith.constant 0 : index
      %424 = vector.load %arg2[%c10_322, %c0_323, %423, %c1_324, %c0_325] : memref<16x1x7x5x8xf32, #tpu.memory_space<vmem>>, vector<1x1x1x4x8xf32>
      %425 = vector.shape_cast %424 : vector<1x1x1x4x8xf32> to vector<1x4x8xf32>
      %426 = vector.broadcast %34 : vector<1x1x8xf32> to vector<1x4x8xf32>
      %427 = arith.mulf %425, %426 : vector<1x4x8xf32>
      %428 = arith.addf %414, %427 : vector<1x4x8xf32>
      %c0_i32_326 = arith.constant 0 : i32
      %429 = arith.addi %arg9, %c0_i32_326 : i32
      %c14_327 = arith.constant 14 : index
      %c0_328 = arith.constant 0 : index
      %430 = arith.index_cast %429 : i32 to index
      %c0_329 = arith.constant 0 : index
      %c0_330 = arith.constant 0 : index
      %431 = vector.load %arg2[%c14_327, %c0_328, %430, %c0_329, %c0_330] : memref<16x1x7x5x8xf32, #tpu.memory_space<vmem>>, vector<1x1x1x4x8xf32>
      %432 = vector.shape_cast %431 : vector<1x1x1x4x8xf32> to vector<1x4x8xf32>
      %433 = vector.broadcast %36 : vector<1x1x8xf32> to vector<1x4x8xf32>
      %434 = arith.mulf %432, %433 : vector<1x4x8xf32>
      %435 = arith.addf %421, %434 : vector<1x4x8xf32>
      %c0_i32_331 = arith.constant 0 : i32
      %436 = arith.addi %arg9, %c0_i32_331 : i32
      %c15_332 = arith.constant 15 : index
      %c0_333 = arith.constant 0 : index
      %437 = arith.index_cast %436 : i32 to index
      %c0_334 = arith.constant 0 : index
      %c0_335 = arith.constant 0 : index
      %438 = vector.load %arg2[%c15_332, %c0_333, %437, %c0_334, %c0_335] : memref<16x1x7x5x8xf32, #tpu.memory_space<vmem>>, vector<1x1x1x4x8xf32>
      %439 = vector.shape_cast %438 : vector<1x1x1x4x8xf32> to vector<1x4x8xf32>
      %440 = vector.broadcast %38 : vector<1x1x8xf32> to vector<1x4x8xf32>
      %441 = arith.mulf %439, %440 : vector<1x4x8xf32>
      %442 = arith.addf %428, %441 : vector<1x4x8xf32>
      %c0_i32_336 = arith.constant 0 : i32
      %443 = arith.addi %arg9, %c0_i32_336 : i32
      %c12_337 = arith.constant 12 : index
      %c0_338 = arith.constant 0 : index
      %444 = arith.index_cast %443 : i32 to index
      %c1_339 = arith.constant 1 : index
      %c0_340 = arith.constant 0 : index
      %445 = vector.load %arg2[%c12_337, %c0_338, %444, %c1_339, %c0_340] : memref<16x1x7x5x8xf32, #tpu.memory_space<vmem>>, vector<1x1x1x4x8xf32>
      %446 = vector.shape_cast %445 : vector<1x1x1x4x8xf32> to vector<1x4x8xf32>
      %447 = vector.broadcast %40 : vector<1x1x8xf32> to vector<1x4x8xf32>
      %448 = arith.mulf %446, %447 : vector<1x4x8xf32>
      %449 = arith.addf %435, %448 : vector<1x4x8xf32>
      %c0_i32_341 = arith.constant 0 : i32
      %450 = arith.addi %arg9, %c0_i32_341 : i32
      %c13_342 = arith.constant 13 : index
      %c0_343 = arith.constant 0 : index
      %451 = arith.index_cast %450 : i32 to index
      %c1_344 = arith.constant 1 : index
      %c0_345 = arith.constant 0 : index
      %452 = vector.load %arg2[%c13_342, %c0_343, %451, %c1_344, %c0_345] : memref<16x1x7x5x8xf32, #tpu.memory_space<vmem>>, vector<1x1x1x4x8xf32>
      %453 = vector.shape_cast %452 : vector<1x1x1x4x8xf32> to vector<1x4x8xf32>
      %454 = vector.broadcast %42 : vector<1x1x8xf32> to vector<1x4x8xf32>
      %455 = arith.mulf %453, %454 : vector<1x4x8xf32>
      %456 = arith.addf %442, %455 : vector<1x4x8xf32>
      %c0_i32_346 = arith.constant 0 : i32
      %457 = arith.addi %arg9, %c0_i32_346 : i32
      %c14_347 = arith.constant 14 : index
      %c0_348 = arith.constant 0 : index
      %458 = arith.index_cast %457 : i32 to index
      %c1_349 = arith.constant 1 : index
      %c0_350 = arith.constant 0 : index
      %459 = vector.load %arg2[%c14_347, %c0_348, %458, %c1_349, %c0_350] : memref<16x1x7x5x8xf32, #tpu.memory_space<vmem>>, vector<1x1x1x4x8xf32>
      %460 = vector.shape_cast %459 : vector<1x1x1x4x8xf32> to vector<1x4x8xf32>
      %461 = vector.broadcast %44 : vector<1x1x8xf32> to vector<1x4x8xf32>
      %462 = arith.mulf %460, %461 : vector<1x4x8xf32>
      %463 = arith.addf %449, %462 : vector<1x4x8xf32>
      %c1_i32_351 = arith.constant 1 : i32
      %464 = arith.addi %arg9, %c1_i32_351 : i32
      %c2_352 = arith.constant 2 : index
      %c0_353 = arith.constant 0 : index
      %465 = arith.index_cast %464 : i32 to index
      %c0_354 = arith.constant 0 : index
      %c0_355 = arith.constant 0 : index
      %466 = vector.load %arg2[%c2_352, %c0_353, %465, %c0_354, %c0_355] : memref<16x1x7x5x8xf32, #tpu.memory_space<vmem>>, vector<1x1x1x4x8xf32>
      %467 = vector.shape_cast %466 : vector<1x1x1x4x8xf32> to vector<1x4x8xf32>
      %468 = vector.broadcast %46 : vector<1x1x8xf32> to vector<1x4x8xf32>
      %469 = arith.mulf %467, %468 : vector<1x4x8xf32>
      %470 = arith.addf %456, %469 : vector<1x4x8xf32>
      %c1_i32_356 = arith.constant 1 : i32
      %471 = arith.addi %arg9, %c1_i32_356 : i32
      %c3_357 = arith.constant 3 : index
      %c0_358 = arith.constant 0 : index
      %472 = arith.index_cast %471 : i32 to index
      %c0_359 = arith.constant 0 : index
      %c0_360 = arith.constant 0 : index
      %473 = vector.load %arg2[%c3_357, %c0_358, %472, %c0_359, %c0_360] : memref<16x1x7x5x8xf32, #tpu.memory_space<vmem>>, vector<1x1x1x4x8xf32>
      %474 = vector.shape_cast %473 : vector<1x1x1x4x8xf32> to vector<1x4x8xf32>
      %475 = vector.broadcast %48 : vector<1x1x8xf32> to vector<1x4x8xf32>
      %476 = arith.mulf %474, %475 : vector<1x4x8xf32>
      %477 = arith.addf %463, %476 : vector<1x4x8xf32>
      %c1_i32_361 = arith.constant 1 : i32
      %478 = arith.addi %arg9, %c1_i32_361 : i32
      %c0_362 = arith.constant 0 : index
      %c0_363 = arith.constant 0 : index
      %479 = arith.index_cast %478 : i32 to index
      %c1_364 = arith.constant 1 : index
      %c0_365 = arith.constant 0 : index
      %480 = vector.load %arg2[%c0_362, %c0_363, %479, %c1_364, %c0_365] : memref<16x1x7x5x8xf32, #tpu.memory_space<vmem>>, vector<1x1x1x4x8xf32>
      %481 = vector.shape_cast %480 : vector<1x1x1x4x8xf32> to vector<1x4x8xf32>
      %482 = vector.broadcast %50 : vector<1x1x8xf32> to vector<1x4x8xf32>
      %483 = arith.mulf %481, %482 : vector<1x4x8xf32>
      %484 = arith.addf %470, %483 : vector<1x4x8xf32>
      %c1_i32_366 = arith.constant 1 : i32
      %485 = arith.addi %arg9, %c1_i32_366 : i32
      %c1_367 = arith.constant 1 : index
      %c0_368 = arith.constant 0 : index
      %486 = arith.index_cast %485 : i32 to index
      %c1_369 = arith.constant 1 : index
      %c0_370 = arith.constant 0 : index
      %487 = vector.load %arg2[%c1_367, %c0_368, %486, %c1_369, %c0_370] : memref<16x1x7x5x8xf32, #tpu.memory_space<vmem>>, vector<1x1x1x4x8xf32>
      %488 = vector.shape_cast %487 : vector<1x1x1x4x8xf32> to vector<1x4x8xf32>
      %489 = vector.broadcast %52 : vector<1x1x8xf32> to vector<1x4x8xf32>
      %490 = arith.mulf %488, %489 : vector<1x4x8xf32>
      %491 = arith.addf %477, %490 : vector<1x4x8xf32>
      %c1_i32_371 = arith.constant 1 : i32
      %492 = arith.addi %arg9, %c1_i32_371 : i32
      %c2_372 = arith.constant 2 : index
      %c0_373 = arith.constant 0 : index
      %493 = arith.index_cast %492 : i32 to index
      %c1_374 = arith.constant 1 : index
      %c0_375 = arith.constant 0 : index
      %494 = vector.load %arg2[%c2_372, %c0_373, %493, %c1_374, %c0_375] : memref<16x1x7x5x8xf32, #tpu.memory_space<vmem>>, vector<1x1x1x4x8xf32>
      %495 = vector.shape_cast %494 : vector<1x1x1x4x8xf32> to vector<1x4x8xf32>
      %496 = vector.broadcast %54 : vector<1x1x8xf32> to vector<1x4x8xf32>
      %497 = arith.mulf %495, %496 : vector<1x4x8xf32>
      %498 = arith.addf %484, %497 : vector<1x4x8xf32>
      %499 = arith.addf %498, %491 : vector<1x4x8xf32>
      %500 = vector.broadcast %2 : vector<1x1x8xf32> to vector<1x4x8xf32>
      %501 = arith.addf %499, %500 : vector<1x4x8xf32>
      %cst_376 = arith.constant 0.000000e+00 : f32
      %502 = vector.broadcast %cst_376 : f32 to vector<1x4x8xf32>
      %503 = arith.select %135, %501, %502 : vector<1x4x8xf32>
      %c1_377 = arith.constant 1 : index
      %504 = arith.index_cast %arg9 : i32 to index
      %c1_378 = arith.constant 1 : index
      %c0_379 = arith.constant 0 : index
      %505 = vector.load %arg8[%c1_377, %504, %c1_378, %c0_379] : memref<4x6x6x8xf32, #tpu.memory_space<vmem>>, vector<1x1x4x8xf32>
      %506 = vector.shape_cast %505 : vector<1x1x4x8xf32> to vector<1x4x8xf32>
      %507 = vector.shape_cast %503 : vector<1x4x8xf32> to vector<1x1x4x8xf32>
      tpu.vector_store %arg8[%c1_377, %504, %c1_378, %c0_379], %507 {strides = array<i32>} : memref<4x6x6x8xf32, #tpu.memory_space<vmem>>, vector<1x1x4x8xf32>,
      %cst_380 = arith.constant 0.000000e+00 : f32
      %508 = vector.broadcast %cst_380 : f32 to vector<1x4x8xf32>
      %cst_381 = arith.constant 0.000000e+00 : f32
      %509 = vector.broadcast %cst_381 : f32 to vector<1x4x8xf32>
      %c0_i32_382 = arith.constant 0 : i32
      %510 = arith.addi %arg9, %c0_i32_382 : i32
      %c8_383 = arith.constant 8 : index
      %c0_384 = arith.constant 0 : index
      %511 = arith.index_cast %510 : i32 to index
      %c0_385 = arith.constant 0 : index
      %c0_386 = arith.constant 0 : index
      %512 = vector.load %arg2[%c8_383, %c0_384, %511, %c0_385, %c0_386] : memref<16x1x7x5x8xf32, #tpu.memory_space<vmem>>, vector<1x1x1x4x8xf32>
      %513 = vector.shape_cast %512 : vector<1x1x1x4x8xf32> to vector<1x4x8xf32>
      %514 = vector.broadcast %6 : vector<1x1x8xf32> to vector<1x4x8xf32>
      %515 = arith.mulf %513, %514 : vector<1x4x8xf32>
      %516 = arith.addf %508, %515 : vector<1x4x8xf32>
      %c0_i32_387 = arith.constant 0 : i32
      %517 = arith.addi %arg9, %c0_i32_387 : i32
      %c9_388 = arith.constant 9 : index
      %c0_389 = arith.constant 0 : index
      %518 = arith.index_cast %517 : i32 to index
      %c0_390 = arith.constant 0 : index
      %c0_391 = arith.constant 0 : index
      %519 = vector.load %arg2[%c9_388, %c0_389, %518, %c0_390, %c0_391] : memref<16x1x7x5x8xf32, #tpu.memory_space<vmem>>, vector<1x1x1x4x8xf32>
      %520 = vector.shape_cast %519 : vector<1x1x1x4x8xf32> to vector<1x4x8xf32>
      %521 = vector.broadcast %8 : vector<1x1x8xf32> to vector<1x4x8xf32>
      %522 = arith.mulf %520, %521 : vector<1x4x8xf32>
      %523 = arith.addf %509, %522 : vector<1x4x8xf32>
      %c0_i32_392 = arith.constant 0 : i32
      %524 = arith.addi %arg9, %c0_i32_392 : i32
      %c10_393 = arith.constant 10 : index
      %c0_394 = arith.constant 0 : index
      %525 = arith.index_cast %524 : i32 to index
      %c0_395 = arith.constant 0 : index
      %c0_396 = arith.constant 0 : index
      %526 = vector.load %arg2[%c10_393, %c0_394, %525, %c0_395, %c0_396] : memref<16x1x7x5x8xf32, #tpu.memory_space<vmem>>, vector<1x1x1x4x8xf32>
      %527 = vector.shape_cast %526 : vector<1x1x1x4x8xf32> to vector<1x4x8xf32>
      %528 = vector.broadcast %10 : vector<1x1x8xf32> to vector<1x4x8xf32>
      %529 = arith.mulf %527, %528 : vector<1x4x8xf32>
      %530 = arith.addf %516, %529 : vector<1x4x8xf32>
      %c0_i32_397 = arith.constant 0 : i32
      %531 = arith.addi %arg9, %c0_i32_397 : i32
      %c11_398 = arith.constant 11 : index
      %c0_399 = arith.constant 0 : index
      %532 = arith.index_cast %531 : i32 to index
      %c0_400 = arith.constant 0 : index
      %c0_401 = arith.constant 0 : index
      %533 = vector.load %arg2[%c11_398, %c0_399, %532, %c0_400, %c0_401] : memref<16x1x7x5x8xf32, #tpu.memory_space<vmem>>, vector<1x1x1x4x8xf32>
      %534 = vector.shape_cast %533 : vector<1x1x1x4x8xf32> to vector<1x4x8xf32>
      %535 = vector.broadcast %12 : vector<1x1x8xf32> to vector<1x4x8xf32>
      %536 = arith.mulf %534, %535 : vector<1x4x8xf32>
      %537 = arith.addf %523, %536 : vector<1x4x8xf32>
      %c0_i32_402 = arith.constant 0 : i32
      %538 = arith.addi %arg9, %c0_i32_402 : i32
      %c8_403 = arith.constant 8 : index
      %c0_404 = arith.constant 0 : index
      %539 = arith.index_cast %538 : i32 to index
      %c1_405 = arith.constant 1 : index
      %c0_406 = arith.constant 0 : index
      %540 = vector.load %arg2[%c8_403, %c0_404, %539, %c1_405, %c0_406] : memref<16x1x7x5x8xf32, #tpu.memory_space<vmem>>, vector<1x1x1x4x8xf32>
      %541 = vector.shape_cast %540 : vector<1x1x1x4x8xf32> to vector<1x4x8xf32>
      %542 = vector.broadcast %14 : vector<1x1x8xf32> to vector<1x4x8xf32>
      %543 = arith.mulf %541, %542 : vector<1x4x8xf32>
      %544 = arith.addf %530, %543 : vector<1x4x8xf32>
      %c0_i32_407 = arith.constant 0 : i32
      %545 = arith.addi %arg9, %c0_i32_407 : i32
      %c12_408 = arith.constant 12 : index
      %c0_409 = arith.constant 0 : index
      %546 = arith.index_cast %545 : i32 to index
      %c0_410 = arith.constant 0 : index
      %c0_411 = arith.constant 0 : index
      %547 = vector.load %arg2[%c12_408, %c0_409, %546, %c0_410, %c0_411] : memref<16x1x7x5x8xf32, #tpu.memory_space<vmem>>, vector<1x1x1x4x8xf32>
      %548 = vector.shape_cast %547 : vector<1x1x1x4x8xf32> to vector<1x4x8xf32>
      %549 = vector.broadcast %16 : vector<1x1x8xf32> to vector<1x4x8xf32>
      %550 = arith.mulf %548, %549 : vector<1x4x8xf32>
      %551 = arith.addf %537, %550 : vector<1x4x8xf32>
      %c0_i32_412 = arith.constant 0 : i32
      %552 = arith.addi %arg9, %c0_i32_412 : i32
      %c13_413 = arith.constant 13 : index
      %c0_414 = arith.constant 0 : index
      %553 = arith.index_cast %552 : i32 to index
      %c0_415 = arith.constant 0 : index
      %c0_416 = arith.constant 0 : index
      %554 = vector.load %arg2[%c13_413, %c0_414, %553, %c0_415, %c0_416] : memref<16x1x7x5x8xf32, #tpu.memory_space<vmem>>, vector<1x1x1x4x8xf32>
      %555 = vector.shape_cast %554 : vector<1x1x1x4x8xf32> to vector<1x4x8xf32>
      %556 = vector.broadcast %18 : vector<1x1x8xf32> to vector<1x4x8xf32>
      %557 = arith.mulf %555, %556 : vector<1x4x8xf32>
      %558 = arith.addf %544, %557 : vector<1x4x8xf32>
      %c0_i32_417 = arith.constant 0 : i32
      %559 = arith.addi %arg9, %c0_i32_417 : i32
      %c14_418 = arith.constant 14 : index
      %c0_419 = arith.constant 0 : index
      %560 = arith.index_cast %559 : i32 to index
      %c0_420 = arith.constant 0 : index
      %c0_421 = arith.constant 0 : index
      %561 = vector.load %arg2[%c14_418, %c0_419, %560, %c0_420, %c0_421] : memref<16x1x7x5x8xf32, #tpu.memory_space<vmem>>, vector<1x1x1x4x8xf32>
      %562 = vector.shape_cast %561 : vector<1x1x1x4x8xf32> to vector<1x4x8xf32>
      %563 = vector.broadcast %20 : vector<1x1x8xf32> to vector<1x4x8xf32>
      %564 = arith.mulf %562, %563 : vector<1x4x8xf32>
      %565 = arith.addf %551, %564 : vector<1x4x8xf32>
      %c0_i32_422 = arith.constant 0 : i32
      %566 = arith.addi %arg9, %c0_i32_422 : i32
      %c15_423 = arith.constant 15 : index
      %c0_424 = arith.constant 0 : index
      %567 = arith.index_cast %566 : i32 to index
      %c0_425 = arith.constant 0 : index
      %c0_426 = arith.constant 0 : index
      %568 = vector.load %arg2[%c15_423, %c0_424, %567, %c0_425, %c0_426] : memref<16x1x7x5x8xf32, #tpu.memory_space<vmem>>, vector<1x1x1x4x8xf32>
      %569 = vector.shape_cast %568 : vector<1x1x1x4x8xf32> to vector<1x4x8xf32>
      %570 = vector.broadcast %22 : vector<1x1x8xf32> to vector<1x4x8xf32>
      %571 = arith.mulf %569, %570 : vector<1x4x8xf32>
      %572 = arith.addf %558, %571 : vector<1x4x8xf32>
      %c0_i32_427 = arith.constant 0 : i32
      %573 = arith.addi %arg9, %c0_i32_427 : i32
      %c12_428 = arith.constant 12 : index
      %c0_429 = arith.constant 0 : index
      %574 = arith.index_cast %573 : i32 to index
      %c1_430 = arith.constant 1 : index
      %c0_431 = arith.constant 0 : index
      %575 = vector.load %arg2[%c12_428, %c0_429, %574, %c1_430, %c0_431] : memref<16x1x7x5x8xf32, #tpu.memory_space<vmem>>, vector<1x1x1x4x8xf32>
      %576 = vector.shape_cast %575 : vector<1x1x1x4x8xf32> to vector<1x4x8xf32>
      %577 = vector.broadcast %24 : vector<1x1x8xf32> to vector<1x4x8xf32>
      %578 = arith.mulf %576, %577 : vector<1x4x8xf32>
      %579 = arith.addf %565, %578 : vector<1x4x8xf32>
      %c1_i32_432 = arith.constant 1 : i32
      %580 = arith.addi %arg9, %c1_i32_432 : i32
      %c0_433 = arith.constant 0 : index
      %c0_434 = arith.constant 0 : index
      %581 = arith.index_cast %580 : i32 to index
      %c0_435 = arith.constant 0 : index
      %c0_436 = arith.constant 0 : index
      %582 = vector.load %arg2[%c0_433, %c0_434, %581, %c0_435, %c0_436] : memref<16x1x7x5x8xf32, #tpu.memory_space<vmem>>, vector<1x1x1x4x8xf32>
      %583 = vector.shape_cast %582 : vector<1x1x1x4x8xf32> to vector<1x4x8xf32>
      %584 = vector.broadcast %26 : vector<1x1x8xf32> to vector<1x4x8xf32>
      %585 = arith.mulf %583, %584 : vector<1x4x8xf32>
      %586 = arith.addf %572, %585 : vector<1x4x8xf32>
      %c1_i32_437 = arith.constant 1 : i32
      %587 = arith.addi %arg9, %c1_i32_437 : i32
      %c1_438 = arith.constant 1 : index
      %c0_439 = arith.constant 0 : index
      %588 = arith.index_cast %587 : i32 to index
      %c0_440 = arith.constant 0 : index
      %c0_441 = arith.constant 0 : index
      %589 = vector.load %arg2[%c1_438, %c0_439, %588, %c0_440, %c0_441] : memref<16x1x7x5x8xf32, #tpu.memory_space<vmem>>, vector<1x1x1x4x8xf32>
      %590 = vector.shape_cast %589 : vector<1x1x1x4x8xf32> to vector<1x4x8xf32>
      %591 = vector.broadcast %28 : vector<1x1x8xf32> to vector<1x4x8xf32>
      %592 = arith.mulf %590, %591 : vector<1x4x8xf32>
      %593 = arith.addf %579, %592 : vector<1x4x8xf32>
      %c1_i32_442 = arith.constant 1 : i32
      %594 = arith.addi %arg9, %c1_i32_442 : i32
      %c2_443 = arith.constant 2 : index
      %c0_444 = arith.constant 0 : index
      %595 = arith.index_cast %594 : i32 to index
      %c0_445 = arith.constant 0 : index
      %c0_446 = arith.constant 0 : index
      %596 = vector.load %arg2[%c2_443, %c0_444, %595, %c0_445, %c0_446] : memref<16x1x7x5x8xf32, #tpu.memory_space<vmem>>, vector<1x1x1x4x8xf32>
      %597 = vector.shape_cast %596 : vector<1x1x1x4x8xf32> to vector<1x4x8xf32>
      %598 = vector.broadcast %30 : vector<1x1x8xf32> to vector<1x4x8xf32>
      %599 = arith.mulf %597, %598 : vector<1x4x8xf32>
      %600 = arith.addf %586, %599 : vector<1x4x8xf32>
      %c1_i32_447 = arith.constant 1 : i32
      %601 = arith.addi %arg9, %c1_i32_447 : i32
      %c3_448 = arith.constant 3 : index
      %c0_449 = arith.constant 0 : index
      %602 = arith.index_cast %601 : i32 to index
      %c0_450 = arith.constant 0 : index
      %c0_451 = arith.constant 0 : index
      %603 = vector.load %arg2[%c3_448, %c0_449, %602, %c0_450, %c0_451] : memref<16x1x7x5x8xf32, #tpu.memory_space<vmem>>, vector<1x1x1x4x8xf32>
      %604 = vector.shape_cast %603 : vector<1x1x1x4x8xf32> to vector<1x4x8xf32>
      %605 = vector.broadcast %32 : vector<1x1x8xf32> to vector<1x4x8xf32>
      %606 = arith.mulf %604, %605 : vector<1x4x8xf32>
      %607 = arith.addf %593, %606 : vector<1x4x8xf32>
      %c1_i32_452 = arith.constant 1 : i32
      %608 = arith.addi %arg9, %c1_i32_452 : i32
      %c0_453 = arith.constant 0 : index
      %c0_454 = arith.constant 0 : index
      %609 = arith.index_cast %608 : i32 to index
      %c1_455 = arith.constant 1 : index
      %c0_456 = arith.constant 0 : index
      %610 = vector.load %arg2[%c0_453, %c0_454, %609, %c1_455, %c0_456] : memref<16x1x7x5x8xf32, #tpu.memory_space<vmem>>, vector<1x1x1x4x8xf32>
      %611 = vector.shape_cast %610 : vector<1x1x1x4x8xf32> to vector<1x4x8xf32>
      %612 = vector.broadcast %34 : vector<1x1x8xf32> to vector<1x4x8xf32>
      %613 = arith.mulf %611, %612 : vector<1x4x8xf32>
      %614 = arith.addf %600, %613 : vector<1x4x8xf32>
      %c1_i32_457 = arith.constant 1 : i32
      %615 = arith.addi %arg9, %c1_i32_457 : i32
      %c4_458 = arith.constant 4 : index
      %c0_459 = arith.constant 0 : index
      %616 = arith.index_cast %615 : i32 to index
      %c0_460 = arith.constant 0 : index
      %c0_461 = arith.constant 0 : index
      %617 = vector.load %arg2[%c4_458, %c0_459, %616, %c0_460, %c0_461] : memref<16x1x7x5x8xf32, #tpu.memory_space<vmem>>, vector<1x1x1x4x8xf32>
      %618 = vector.shape_cast %617 : vector<1x1x1x4x8xf32> to vector<1x4x8xf32>
      %619 = vector.broadcast %36 : vector<1x1x8xf32> to vector<1x4x8xf32>
      %620 = arith.mulf %618, %619 : vector<1x4x8xf32>
      %621 = arith.addf %607, %620 : vector<1x4x8xf32>
      %c1_i32_462 = arith.constant 1 : i32
      %622 = arith.addi %arg9, %c1_i32_462 : i32
      %c5_463 = arith.constant 5 : index
      %c0_464 = arith.constant 0 : index
      %623 = arith.index_cast %622 : i32 to index
      %c0_465 = arith.constant 0 : index
      %c0_466 = arith.constant 0 : index
      %624 = vector.load %arg2[%c5_463, %c0_464, %623, %c0_465, %c0_466] : memref<16x1x7x5x8xf32, #tpu.memory_space<vmem>>, vector<1x1x1x4x8xf32>
      %625 = vector.shape_cast %624 : vector<1x1x1x4x8xf32> to vector<1x4x8xf32>
      %626 = vector.broadcast %38 : vector<1x1x8xf32> to vector<1x4x8xf32>
      %627 = arith.mulf %625, %626 : vector<1x4x8xf32>
      %628 = arith.addf %614, %627 : vector<1x4x8xf32>
      %c1_i32_467 = arith.constant 1 : i32
      %629 = arith.addi %arg9, %c1_i32_467 : i32
      %c6_468 = arith.constant 6 : index
      %c0_469 = arith.constant 0 : index
      %630 = arith.index_cast %629 : i32 to index
      %c0_470 = arith.constant 0 : index
      %c0_471 = arith.constant 0 : index
      %631 = vector.load %arg2[%c6_468, %c0_469, %630, %c0_470, %c0_471] : memref<16x1x7x5x8xf32, #tpu.memory_space<vmem>>, vector<1x1x1x4x8xf32>
      %632 = vector.shape_cast %631 : vector<1x1x1x4x8xf32> to vector<1x4x8xf32>
      %633 = vector.broadcast %40 : vector<1x1x8xf32> to vector<1x4x8xf32>
      %634 = arith.mulf %632, %633 : vector<1x4x8xf32>
      %635 = arith.addf %621, %634 : vector<1x4x8xf32>
      %c1_i32_472 = arith.constant 1 : i32
      %636 = arith.addi %arg9, %c1_i32_472 : i32
      %c7_473 = arith.constant 7 : index
      %c0_474 = arith.constant 0 : index
      %637 = arith.index_cast %636 : i32 to index
      %c0_475 = arith.constant 0 : index
      %c0_476 = arith.constant 0 : index
      %638 = vector.load %arg2[%c7_473, %c0_474, %637, %c0_475, %c0_476] : memref<16x1x7x5x8xf32, #tpu.memory_space<vmem>>, vector<1x1x1x4x8xf32>
      %639 = vector.shape_cast %638 : vector<1x1x1x4x8xf32> to vector<1x4x8xf32>
      %640 = vector.broadcast %42 : vector<1x1x8xf32> to vector<1x4x8xf32>
      %641 = arith.mulf %639, %640 : vector<1x4x8xf32>
      %642 = arith.addf %628, %641 : vector<1x4x8xf32>
      %c1_i32_477 = arith.constant 1 : i32
      %643 = arith.addi %arg9, %c1_i32_477 : i32
      %c4_478 = arith.constant 4 : index
      %c0_479 = arith.constant 0 : index
      %644 = arith.index_cast %643 : i32 to index
      %c1_480 = arith.constant 1 : index
      %c0_481 = arith.constant 0 : index
      %645 = vector.load %arg2[%c4_478, %c0_479, %644, %c1_480, %c0_481] : memref<16x1x7x5x8xf32, #tpu.memory_space<vmem>>, vector<1x1x1x4x8xf32>
      %646 = vector.shape_cast %645 : vector<1x1x1x4x8xf32> to vector<1x4x8xf32>
      %647 = vector.broadcast %44 : vector<1x1x8xf32> to vector<1x4x8xf32>
      %648 = arith.mulf %646, %647 : vector<1x4x8xf32>
      %649 = arith.addf %635, %648 : vector<1x4x8xf32>
      %c1_i32_482 = arith.constant 1 : i32
      %650 = arith.addi %arg9, %c1_i32_482 : i32
      %c8_483 = arith.constant 8 : index
      %c0_484 = arith.constant 0 : index
      %651 = arith.index_cast %650 : i32 to index
      %c0_485 = arith.constant 0 : index
      %c0_486 = arith.constant 0 : index
      %652 = vector.load %arg2[%c8_483, %c0_484, %651, %c0_485, %c0_486] : memref<16x1x7x5x8xf32, #tpu.memory_space<vmem>>, vector<1x1x1x4x8xf32>
      %653 = vector.shape_cast %652 : vector<1x1x1x4x8xf32> to vector<1x4x8xf32>
      %654 = vector.broadcast %46 : vector<1x1x8xf32> to vector<1x4x8xf32>
      %655 = arith.mulf %653, %654 : vector<1x4x8xf32>
      %656 = arith.addf %642, %655 : vector<1x4x8xf32>
      %c1_i32_487 = arith.constant 1 : i32
      %657 = arith.addi %arg9, %c1_i32_487 : i32
      %c9_488 = arith.constant 9 : index
      %c0_489 = arith.constant 0 : index
      %658 = arith.index_cast %657 : i32 to index
      %c0_490 = arith.constant 0 : index
      %c0_491 = arith.constant 0 : index
      %659 = vector.load %arg2[%c9_488, %c0_489, %658, %c0_490, %c0_491] : memref<16x1x7x5x8xf32, #tpu.memory_space<vmem>>, vector<1x1x1x4x8xf32>
      %660 = vector.shape_cast %659 : vector<1x1x1x4x8xf32> to vector<1x4x8xf32>
      %661 = vector.broadcast %48 : vector<1x1x8xf32> to vector<1x4x8xf32>
      %662 = arith.mulf %660, %661 : vector<1x4x8xf32>
      %663 = arith.addf %649, %662 : vector<1x4x8xf32>
      %c1_i32_492 = arith.constant 1 : i32
      %664 = arith.addi %arg9, %c1_i32_492 : i32
      %c10_493 = arith.constant 10 : index
      %c0_494 = arith.constant 0 : index
      %665 = arith.index_cast %664 : i32 to index
      %c0_495 = arith.constant 0 : index
      %c0_496 = arith.constant 0 : index
      %666 = vector.load %arg2[%c10_493, %c0_494, %665, %c0_495, %c0_496] : memref<16x1x7x5x8xf32, #tpu.memory_space<vmem>>, vector<1x1x1x4x8xf32>
      %667 = vector.shape_cast %666 : vector<1x1x1x4x8xf32> to vector<1x4x8xf32>
      %668 = vector.broadcast %50 : vector<1x1x8xf32> to vector<1x4x8xf32>
      %669 = arith.mulf %667, %668 : vector<1x4x8xf32>
      %670 = arith.addf %656, %669 : vector<1x4x8xf32>
      %c1_i32_497 = arith.constant 1 : i32
      %671 = arith.addi %arg9, %c1_i32_497 : i32
      %c11_498 = arith.constant 11 : index
      %c0_499 = arith.constant 0 : index
      %672 = arith.index_cast %671 : i32 to index
      %c0_500 = arith.constant 0 : index
      %c0_501 = arith.constant 0 : index
      %673 = vector.load %arg2[%c11_498, %c0_499, %672, %c0_500, %c0_501] : memref<16x1x7x5x8xf32, #tpu.memory_space<vmem>>, vector<1x1x1x4x8xf32>
      %674 = vector.shape_cast %673 : vector<1x1x1x4x8xf32> to vector<1x4x8xf32>
      %675 = vector.broadcast %52 : vector<1x1x8xf32> to vector<1x4x8xf32>
      %676 = arith.mulf %674, %675 : vector<1x4x8xf32>
      %677 = arith.addf %663, %676 : vector<1x4x8xf32>
      %c1_i32_502 = arith.constant 1 : i32
      %678 = arith.addi %arg9, %c1_i32_502 : i32
      %c8_503 = arith.constant 8 : index
      %c0_504 = arith.constant 0 : index
      %679 = arith.index_cast %678 : i32 to index
      %c1_505 = arith.constant 1 : index
      %c0_506 = arith.constant 0 : index
      %680 = vector.load %arg2[%c8_503, %c0_504, %679, %c1_505, %c0_506] : memref<16x1x7x5x8xf32, #tpu.memory_space<vmem>>, vector<1x1x1x4x8xf32>
      %681 = vector.shape_cast %680 : vector<1x1x1x4x8xf32> to vector<1x4x8xf32>
      %682 = vector.broadcast %54 : vector<1x1x8xf32> to vector<1x4x8xf32>
      %683 = arith.mulf %681, %682 : vector<1x4x8xf32>
      %684 = arith.addf %670, %683 : vector<1x4x8xf32>
      %685 = arith.addf %684, %677 : vector<1x4x8xf32>
      %686 = vector.broadcast %2 : vector<1x1x8xf32> to vector<1x4x8xf32>
      %687 = arith.addf %685, %686 : vector<1x4x8xf32>
      %cst_507 = arith.constant 0.000000e+00 : f32
      %688 = vector.broadcast %cst_507 : f32 to vector<1x4x8xf32>
      %689 = arith.select %135, %687, %688 : vector<1x4x8xf32>
      %c2_508 = arith.constant 2 : index
      %690 = arith.index_cast %arg9 : i32 to index
      %c1_509 = arith.constant 1 : index
      %c0_510 = arith.constant 0 : index
      %691 = vector.load %arg8[%c2_508, %690, %c1_509, %c0_510] : memref<4x6x6x8xf32, #tpu.memory_space<vmem>>, vector<1x1x4x8xf32>
      %692 = vector.shape_cast %691 : vector<1x1x4x8xf32> to vector<1x4x8xf32>
      %693 = vector.shape_cast %689 : vector<1x4x8xf32> to vector<1x1x4x8xf32>
      tpu.vector_store %arg8[%c2_508, %690, %c1_509, %c0_510], %693 {strides = array<i32>} : memref<4x6x6x8xf32, #tpu.memory_space<vmem>>, vector<1x1x4x8xf32>,
      %cst_511 = arith.constant 0.000000e+00 : f32
      %694 = vector.broadcast %cst_511 : f32 to vector<1x4x8xf32>
      %cst_512 = arith.constant 0.000000e+00 : f32
      %695 = vector.broadcast %cst_512 : f32 to vector<1x4x8xf32>
      %c0_i32_513 = arith.constant 0 : i32
      %696 = arith.addi %arg9, %c0_i32_513 : i32
      %c10_514 = arith.constant 10 : index
      %c0_515 = arith.constant 0 : index
      %697 = arith.index_cast %696 : i32 to index
      %c0_516 = arith.constant 0 : index
      %c0_517 = arith.constant 0 : index
      %698 = vector.load %arg2[%c10_514, %c0_515, %697, %c0_516, %c0_517] : memref<16x1x7x5x8xf32, #tpu.memory_space<vmem>>, vector<1x1x1x4x8xf32>
      %699 = vector.shape_cast %698 : vector<1x1x1x4x8xf32> to vector<1x4x8xf32>
      %700 = vector.broadcast %6 : vector<1x1x8xf32> to vector<1x4x8xf32>
      %701 = arith.mulf %699, %700 : vector<1x4x8xf32>
      %702 = arith.addf %694, %701 : vector<1x4x8xf32>
      %c0_i32_518 = arith.constant 0 : i32
      %703 = arith.addi %arg9, %c0_i32_518 : i32
      %c11_519 = arith.constant 11 : index
      %c0_520 = arith.constant 0 : index
      %704 = arith.index_cast %703 : i32 to index
      %c0_521 = arith.constant 0 : index
      %c0_522 = arith.constant 0 : index
      %705 = vector.load %arg2[%c11_519, %c0_520, %704, %c0_521, %c0_522] : memref<16x1x7x5x8xf32, #tpu.memory_space<vmem>>, vector<1x1x1x4x8xf32>
      %706 = vector.shape_cast %705 : vector<1x1x1x4x8xf32> to vector<1x4x8xf32>
      %707 = vector.broadcast %8 : vector<1x1x8xf32> to vector<1x4x8xf32>
      %708 = arith.mulf %706, %707 : vector<1x4x8xf32>
      %709 = arith.addf %695, %708 : vector<1x4x8xf32>
      %c0_i32_523 = arith.constant 0 : i32
      %710 = arith.addi %arg9, %c0_i32_523 : i32
      %c8_524 = arith.constant 8 : index
      %c0_525 = arith.constant 0 : index
      %711 = arith.index_cast %710 : i32 to index
      %c1_526 = arith.constant 1 : index
      %c0_527 = arith.constant 0 : index
      %712 = vector.load %arg2[%c8_524, %c0_525, %711, %c1_526, %c0_527] : memref<16x1x7x5x8xf32, #tpu.memory_space<vmem>>, vector<1x1x1x4x8xf32>
      %713 = vector.shape_cast %712 : vector<1x1x1x4x8xf32> to vector<1x4x8xf32>
      %714 = vector.broadcast %10 : vector<1x1x8xf32> to vector<1x4x8xf32>
      %715 = arith.mulf %713, %714 : vector<1x4x8xf32>
      %716 = arith.addf %702, %715 : vector<1x4x8xf32>
      %c0_i32_528 = arith.constant 0 : i32
      %717 = arith.addi %arg9, %c0_i32_528 : i32
      %c9_529 = arith.constant 9 : index
      %c0_530 = arith.constant 0 : index
      %718 = arith.index_cast %717 : i32 to index
      %c1_531 = arith.constant 1 : index
      %c0_532 = arith.constant 0 : index
      %719 = vector.load %arg2[%c9_529, %c0_530, %718, %c1_531, %c0_532] : memref<16x1x7x5x8xf32, #tpu.memory_space<vmem>>, vector<1x1x1x4x8xf32>
      %720 = vector.shape_cast %719 : vector<1x1x1x4x8xf32> to vector<1x4x8xf32>
      %721 = vector.broadcast %12 : vector<1x1x8xf32> to vector<1x4x8xf32>
      %722 = arith.mulf %720, %721 : vector<1x4x8xf32>
      %723 = arith.addf %709, %722 : vector<1x4x8xf32>
      %c0_i32_533 = arith.constant 0 : i32
      %724 = arith.addi %arg9, %c0_i32_533 : i32
      %c10_534 = arith.constant 10 : index
      %c0_535 = arith.constant 0 : index
      %725 = arith.index_cast %724 : i32 to index
      %c1_536 = arith.constant 1 : index
      %c0_537 = arith.constant 0 : index
      %726 = vector.load %arg2[%c10_534, %c0_535, %725, %c1_536, %c0_537] : memref<16x1x7x5x8xf32, #tpu.memory_space<vmem>>, vector<1x1x1x4x8xf32>
      %727 = vector.shape_cast %726 : vector<1x1x1x4x8xf32> to vector<1x4x8xf32>
      %728 = vector.broadcast %14 : vector<1x1x8xf32> to vector<1x4x8xf32>
      %729 = arith.mulf %727, %728 : vector<1x4x8xf32>
      %730 = arith.addf %716, %729 : vector<1x4x8xf32>
      %c0_i32_538 = arith.constant 0 : i32
      %731 = arith.addi %arg9, %c0_i32_538 : i32
      %c14_539 = arith.constant 14 : index
      %c0_540 = arith.constant 0 : index
      %732 = arith.index_cast %731 : i32 to index
      %c0_541 = arith.constant 0 : index
      %c0_542 = arith.constant 0 : index
      %733 = vector.load %arg2[%c14_539, %c0_540, %732, %c0_541, %c0_542] : memref<16x1x7x5x8xf32, #tpu.memory_space<vmem>>, vector<1x1x1x4x8xf32>
      %734 = vector.shape_cast %733 : vector<1x1x1x4x8xf32> to vector<1x4x8xf32>
      %735 = vector.broadcast %16 : vector<1x1x8xf32> to vector<1x4x8xf32>
      %736 = arith.mulf %734, %735 : vector<1x4x8xf32>
      %737 = arith.addf %723, %736 : vector<1x4x8xf32>
      %c0_i32_543 = arith.constant 0 : i32
      %738 = arith.addi %arg9, %c0_i32_543 : i32
      %c15_544 = arith.constant 15 : index
      %c0_545 = arith.constant 0 : index
      %739 = arith.index_cast %738 : i32 to index
      %c0_546 = arith.constant 0 : index
      %c0_547 = arith.constant 0 : index
      %740 = vector.load %arg2[%c15_544, %c0_545, %739, %c0_546, %c0_547] : memref<16x1x7x5x8xf32, #tpu.memory_space<vmem>>, vector<1x1x1x4x8xf32>
      %741 = vector.shape_cast %740 : vector<1x1x1x4x8xf32> to vector<1x4x8xf32>
      %742 = vector.broadcast %18 : vector<1x1x8xf32> to vector<1x4x8xf32>
      %743 = arith.mulf %741, %742 : vector<1x4x8xf32>
      %744 = arith.addf %730, %743 : vector<1x4x8xf32>
      %c0_i32_548 = arith.constant 0 : i32
      %745 = arith.addi %arg9, %c0_i32_548 : i32
      %c12_549 = arith.constant 12 : index
      %c0_550 = arith.constant 0 : index
      %746 = arith.index_cast %745 : i32 to index
      %c1_551 = arith.constant 1 : index
      %c0_552 = arith.constant 0 : index
      %747 = vector.load %arg2[%c12_549, %c0_550, %746, %c1_551, %c0_552] : memref<16x1x7x5x8xf32, #tpu.memory_space<vmem>>, vector<1x1x1x4x8xf32>
      %748 = vector.shape_cast %747 : vector<1x1x1x4x8xf32> to vector<1x4x8xf32>
      %749 = vector.broadcast %20 : vector<1x1x8xf32> to vector<1x4x8xf32>
      %750 = arith.mulf %748, %749 : vector<1x4x8xf32>
      %751 = arith.addf %737, %750 : vector<1x4x8xf32>
      %c0_i32_553 = arith.constant 0 : i32
      %752 = arith.addi %arg9, %c0_i32_553 : i32
      %c13_554 = arith.constant 13 : index
      %c0_555 = arith.constant 0 : index
      %753 = arith.index_cast %752 : i32 to index
      %c1_556 = arith.constant 1 : index
      %c0_557 = arith.constant 0 : index
      %754 = vector.load %arg2[%c13_554, %c0_555, %753, %c1_556, %c0_557] : memref<16x1x7x5x8xf32, #tpu.memory_space<vmem>>, vector<1x1x1x4x8xf32>
      %755 = vector.shape_cast %754 : vector<1x1x1x4x8xf32> to vector<1x4x8xf32>
      %756 = vector.broadcast %22 : vector<1x1x8xf32> to vector<1x4x8xf32>
      %757 = arith.mulf %755, %756 : vector<1x4x8xf32>
      %758 = arith.addf %744, %757 : vector<1x4x8xf32>
      %c0_i32_558 = arith.constant 0 : i32
      %759 = arith.addi %arg9, %c0_i32_558 : i32
      %c14_559 = arith.constant 14 : index
      %c0_560 = arith.constant 0 : index
      %760 = arith.index_cast %759 : i32 to index
      %c1_561 = arith.constant 1 : index
      %c0_562 = arith.constant 0 : index
      %761 = vector.load %arg2[%c14_559, %c0_560, %760, %c1_561, %c0_562] : memref<16x1x7x5x8xf32, #tpu.memory_space<vmem>>, vector<1x1x1x4x8xf32>
      %762 = vector.shape_cast %761 : vector<1x1x1x4x8xf32> to vector<1x4x8xf32>
      %763 = vector.broadcast %24 : vector<1x1x8xf32> to vector<1x4x8xf32>
      %764 = arith.mulf %762, %763 : vector<1x4x8xf32>
      %765 = arith.addf %751, %764 : vector<1x4x8xf32>
      %c1_i32_563 = arith.constant 1 : i32
      %766 = arith.addi %arg9, %c1_i32_563 : i32
      %c2_564 = arith.constant 2 : index
      %c0_565 = arith.constant 0 : index
      %767 = arith.index_cast %766 : i32 to index
      %c0_566 = arith.constant 0 : index
      %c0_567 = arith.constant 0 : index
      %768 = vector.load %arg2[%c2_564, %c0_565, %767, %c0_566, %c0_567] : memref<16x1x7x5x8xf32, #tpu.memory_space<vmem>>, vector<1x1x1x4x8xf32>
      %769 = vector.shape_cast %768 : vector<1x1x1x4x8xf32> to vector<1x4x8xf32>
      %770 = vector.broadcast %26 : vector<1x1x8xf32> to vector<1x4x8xf32>
      %771 = arith.mulf %769, %770 : vector<1x4x8xf32>
      %772 = arith.addf %758, %771 : vector<1x4x8xf32>
      %c1_i32_568 = arith.constant 1 : i32
      %773 = arith.addi %arg9, %c1_i32_568 : i32
      %c3_569 = arith.constant 3 : index
      %c0_570 = arith.constant 0 : index
      %774 = arith.index_cast %773 : i32 to index
      %c0_571 = arith.constant 0 : index
      %c0_572 = arith.constant 0 : index
      %775 = vector.load %arg2[%c3_569, %c0_570, %774, %c0_571, %c0_572] : memref<16x1x7x5x8xf32, #tpu.memory_space<vmem>>, vector<1x1x1x4x8xf32>
      %776 = vector.shape_cast %775 : vector<1x1x1x4x8xf32> to vector<1x4x8xf32>
      %777 = vector.broadcast %28 : vector<1x1x8xf32> to vector<1x4x8xf32>
      %778 = arith.mulf %776, %777 : vector<1x4x8xf32>
      %779 = arith.addf %765, %778 : vector<1x4x8xf32>
      %c1_i32_573 = arith.constant 1 : i32
      %780 = arith.addi %arg9, %c1_i32_573 : i32
      %c0_574 = arith.constant 0 : index
      %c0_575 = arith.constant 0 : index
      %781 = arith.index_cast %780 : i32 to index
      %c1_576 = arith.constant 1 : index
      %c0_577 = arith.constant 0 : index
      %782 = vector.load %arg2[%c0_574, %c0_575, %781, %c1_576, %c0_577] : memref<16x1x7x5x8xf32, #tpu.memory_space<vmem>>, vector<1x1x1x4x8xf32>
      %783 = vector.shape_cast %782 : vector<1x1x1x4x8xf32> to vector<1x4x8xf32>
      %784 = vector.broadcast %30 : vector<1x1x8xf32> to vector<1x4x8xf32>
      %785 = arith.mulf %783, %784 : vector<1x4x8xf32>
      %786 = arith.addf %772, %785 : vector<1x4x8xf32>
      %c1_i32_578 = arith.constant 1 : i32
      %787 = arith.addi %arg9, %c1_i32_578 : i32
      %c1_579 = arith.constant 1 : index
      %c0_580 = arith.constant 0 : index
      %788 = arith.index_cast %787 : i32 to index
      %c1_581 = arith.constant 1 : index
      %c0_582 = arith.constant 0 : index
      %789 = vector.load %arg2[%c1_579, %c0_580, %788, %c1_581, %c0_582] : memref<16x1x7x5x8xf32, #tpu.memory_space<vmem>>, vector<1x1x1x4x8xf32>
      %790 = vector.shape_cast %789 : vector<1x1x1x4x8xf32> to vector<1x4x8xf32>
      %791 = vector.broadcast %32 : vector<1x1x8xf32> to vector<1x4x8xf32>
      %792 = arith.mulf %790, %791 : vector<1x4x8xf32>
      %793 = arith.addf %779, %792 : vector<1x4x8xf32>
      %c1_i32_583 = arith.constant 1 : i32
      %794 = arith.addi %arg9, %c1_i32_583 : i32
      %c2_584 = arith.constant 2 : index
      %c0_585 = arith.constant 0 : index
      %795 = arith.index_cast %794 : i32 to index
      %c1_586 = arith.constant 1 : index
      %c0_587 = arith.constant 0 : index
      %796 = vector.load %arg2[%c2_584, %c0_585, %795, %c1_586, %c0_587] : memref<16x1x7x5x8xf32, #tpu.memory_space<vmem>>, vector<1x1x1x4x8xf32>
      %797 = vector.shape_cast %796 : vector<1x1x1x4x8xf32> to vector<1x4x8xf32>
      %798 = vector.broadcast %34 : vector<1x1x8xf32> to vector<1x4x8xf32>
      %799 = arith.mulf %797, %798 : vector<1x4x8xf32>
      %800 = arith.addf %786, %799 : vector<1x4x8xf32>
      %c1_i32_588 = arith.constant 1 : i32
      %801 = arith.addi %arg9, %c1_i32_588 : i32
      %c6_589 = arith.constant 6 : index
      %c0_590 = arith.constant 0 : index
      %802 = arith.index_cast %801 : i32 to index
      %c0_591 = arith.constant 0 : index
      %c0_592 = arith.constant 0 : index
      %803 = vector.load %arg2[%c6_589, %c0_590, %802, %c0_591, %c0_592] : memref<16x1x7x5x8xf32, #tpu.memory_space<vmem>>, vector<1x1x1x4x8xf32>
      %804 = vector.shape_cast %803 : vector<1x1x1x4x8xf32> to vector<1x4x8xf32>
      %805 = vector.broadcast %36 : vector<1x1x8xf32> to vector<1x4x8xf32>
      %806 = arith.mulf %804, %805 : vector<1x4x8xf32>
      %807 = arith.addf %793, %806 : vector<1x4x8xf32>
      %c1_i32_593 = arith.constant 1 : i32
      %808 = arith.addi %arg9, %c1_i32_593 : i32
      %c7_594 = arith.constant 7 : index
      %c0_595 = arith.constant 0 : index
      %809 = arith.index_cast %808 : i32 to index
      %c0_596 = arith.constant 0 : index
      %c0_597 = arith.constant 0 : index
      %810 = vector.load %arg2[%c7_594, %c0_595, %809, %c0_596, %c0_597] : memref<16x1x7x5x8xf32, #tpu.memory_space<vmem>>, vector<1x1x1x4x8xf32>
      %811 = vector.shape_cast %810 : vector<1x1x1x4x8xf32> to vector<1x4x8xf32>
      %812 = vector.broadcast %38 : vector<1x1x8xf32> to vector<1x4x8xf32>
      %813 = arith.mulf %811, %812 : vector<1x4x8xf32>
      %814 = arith.addf %800, %813 : vector<1x4x8xf32>
      %c1_i32_598 = arith.constant 1 : i32
      %815 = arith.addi %arg9, %c1_i32_598 : i32
      %c4_599 = arith.constant 4 : index
      %c0_600 = arith.constant 0 : index
      %816 = arith.index_cast %815 : i32 to index
      %c1_601 = arith.constant 1 : index
      %c0_602 = arith.constant 0 : index
      %817 = vector.load %arg2[%c4_599, %c0_600, %816, %c1_601, %c0_602] : memref<16x1x7x5x8xf32, #tpu.memory_space<vmem>>, vector<1x1x1x4x8xf32>
      %818 = vector.shape_cast %817 : vector<1x1x1x4x8xf32> to vector<1x4x8xf32>
      %819 = vector.broadcast %40 : vector<1x1x8xf32> to vector<1x4x8xf32>
      %820 = arith.mulf %818, %819 : vector<1x4x8xf32>
      %821 = arith.addf %807, %820 : vector<1x4x8xf32>
      %c1_i32_603 = arith.constant 1 : i32
      %822 = arith.addi %arg9, %c1_i32_603 : i32
      %c5_604 = arith.constant 5 : index
      %c0_605 = arith.constant 0 : index
      %823 = arith.index_cast %822 : i32 to index
      %c1_606 = arith.constant 1 : index
      %c0_607 = arith.constant 0 : index
      %824 = vector.load %arg2[%c5_604, %c0_605, %823, %c1_606, %c0_607] : memref<16x1x7x5x8xf32, #tpu.memory_space<vmem>>, vector<1x1x1x4x8xf32>
      %825 = vector.shape_cast %824 : vector<1x1x1x4x8xf32> to vector<1x4x8xf32>
      %826 = vector.broadcast %42 : vector<1x1x8xf32> to vector<1x4x8xf32>
      %827 = arith.mulf %825, %826 : vector<1x4x8xf32>
      %828 = arith.addf %814, %827 : vector<1x4x8xf32>
      %c1_i32_608 = arith.constant 1 : i32
      %829 = arith.addi %arg9, %c1_i32_608 : i32
      %c6_609 = arith.constant 6 : index
      %c0_610 = arith.constant 0 : index
      %830 = arith.index_cast %829 : i32 to index
      %c1_611 = arith.constant 1 : index
      %c0_612 = arith.constant 0 : index
      %831 = vector.load %arg2[%c6_609, %c0_610, %830, %c1_611, %c0_612] : memref<16x1x7x5x8xf32, #tpu.memory_space<vmem>>, vector<1x1x1x4x8xf32>
      %832 = vector.shape_cast %831 : vector<1x1x1x4x8xf32> to vector<1x4x8xf32>
      %833 = vector.broadcast %44 : vector<1x1x8xf32> to vector<1x4x8xf32>
      %834 = arith.mulf %832, %833 : vector<1x4x8xf32>
      %835 = arith.addf %821, %834 : vector<1x4x8xf32>
      %c1_i32_613 = arith.constant 1 : i32
      %836 = arith.addi %arg9, %c1_i32_613 : i32
      %c10_614 = arith.constant 10 : index
      %c0_615 = arith.constant 0 : index
      %837 = arith.index_cast %836 : i32 to index
      %c0_616 = arith.constant 0 : index
      %c0_617 = arith.constant 0 : index
      %838 = vector.load %arg2[%c10_614, %c0_615, %837, %c0_616, %c0_617] : memref<16x1x7x5x8xf32, #tpu.memory_space<vmem>>, vector<1x1x1x4x8xf32>
      %839 = vector.shape_cast %838 : vector<1x1x1x4x8xf32> to vector<1x4x8xf32>
      %840 = vector.broadcast %46 : vector<1x1x8xf32> to vector<1x4x8xf32>
      %841 = arith.mulf %839, %840 : vector<1x4x8xf32>
      %842 = arith.addf %828, %841 : vector<1x4x8xf32>
      %c1_i32_618 = arith.constant 1 : i32
      %843 = arith.addi %arg9, %c1_i32_618 : i32
      %c11_619 = arith.constant 11 : index
      %c0_620 = arith.constant 0 : index
      %844 = arith.index_cast %843 : i32 to index
      %c0_621 = arith.constant 0 : index
      %c0_622 = arith.constant 0 : index
      %845 = vector.load %arg2[%c11_619, %c0_620, %844, %c0_621, %c0_622] : memref<16x1x7x5x8xf32, #tpu.memory_space<vmem>>, vector<1x1x1x4x8xf32>
      %846 = vector.shape_cast %845 : vector<1x1x1x4x8xf32> to vector<1x4x8xf32>
      %847 = vector.broadcast %48 : vector<1x1x8xf32> to vector<1x4x8xf32>
      %848 = arith.mulf %846, %847 : vector<1x4x8xf32>
      %849 = arith.addf %835, %848 : vector<1x4x8xf32>
      %c1_i32_623 = arith.constant 1 : i32
      %850 = arith.addi %arg9, %c1_i32_623 : i32
      %c8_624 = arith.constant 8 : index
      %c0_625 = arith.constant 0 : index
      %851 = arith.index_cast %850 : i32 to index
      %c1_626 = arith.constant 1 : index
      %c0_627 = arith.constant 0 : index
      %852 = vector.load %arg2[%c8_624, %c0_625, %851, %c1_626, %c0_627] : memref<16x1x7x5x8xf32, #tpu.memory_space<vmem>>, vector<1x1x1x4x8xf32>
      %853 = vector.shape_cast %852 : vector<1x1x1x4x8xf32> to vector<1x4x8xf32>
      %854 = vector.broadcast %50 : vector<1x1x8xf32> to vector<1x4x8xf32>
      %855 = arith.mulf %853, %854 : vector<1x4x8xf32>
      %856 = arith.addf %842, %855 : vector<1x4x8xf32>
      %c1_i32_628 = arith.constant 1 : i32
      %857 = arith.addi %arg9, %c1_i32_628 : i32
      %c9_629 = arith.constant 9 : index
      %c0_630 = arith.constant 0 : index
      %858 = arith.index_cast %857 : i32 to index
      %c1_631 = arith.constant 1 : index
      %c0_632 = arith.constant 0 : index
      %859 = vector.load %arg2[%c9_629, %c0_630, %858, %c1_631, %c0_632] : memref<16x1x7x5x8xf32, #tpu.memory_space<vmem>>, vector<1x1x1x4x8xf32>
      %860 = vector.shape_cast %859 : vector<1x1x1x4x8xf32> to vector<1x4x8xf32>
      %861 = vector.broadcast %52 : vector<1x1x8xf32> to vector<1x4x8xf32>
      %862 = arith.mulf %860, %861 : vector<1x4x8xf32>
      %863 = arith.addf %849, %862 : vector<1x4x8xf32>
      %c1_i32_633 = arith.constant 1 : i32
      %864 = arith.addi %arg9, %c1_i32_633 : i32
      %c10_634 = arith.constant 10 : index
      %c0_635 = arith.constant 0 : index
      %865 = arith.index_cast %864 : i32 to index
      %c1_636 = arith.constant 1 : index
      %c0_637 = arith.constant 0 : index
      %866 = vector.load %arg2[%c10_634, %c0_635, %865, %c1_636, %c0_637] : memref<16x1x7x5x8xf32, #tpu.memory_space<vmem>>, vector<1x1x1x4x8xf32>
      %867 = vector.shape_cast %866 : vector<1x1x1x4x8xf32> to vector<1x4x8xf32>
      %868 = vector.broadcast %54 : vector<1x1x8xf32> to vector<1x4x8xf32>
      %869 = arith.mulf %867, %868 : vector<1x4x8xf32>
      %870 = arith.addf %856, %869 : vector<1x4x8xf32>
      %871 = arith.addf %870, %863 : vector<1x4x8xf32>
      %872 = vector.broadcast %2 : vector<1x1x8xf32> to vector<1x4x8xf32>
      %873 = arith.addf %871, %872 : vector<1x4x8xf32>
      %cst_638 = arith.constant 0.000000e+00 : f32
      %874 = vector.broadcast %cst_638 : f32 to vector<1x4x8xf32>
      %875 = arith.select %135, %873, %874 : vector<1x4x8xf32>
      %c3_639 = arith.constant 3 : index
      %876 = arith.index_cast %arg9 : i32 to index
      %c1_640 = arith.constant 1 : index
      %c0_641 = arith.constant 0 : index
      %877 = vector.load %arg8[%c3_639, %876, %c1_640, %c0_641] : memref<4x6x6x8xf32, #tpu.memory_space<vmem>>, vector<1x1x4x8xf32>
      %878 = vector.shape_cast %877 : vector<1x1x4x8xf32> to vector<1x4x8xf32>
      %879 = vector.shape_cast %875 : vector<1x4x8xf32> to vector<1x1x4x8xf32>
      tpu.vector_store %arg8[%c3_639, %876, %c1_640, %c0_641], %879 {strides = array<i32>} : memref<4x6x6x8xf32, #tpu.memory_space<vmem>>, vector<1x1x4x8xf32>,
    }
    %c6_i32_111 = arith.constant 6 : i32
    %c0_i32_112 = arith.constant 0 : i32
    %c4_i32_113 = arith.constant 4 : i32
    %131 = arith.addi %c0_i32_112, %c4_i32_113 : i32
    %c1_i32_114 = arith.constant 1 : i32
    scf.for %arg9 = %c0_i32_112 to %131 step %c1_i32_114  : i32 {
      %cst_116 = arith.constant 0.000000e+00 : f32
      %132 = vector.broadcast %cst_116 : f32 to vector<1x4x8xf32>
      %cst_117 = arith.constant 0.000000e+00 : f32
      %133 = vector.broadcast %cst_117 : f32 to vector<1x4x8xf32>
      %c0_i32_118 = arith.constant 0 : i32
      %134 = arith.addi %arg9, %c0_i32_118 : i32
      %c1_119 = arith.constant 1 : index
      %135 = arith.index_cast %134 : i32 to index
      %c0_120 = arith.constant 0 : index
      %c0_121 = arith.constant 0 : index
      %136 = vector.load %arg8[%c1_119, %135, %c0_120, %c0_121] : memref<4x6x6x8xf32, #tpu.memory_space<vmem>>, vector<1x1x4x8xf32>
      %137 = vector.shape_cast %136 : vector<1x1x4x8xf32> to vector<1x4x8xf32>
      %138 = vector.broadcast %56 : vector<1x1x8xf32> to vector<1x4x8xf32>
      %139 = arith.mulf %137, %138 : vector<1x4x8xf32>
      %140 = arith.addf %132, %139 : vector<1x4x8xf32>
      %c0_i32_122 = arith.constant 0 : i32
      %141 = arith.addi %arg9, %c0_i32_122 : i32
      %c0_123 = arith.constant 0 : index
      %142 = arith.index_cast %141 : i32 to index
      %c1_124 = arith.constant 1 : index
      %c0_125 = arith.constant 0 : index
      %143 = vector.load %arg8[%c0_123, %142, %c1_124, %c0_125] : memref<4x6x6x8xf32, #tpu.memory_space<vmem>>, vector<1x1x4x8xf32>
      %144 = vector.shape_cast %143 : vector<1x1x4x8xf32> to vector<1x4x8xf32>
      %145 = vector.broadcast %58 : vector<1x1x8xf32> to vector<1x4x8xf32>
      %146 = arith.mulf %144, %145 : vector<1x4x8xf32>
      %147 = arith.addf %133, %146 : vector<1x4x8xf32>
      %c0_i32_126 = arith.constant 0 : i32
      %148 = arith.addi %arg9, %c0_i32_126 : i32
      %c1_127 = arith.constant 1 : index
      %149 = arith.index_cast %148 : i32 to index
      %c1_128 = arith.constant 1 : index
      %c0_129 = arith.constant 0 : index
      %150 = vector.load %arg8[%c1_127, %149, %c1_128, %c0_129] : memref<4x6x6x8xf32, #tpu.memory_space<vmem>>, vector<1x1x4x8xf32>
      %151 = vector.shape_cast %150 : vector<1x1x4x8xf32> to vector<1x4x8xf32>
      %152 = vector.broadcast %60 : vector<1x1x8xf32> to vector<1x4x8xf32>
      %153 = arith.mulf %151, %152 : vector<1x4x8xf32>
      %154 = arith.addf %140, %153 : vector<1x4x8xf32>
      %c0_i32_130 = arith.constant 0 : i32
      %155 = arith.addi %arg9, %c0_i32_130 : i32
      %c0_131 = arith.constant 0 : index
      %156 = arith.index_cast %155 : i32 to index
      %c2_132 = arith.constant 2 : index
      %c0_133 = arith.constant 0 : index
      %157 = vector.load %arg8[%c0_131, %156, %c2_132, %c0_133] : memref<4x6x6x8xf32, #tpu.memory_space<vmem>>, vector<1x1x4x8xf32>
      %158 = vector.shape_cast %157 : vector<1x1x4x8xf32> to vector<1x4x8xf32>
      %159 = vector.broadcast %62 : vector<1x1x8xf32> to vector<1x4x8xf32>
      %160 = arith.mulf %158, %159 : vector<1x4x8xf32>
      %161 = arith.addf %147, %160 : vector<1x4x8xf32>
      %c0_i32_134 = arith.constant 0 : i32
      %162 = arith.addi %arg9, %c0_i32_134 : i32
      %c1_135 = arith.constant 1 : index
      %163 = arith.index_cast %162 : i32 to index
      %c2_136 = arith.constant 2 : index
      %c0_137 = arith.constant 0 : index
      %164 = vector.load %arg8[%c1_135, %163, %c2_136, %c0_137] : memref<4x6x6x8xf32, #tpu.memory_space<vmem>>, vector<1x1x4x8xf32>
      %165 = vector.shape_cast %164 : vector<1x1x4x8xf32> to vector<1x4x8xf32>
      %166 = vector.broadcast %64 : vector<1x1x8xf32> to vector<1x4x8xf32>
      %167 = arith.mulf %165, %166 : vector<1x4x8xf32>
      %168 = arith.addf %154, %167 : vector<1x4x8xf32>
      %c0_i32_138 = arith.constant 0 : i32
      %169 = arith.addi %arg9, %c0_i32_138 : i32
      %c3_139 = arith.constant 3 : index
      %170 = arith.index_cast %169 : i32 to index
      %c0_140 = arith.constant 0 : index
      %c0_141 = arith.constant 0 : index
      %171 = vector.load %arg8[%c3_139, %170, %c0_140, %c0_141] : memref<4x6x6x8xf32, #tpu.memory_space<vmem>>, vector<1x1x4x8xf32>
      %172 = vector.shape_cast %171 : vector<1x1x4x8xf32> to vector<1x4x8xf32>
      %173 = vector.broadcast %66 : vector<1x1x8xf32> to vector<1x4x8xf32>
      %174 = arith.mulf %172, %173 : vector<1x4x8xf32>
      %175 = arith.addf %161, %174 : vector<1x4x8xf32>
      %c0_i32_142 = arith.constant 0 : i32
      %176 = arith.addi %arg9, %c0_i32_142 : i32
      %c2_143 = arith.constant 2 : index
      %177 = arith.index_cast %176 : i32 to index
      %c1_144 = arith.constant 1 : index
      %c0_145 = arith.constant 0 : index
      %178 = vector.load %arg8[%c2_143, %177, %c1_144, %c0_145] : memref<4x6x6x8xf32, #tpu.memory_space<vmem>>, vector<1x1x4x8xf32>
      %179 = vector.shape_cast %178 : vector<1x1x4x8xf32> to vector<1x4x8xf32>
      %180 = vector.broadcast %68 : vector<1x1x8xf32> to vector<1x4x8xf32>
      %181 = arith.mulf %179, %180 : vector<1x4x8xf32>
      %182 = arith.addf %168, %181 : vector<1x4x8xf32>
      %c0_i32_146 = arith.constant 0 : i32
      %183 = arith.addi %arg9, %c0_i32_146 : i32
      %c3_147 = arith.constant 3 : index
      %184 = arith.index_cast %183 : i32 to index
      %c1_148 = arith.constant 1 : index
      %c0_149 = arith.constant 0 : index
      %185 = vector.load %arg8[%c3_147, %184, %c1_148, %c0_149] : memref<4x6x6x8xf32, #tpu.memory_space<vmem>>, vector<1x1x4x8xf32>
      %186 = vector.shape_cast %185 : vector<1x1x4x8xf32> to vector<1x4x8xf32>
      %187 = vector.broadcast %70 : vector<1x1x8xf32> to vector<1x4x8xf32>
      %188 = arith.mulf %186, %187 : vector<1x4x8xf32>
      %189 = arith.addf %175, %188 : vector<1x4x8xf32>
      %c0_i32_150 = arith.constant 0 : i32
      %190 = arith.addi %arg9, %c0_i32_150 : i32
      %c2_151 = arith.constant 2 : index
      %191 = arith.index_cast %190 : i32 to index
      %c2_152 = arith.constant 2 : index
      %c0_153 = arith.constant 0 : index
      %192 = vector.load %arg8[%c2_151, %191, %c2_152, %c0_153] : memref<4x6x6x8xf32, #tpu.memory_space<vmem>>, vector<1x1x4x8xf32>
      %193 = vector.shape_cast %192 : vector<1x1x4x8xf32> to vector<1x4x8xf32>
      %194 = vector.broadcast %72 : vector<1x1x8xf32> to vector<1x4x8xf32>
      %195 = arith.mulf %193, %194 : vector<1x4x8xf32>
      %196 = arith.addf %182, %195 : vector<1x4x8xf32>
      %c0_i32_154 = arith.constant 0 : i32
      %197 = arith.addi %arg9, %c0_i32_154 : i32
      %c3_155 = arith.constant 3 : index
      %198 = arith.index_cast %197 : i32 to index
      %c2_156 = arith.constant 2 : index
      %c0_157 = arith.constant 0 : index
      %199 = vector.load %arg8[%c3_155, %198, %c2_156, %c0_157] : memref<4x6x6x8xf32, #tpu.memory_space<vmem>>, vector<1x1x4x8xf32>
      %200 = vector.shape_cast %199 : vector<1x1x4x8xf32> to vector<1x4x8xf32>
      %201 = vector.broadcast %74 : vector<1x1x8xf32> to vector<1x4x8xf32>
      %202 = arith.mulf %200, %201 : vector<1x4x8xf32>
      %203 = arith.addf %189, %202 : vector<1x4x8xf32>
      %c1_i32_158 = arith.constant 1 : i32
      %204 = arith.addi %arg9, %c1_i32_158 : i32
      %c1_159 = arith.constant 1 : index
      %205 = arith.index_cast %204 : i32 to index
      %c0_160 = arith.constant 0 : index
      %c0_161 = arith.constant 0 : index
      %206 = vector.load %arg8[%c1_159, %205, %c0_160, %c0_161] : memref<4x6x6x8xf32, #tpu.memory_space<vmem>>, vector<1x1x4x8xf32>
      %207 = vector.shape_cast %206 : vector<1x1x4x8xf32> to vector<1x4x8xf32>
      %208 = vector.broadcast %76 : vector<1x1x8xf32> to vector<1x4x8xf32>
      %209 = arith.mulf %207, %208 : vector<1x4x8xf32>
      %210 = arith.addf %196, %209 : vector<1x4x8xf32>
      %c1_i32_162 = arith.constant 1 : i32
      %211 = arith.addi %arg9, %c1_i32_162 : i32
      %c0_163 = arith.constant 0 : index
      %212 = arith.index_cast %211 : i32 to index
      %c1_164 = arith.constant 1 : index
      %c0_165 = arith.constant 0 : index
      %213 = vector.load %arg8[%c0_163, %212, %c1_164, %c0_165] : memref<4x6x6x8xf32, #tpu.memory_space<vmem>>, vector<1x1x4x8xf32>
      %214 = vector.shape_cast %213 : vector<1x1x4x8xf32> to vector<1x4x8xf32>
      %215 = vector.broadcast %78 : vector<1x1x8xf32> to vector<1x4x8xf32>
      %216 = arith.mulf %214, %215 : vector<1x4x8xf32>
      %217 = arith.addf %203, %216 : vector<1x4x8xf32>
      %c1_i32_166 = arith.constant 1 : i32
      %218 = arith.addi %arg9, %c1_i32_166 : i32
      %c1_167 = arith.constant 1 : index
      %219 = arith.index_cast %218 : i32 to index
      %c1_168 = arith.constant 1 : index
      %c0_169 = arith.constant 0 : index
      %220 = vector.load %arg8[%c1_167, %219, %c1_168, %c0_169] : memref<4x6x6x8xf32, #tpu.memory_space<vmem>>, vector<1x1x4x8xf32>
      %221 = vector.shape_cast %220 : vector<1x1x4x8xf32> to vector<1x4x8xf32>
      %222 = vector.broadcast %80 : vector<1x1x8xf32> to vector<1x4x8xf32>
      %223 = arith.mulf %221, %222 : vector<1x4x8xf32>
      %224 = arith.addf %210, %223 : vector<1x4x8xf32>
      %c1_i32_170 = arith.constant 1 : i32
      %225 = arith.addi %arg9, %c1_i32_170 : i32
      %c0_171 = arith.constant 0 : index
      %226 = arith.index_cast %225 : i32 to index
      %c2_172 = arith.constant 2 : index
      %c0_173 = arith.constant 0 : index
      %227 = vector.load %arg8[%c0_171, %226, %c2_172, %c0_173] : memref<4x6x6x8xf32, #tpu.memory_space<vmem>>, vector<1x1x4x8xf32>
      %228 = vector.shape_cast %227 : vector<1x1x4x8xf32> to vector<1x4x8xf32>
      %229 = vector.broadcast %82 : vector<1x1x8xf32> to vector<1x4x8xf32>
      %230 = arith.mulf %228, %229 : vector<1x4x8xf32>
      %231 = arith.addf %217, %230 : vector<1x4x8xf32>
      %c1_i32_174 = arith.constant 1 : i32
      %232 = arith.addi %arg9, %c1_i32_174 : i32
      %c1_175 = arith.constant 1 : index
      %233 = arith.index_cast %232 : i32 to index
      %c2_176 = arith.constant 2 : index
      %c0_177 = arith.constant 0 : index
      %234 = vector.load %arg8[%c1_175, %233, %c2_176, %c0_177] : memref<4x6x6x8xf32, #tpu.memory_space<vmem>>, vector<1x1x4x8xf32>
      %235 = vector.shape_cast %234 : vector<1x1x4x8xf32> to vector<1x4x8xf32>
      %236 = vector.broadcast %84 : vector<1x1x8xf32> to vector<1x4x8xf32>
      %237 = arith.mulf %235, %236 : vector<1x4x8xf32>
      %238 = arith.addf %224, %237 : vector<1x4x8xf32>
      %c1_i32_178 = arith.constant 1 : i32
      %239 = arith.addi %arg9, %c1_i32_178 : i32
      %c3_179 = arith.constant 3 : index
      %240 = arith.index_cast %239 : i32 to index
      %c0_180 = arith.constant 0 : index
      %c0_181 = arith.constant 0 : index
      %241 = vector.load %arg8[%c3_179, %240, %c0_180, %c0_181] : memref<4x6x6x8xf32, #tpu.memory_space<vmem>>, vector<1x1x4x8xf32>
      %242 = vector.shape_cast %241 : vector<1x1x4x8xf32> to vector<1x4x8xf32>
      %243 = vector.broadcast %86 : vector<1x1x8xf32> to vector<1x4x8xf32>
      %244 = arith.mulf %242, %243 : vector<1x4x8xf32>
      %245 = arith.addf %231, %244 : vector<1x4x8xf32>
      %c1_i32_182 = arith.constant 1 : i32
      %246 = arith.addi %arg9, %c1_i32_182 : i32
      %c2_183 = arith.constant 2 : index
      %247 = arith.index_cast %246 : i32 to index
      %c1_184 = arith.constant 1 : index
      %c0_185 = arith.constant 0 : index
      %248 = vector.load %arg8[%c2_183, %247, %c1_184, %c0_185] : memref<4x6x6x8xf32, #tpu.memory_space<vmem>>, vector<1x1x4x8xf32>
      %249 = vector.shape_cast %248 : vector<1x1x4x8xf32> to vector<1x4x8xf32>
      %250 = vector.broadcast %88 : vector<1x1x8xf32> to vector<1x4x8xf32>
      %251 = arith.mulf %249, %250 : vector<1x4x8xf32>
      %252 = arith.addf %238, %251 : vector<1x4x8xf32>
      %c1_i32_186 = arith.constant 1 : i32
      %253 = arith.addi %arg9, %c1_i32_186 : i32
      %c3_187 = arith.constant 3 : index
      %254 = arith.index_cast %253 : i32 to index
      %c1_188 = arith.constant 1 : index
      %c0_189 = arith.constant 0 : index
      %255 = vector.load %arg8[%c3_187, %254, %c1_188, %c0_189] : memref<4x6x6x8xf32, #tpu.memory_space<vmem>>, vector<1x1x4x8xf32>
      %256 = vector.shape_cast %255 : vector<1x1x4x8xf32> to vector<1x4x8xf32>
      %257 = vector.broadcast %90 : vector<1x1x8xf32> to vector<1x4x8xf32>
      %258 = arith.mulf %256, %257 : vector<1x4x8xf32>
      %259 = arith.addf %245, %258 : vector<1x4x8xf32>
      %c1_i32_190 = arith.constant 1 : i32
      %260 = arith.addi %arg9, %c1_i32_190 : i32
      %c2_191 = arith.constant 2 : index
      %261 = arith.index_cast %260 : i32 to index
      %c2_192 = arith.constant 2 : index
      %c0_193 = arith.constant 0 : index
      %262 = vector.load %arg8[%c2_191, %261, %c2_192, %c0_193] : memref<4x6x6x8xf32, #tpu.memory_space<vmem>>, vector<1x1x4x8xf32>
      %263 = vector.shape_cast %262 : vector<1x1x4x8xf32> to vector<1x4x8xf32>
      %264 = vector.broadcast %92 : vector<1x1x8xf32> to vector<1x4x8xf32>
      %265 = arith.mulf %263, %264 : vector<1x4x8xf32>
      %266 = arith.addf %252, %265 : vector<1x4x8xf32>
      %c1_i32_194 = arith.constant 1 : i32
      %267 = arith.addi %arg9, %c1_i32_194 : i32
      %c3_195 = arith.constant 3 : index
      %268 = arith.index_cast %267 : i32 to index
      %c2_196 = arith.constant 2 : index
      %c0_197 = arith.constant 0 : index
      %269 = vector.load %arg8[%c3_195, %268, %c2_196, %c0_197] : memref<4x6x6x8xf32, #tpu.memory_space<vmem>>, vector<1x1x4x8xf32>
      %270 = vector.shape_cast %269 : vector<1x1x4x8xf32> to vector<1x4x8xf32>
      %271 = vector.broadcast %94 : vector<1x1x8xf32> to vector<1x4x8xf32>
      %272 = arith.mulf %270, %271 : vector<1x4x8xf32>
      %273 = arith.addf %259, %272 : vector<1x4x8xf32>
      %c2_i32 = arith.constant 2 : i32
      %274 = arith.addi %arg9, %c2_i32 : i32
      %c1_198 = arith.constant 1 : index
      %275 = arith.index_cast %274 : i32 to index
      %c0_199 = arith.constant 0 : index
      %c0_200 = arith.constant 0 : index
      %276 = vector.load %arg8[%c1_198, %275, %c0_199, %c0_200] : memref<4x6x6x8xf32, #tpu.memory_space<vmem>>, vector<1x1x4x8xf32>
      %277 = vector.shape_cast %276 : vector<1x1x4x8xf32> to vector<1x4x8xf32>
      %278 = vector.broadcast %96 : vector<1x1x8xf32> to vector<1x4x8xf32>
      %279 = arith.mulf %277, %278 : vector<1x4x8xf32>
      %280 = arith.addf %266, %279 : vector<1x4x8xf32>
      %c2_i32_201 = arith.constant 2 : i32
      %281 = arith.addi %arg9, %c2_i32_201 : i32
      %c0_202 = arith.constant 0 : index
      %282 = arith.index_cast %281 : i32 to index
      %c1_203 = arith.constant 1 : index
      %c0_204 = arith.constant 0 : index
      %283 = vector.load %arg8[%c0_202, %282, %c1_203, %c0_204] : memref<4x6x6x8xf32, #tpu.memory_space<vmem>>, vector<1x1x4x8xf32>
      %284 = vector.shape_cast %283 : vector<1x1x4x8xf32> to vector<1x4x8xf32>
      %285 = vector.broadcast %98 : vector<1x1x8xf32> to vector<1x4x8xf32>
      %286 = arith.mulf %284, %285 : vector<1x4x8xf32>
      %287 = arith.addf %273, %286 : vector<1x4x8xf32>
      %c2_i32_205 = arith.constant 2 : i32
      %288 = arith.addi %arg9, %c2_i32_205 : i32
      %c1_206 = arith.constant 1 : index
      %289 = arith.index_cast %288 : i32 to index
      %c1_207 = arith.constant 1 : index
      %c0_208 = arith.constant 0 : index
      %290 = vector.load %arg8[%c1_206, %289, %c1_207, %c0_208] : memref<4x6x6x8xf32, #tpu.memory_space<vmem>>, vector<1x1x4x8xf32>
      %291 = vector.shape_cast %290 : vector<1x1x4x8xf32> to vector<1x4x8xf32>
      %292 = vector.broadcast %100 : vector<1x1x8xf32> to vector<1x4x8xf32>
      %293 = arith.mulf %291, %292 : vector<1x4x8xf32>
      %294 = arith.addf %280, %293 : vector<1x4x8xf32>
      %c2_i32_209 = arith.constant 2 : i32
      %295 = arith.addi %arg9, %c2_i32_209 : i32
      %c0_210 = arith.constant 0 : index
      %296 = arith.index_cast %295 : i32 to index
      %c2_211 = arith.constant 2 : index
      %c0_212 = arith.constant 0 : index
      %297 = vector.load %arg8[%c0_210, %296, %c2_211, %c0_212] : memref<4x6x6x8xf32, #tpu.memory_space<vmem>>, vector<1x1x4x8xf32>
      %298 = vector.shape_cast %297 : vector<1x1x4x8xf32> to vector<1x4x8xf32>
      %299 = vector.broadcast %102 : vector<1x1x8xf32> to vector<1x4x8xf32>
      %300 = arith.mulf %298, %299 : vector<1x4x8xf32>
      %301 = arith.addf %287, %300 : vector<1x4x8xf32>
      %c2_i32_213 = arith.constant 2 : i32
      %302 = arith.addi %arg9, %c2_i32_213 : i32
      %c1_214 = arith.constant 1 : index
      %303 = arith.index_cast %302 : i32 to index
      %c2_215 = arith.constant 2 : index
      %c0_216 = arith.constant 0 : index
      %304 = vector.load %arg8[%c1_214, %303, %c2_215, %c0_216] : memref<4x6x6x8xf32, #tpu.memory_space<vmem>>, vector<1x1x4x8xf32>
      %305 = vector.shape_cast %304 : vector<1x1x4x8xf32> to vector<1x4x8xf32>
      %306 = vector.broadcast %104 : vector<1x1x8xf32> to vector<1x4x8xf32>
      %307 = arith.mulf %305, %306 : vector<1x4x8xf32>
      %308 = arith.addf %294, %307 : vector<1x4x8xf32>
      %309 = arith.addf %308, %301 : vector<1x4x8xf32>
      %310 = vector.broadcast %4 : vector<1x1x8xf32> to vector<1x4x8xf32>
      %311 = arith.addf %309, %310 : vector<1x4x8xf32>
      %312 = arith.index_cast %arg9 : i32 to index
      %c0_217 = arith.constant 0 : index
      %c0_218 = arith.constant 0 : index
      %313 = vector.load %arg7[%312, %c0_217, %c0_218] : memref<4x4x8xf32, #tpu.memory_space<vmem>>, vector<1x4x8xf32>
      tpu.vector_store %arg7[%312, %c0_217, %c0_218], %311 {strides = array<i32>} : memref<4x4x8xf32, #tpu.memory_space<vmem>>, vector<1x4x8xf32>,
    }
    %c4_i32_115 = arith.constant 4 : i32
    return
  }
  func.func @transform_0(%arg0: i32, %arg1: i32) -> (i32, i32, i32, i32, i32) {
    %c0_i32 = arith.constant 0 : i32
    %c0_i32_0 = arith.constant 0 : i32
    %c0_i32_1 = arith.constant 0 : i32
    %c0_i32_2 = arith.constant 0 : i32
    return %c0_i32, %arg0, %c0_i32_0, %c0_i32_1, %arg1 : i32, i32, i32, i32, i32
  }
  func.func @transform_1(%arg0: i32, %arg1: i32) -> (i32, i32) {
    %c0_i32 = arith.constant 0 : i32
    %c0_i32_0 = arith.constant 0 : i32
    return %c0_i32, %arg1 : i32, i32
  }
  func.func @transform_2(%arg0: i32, %arg1: i32) -> (i32, i32) {
    %c0_i32 = arith.constant 0 : i32
    %c0_i32_0 = arith.constant 0 : i32
    return %c0_i32, %arg1 : i32, i32
  }
  func.func @transform_3(%arg0: i32, %arg1: i32) -> (i32, i32) {
    %c0_i32 = arith.constant 0 : i32
    %c0_i32_0 = arith.constant 0 : i32
    return %c0_i32, %arg1 : i32, i32
  }
  func.func @transform_4(%arg0: i32, %arg1: i32) -> (i32, i32) {
    %c0_i32 = arith.constant 0 : i32
    %c0_i32_0 = arith.constant 0 : i32
    return %c0_i32, %arg1 : i32, i32
  }
  func.func @transform_5(%arg0: i32, %arg1: i32) -> (i32, i32, i32) {
    %c0_i32 = arith.constant 0 : i32
    %c0_i32_0 = arith.constant 0 : i32
    return %arg0, %c0_i32, %arg1 : i32, i32, i32
  }
}

</mosaic_0001>

<bundles_post_ra>
// kernel: tile.25
= control target key start
LH: loop header
LB: loop body
LE: loop exit
PB: predicated region body
PF: predicated region fallthrough
CT: control target
= control target key end

     0   :  { %s22_s0 = inlined_call_operand.vmem [shape: f32[4], index: 0, kind: input, shape index: {}]   ;;  %s23_s1 = inlined_call_operand.vmem [shape: f32[2,4], index: 1, kind: output, shape index: {}]  }
   0x1   :  { %v4_v0 = vld [vmem:[%s22_s0] ss:$0 sm:$0xff] }
   0x2   :  { %5 = vst [vmem:[%s23_s1] sm:$0x3] %v4_v0 }

// kernel: tile.26
= control target key start
LH: loop header
LB: loop body
LE: loop exit
PB: predicated region body
PF: predicated region fallthrough
CT: control target
= control target key end

     0   :  { %vm7_vm0 = vcmask 31744   ;;  %vm13_vm1 = vcmask 64544   ;;  %s39_s0 = inlined_call_operand.vmem [shape: f32[2,4], index: 0, kind: input, shape index: {}]   ;;  %s40_s1 = inlined_call_operand.vmem [shape: f32[1,8], index: 1, kind: output, shape index: {}]  }
   0x1   :  { %v4_v0 = vld [vmem:[%s39_s0] sm:$0x3]  ;;  %s22_s0 = smov 4  }
   0x2   :  { %5 = vst [vmem:[#allocation1] sm:$0x3] %v4_v0 }
   0x9   :  { %v10_v1 = vld [vmem:[#allocation1 + $0x1] sm:$0x1]   ;;  %v6_v2 = vld [vmem:[#allocation1] sm:$0x1]  }
   0xa   :  { %11 = vrot.lane.b32.xlu0 %v10_v1, %s22_s0  ;;  %8 = vst.msk [vmem:[#allocation0] sm:$0x1] %vm7_vm0, %v6_v2  }
  0x7c   :  { %v12_v3 = vpop.permute.xlu0 %11  }
  0x7d   :  { %14 = vst.msk [vmem:[#allocation0] sm:$0x1] %vm13_vm1, %v12_v3  }
  0x84   :  { %v18_v4 = vld [vmem:[#allocation0] sm:$0x1] }
  0x85   :  { %20 = vst [vmem:[%s40_s1] sm:$0x1] %v18_v4 }

// kernel: downsamp_4_2_forward.1
= control target key start
LH: loop header
LB: loop body
LE: loop exit
PB: predicated region body
PF: predicated region fallthrough
CT: control target
= control target key end

     0   :  { %vm73_vm0 = vcmask 57344   ;;  %v1231_v3 = vmov 0.0   ;;  %s1570_s12 = smov 0   ;;  %s1922_s0 = inlined_call_operand.vmem [shape: f32[16,1,7,5,8], index: 0, kind: input, shape index: {}]   ;;  %s1923_s1 = inlined_call_operand.vmem [shape: f32[25,8], index: 1, kind: input, shape index: {}]   ;;  %s1924_s2 = inlined_call_operand.vmem [shape: f32[1,8], index: 2, kind: input, shape index: {}]   ;;  %s1925_s4 = inlined_call_operand.vmem [shape: f32[1,8], index: 4, kind: input, shape index: {}]   ;;  %s1926_s5 = inlined_call_operand.vmem [shape: f32[4,4,8], index: 5, kind: output, shape index: {}]   ;;  %s1927_s3 = inlined_call_operand.vmem [shape: f32[25,8], index: 3, kind: input, shape index: {}]  }
   0x1   :  { %v1265_v0 = vld [vmem:[%s1924_s2] ss:$0 sm:$0xff]  ;;  %74 = vst.msk [vmem:[#allocation2] sm:$0x1] %vm73_vm0, %v1231_v3  ;;  %75 = vst.msk [vmem:[#allocation2 + $0x8] sm:$0x1] %vm73_vm0, %v1231_v3 }
   0x2   :  { %v1270_v1 = vld [vmem:[%s1925_s4] ss:$0 sm:$0xff]  ;;  %76 = vst.msk [vmem:[#allocation2 + $0x10] sm:$0x1] %vm73_vm0, %v1231_v3  ;;  %77 = vst.msk [vmem:[#allocation2 + $0x18] sm:$0x1] %vm73_vm0, %v1231_v3 }
   0x3   :  { %1929 = vst [vmem:[#allocation3_spill] sm:$0xff] %v1270_v1  ;;  %v1275_v2 = vld [vmem:[%s1923_s1] ss:$0 sm:$0xff]  ;;  %78 = vst.msk [vmem:[#allocation2 + $0x20] sm:$0x1] %vm73_vm0, %v1231_v3 }
   0x4   :  { %79 = vst.msk [vmem:[#allocation2 + $0x28] sm:$0x1] %vm73_vm0, %v1231_v3  ;;  %80 = vst.msk [vmem:[#allocation2 + $0x5] sm:$0x1] %vm73_vm0, %v1231_v3  ;;  %v1328_v4 = vld [vmem:[%s1923_s1 + $0x1] ss:$0 sm:$0xff] }
   0x5   :  { %81 = vst.msk [vmem:[#allocation2 + $0xd] sm:$0x1] %vm73_vm0, %v1231_v3  ;;  %82 = vst.msk [vmem:[#allocation2 + $0x15] sm:$0x1] %vm73_vm0, %v1231_v3  ;;  %v1333_v5 = vld [vmem:[%s1923_s1 + $0x2] ss:$0 sm:$0xff] }
   0x6   :  { %83 = vst.msk [vmem:[#allocation2 + $0x1d] sm:$0x1] %vm73_vm0, %v1231_v3  ;;  %84 = vst.msk [vmem:[#allocation2 + $0x25] sm:$0x1] %vm73_vm0, %v1231_v3  ;;  %v1338_v6 = vld [vmem:[%s1923_s1 + $0x3] ss:$0 sm:$0xff] }
   0x7   :  { %85 = vst.msk [vmem:[#allocation2 + $0x2d] sm:$0x1] %vm73_vm0, %v1231_v3  ;;  %87 = vst.msk [vmem:[#allocation2 + $0x30] sm:$0x1] %vm73_vm0, %v1231_v3  ;;  %v1343_v7 = vld [vmem:[%s1923_s1 + $0x4] ss:$0 sm:$0xff] }
   0x8   :  { %88 = vst.msk [vmem:[#allocation2 + $0x38] sm:$0x1] %vm73_vm0, %v1231_v3  ;;  %89 = vst.msk [vmem:[#allocation2 + $0x40] sm:$0x1] %vm73_vm0, %v1231_v3  ;;  %v1348_v8 = vld [vmem:[%s1923_s1 + $0x5] ss:$0 sm:$0xff] }
   0x9   :  { %90 = vst.msk [vmem:[#allocation2 + $0x48] sm:$0x1] %vm73_vm0, %v1231_v3  ;;  %91 = vst.msk [vmem:[#allocation2 + $0x50] sm:$0x1] %vm73_vm0, %v1231_v3  ;;  %v1353_v9 = vld [vmem:[%s1923_s1 + $0x6] ss:$0 sm:$0xff] }
   0xa   :  { %92 = vst.msk [vmem:[#allocation2 + $0x58] sm:$0x1] %vm73_vm0, %v1231_v3  ;;  %93 = vst.msk [vmem:[#allocation2 + $0x35] sm:$0x1] %vm73_vm0, %v1231_v3  ;;  %v1358_v10 = vld [vmem:[%s1923_s1 + $0x7] ss:$0 sm:$0xff] }
   0xb   :  { %94 = vst.msk [vmem:[#allocation2 + $0x3d] sm:$0x1] %vm73_vm0, %v1231_v3  ;;  %95 = vst.msk [vmem:[#allocation2 + $0x45] sm:$0x1] %vm73_vm0, %v1231_v3  ;;  %v1363_v11 = vld [vmem:[%s1923_s1 + $0x8] ss:$0 sm:$0xff] }
   0xc   :  { %96 = vst.msk [vmem:[#allocation2 + $0x4d] sm:$0x1] %vm73_vm0, %v1231_v3  ;;  %97 = vst.msk [vmem:[#allocation2 + $0x55] sm:$0x1] %vm73_vm0, %v1231_v3  ;;  %v1368_v12 = vld [vmem:[%s1923_s1 + $0x9] ss:$0 sm:$0xff] }
   0xd   :  { %98 = vst.msk [vmem:[#allocation2 + $0x5d] sm:$0x1] %vm73_vm0, %v1231_v3  ;;  %100 = vst.msk [vmem:[#allocation2 + $0x60] sm:$0x1] %vm73_vm0, %v1231_v3  ;;  %v1373_v13 = vld [vmem:[%s1923_s1 + $0xa] ss:$0 sm:$0xff] }
   0xe   :  { %101 = vst.msk [vmem:[#allocation2 + $0x68] sm:$0x1] %vm73_vm0, %v1231_v3  ;;  %102 = vst.msk [vmem:[#allocation2 + $0x70] sm:$0x1] %vm73_vm0, %v1231_v3  ;;  %v1378_v14 = vld [vmem:[%s1923_s1 + $0xb] ss:$0 sm:$0xff] }
   0xf   :  { %103 = vst.msk [vmem:[#allocation2 + $0x78] sm:$0x1] %vm73_vm0, %v1231_v3  ;;  %104 = vst.msk [vmem:[#allocation2 + $0x80] sm:$0x1] %vm73_vm0, %v1231_v3  ;;  %v1383_v15 = vld [vmem:[%s1923_s1 + $0xc] ss:$0 sm:$0xff] }
  0x10   :  { %105 = vst.msk [vmem:[#allocation2 + $0x88] sm:$0x1] %vm73_vm0, %v1231_v3  ;;  %106 = vst.msk [vmem:[#allocation2 + $0x65] sm:$0x1] %vm73_vm0, %v1231_v3  ;;  %v1388_v16 = vld [vmem:[%s1923_s1 + $0xd] ss:$0 sm:$0xff] }
  0x11   :  { %107 = vst.msk [vmem:[#allocation2 + $0x6d] sm:$0x1] %vm73_vm0, %v1231_v3  ;;  %108 = vst.msk [vmem:[#allocation2 + $0x75] sm:$0x1] %vm73_vm0, %v1231_v3  ;;  %v1393_v17 = vld [vmem:[%s1923_s1 + $0xe] ss:$0 sm:$0xff] }
  0x12   :  { %109 = vst.msk [vmem:[#allocation2 + $0x7d] sm:$0x1] %vm73_vm0, %v1231_v3  ;;  %110 = vst.msk [vmem:[#allocation2 + $0x85] sm:$0x1] %vm73_vm0, %v1231_v3  ;;  %v1398_v18 = vld [vmem:[%s1923_s1 + $0xf] ss:$0 sm:$0xff] }
  0x13   :  { %111 = vst.msk [vmem:[#allocation2 + $0x8d] sm:$0x1] %vm73_vm0, %v1231_v3  ;;  %113 = vst.msk [vmem:[#allocation2 + $0x90] sm:$0x1] %vm73_vm0, %v1231_v3  ;;  %v1403_v19 = vld [vmem:[%s1923_s1 + $0x10] ss:$0 sm:$0xff] }
  0x14   :  { %114 = vst.msk [vmem:[#allocation2 + $0x98] sm:$0x1] %vm73_vm0, %v1231_v3  ;;  %115 = vst.msk [vmem:[#allocation2 + $0xa0] sm:$0x1] %vm73_vm0, %v1231_v3  ;;  %v1408_v20 = vld [vmem:[%s1923_s1 + $0x11] ss:$0 sm:$0xff] }
  0x15   :  { %116 = vst.msk [vmem:[#allocation2 + $0xa8] sm:$0x1] %vm73_vm0, %v1231_v3  ;;  %117 = vst.msk [vmem:[#allocation2 + $0xb0] sm:$0x1] %vm73_vm0, %v1231_v3  ;;  %v1413_v21 = vld [vmem:[%s1923_s1 + $0x12] ss:$0 sm:$0xff] }
  0x16   :  { %118 = vst.msk [vmem:[#allocation2 + $0xb8] sm:$0x1] %vm73_vm0, %v1231_v3  ;;  %119 = vst.msk [vmem:[#allocation2 + $0x95] sm:$0x1] %vm73_vm0, %v1231_v3  ;;  %v1418_v22 = vld [vmem:[%s1923_s1 + $0x13] ss:$0 sm:$0xff] }
  0x17   :  { %120 = vst.msk [vmem:[#allocation2 + $0x9d] sm:$0x1] %vm73_vm0, %v1231_v3  ;;  %121 = vst.msk [vmem:[#allocation2 + $0xa5] sm:$0x1] %vm73_vm0, %v1231_v3  ;;  %v1423_v23 = vld [vmem:[%s1923_s1 + $0x14] ss:$0 sm:$0xff] }
  0x18   :  { %122 = vst.msk [vmem:[#allocation2 + $0xad] sm:$0x1] %vm73_vm0, %v1231_v3  ;;  %123 = vst.msk [vmem:[#allocation2 + $0xb5] sm:$0x1] %vm73_vm0, %v1231_v3  ;;  %v1428_v24 = vld [vmem:[%s1923_s1 + $0x15] ss:$0 sm:$0xff] }
  0x19   :  { %124 = vst.msk [vmem:[#allocation2 + $0xbd] sm:$0x1] %vm73_vm0, %v1231_v3  ;;  %v1433_v25 = vld [vmem:[%s1923_s1 + $0x16] ss:$0 sm:$0xff]  ;;  %v1438_v26 = vld [vmem:[%s1923_s1 + $0x17] ss:$0 sm:$0xff] }
  0x1a   :  { %v1443_v27 = vld [vmem:[%s1923_s1 + $0x18] ss:$0 sm:$0xff]  ;;  %v1448_v28 = vld [vmem:[%s1927_s3] ss:$0 sm:$0xff]  ;;  %v1453_v29 = vld [vmem:[%s1927_s3 + $0x1] ss:$0 sm:$0xff] }
  0x1b   :  { %1930 = vst [vmem:[#allocation4_spill] sm:$0xff] %v1443_v27  ;;  %1931 = vst [vmem:[#allocation5_spill] sm:$0xff] %v1448_v28  ;;  %v1458_v30 = vld [vmem:[%s1927_s3 + $0x2] ss:$0 sm:$0xff]  ;;  %v1463_v31 = vld [vmem:[%s1927_s3 + $0x3] ss:$0 sm:$0xff] }
  0x1c   :  { %1932 = vst [vmem:[#allocation6_spill] sm:$0xff] %v1453_v29  ;;  %1933 = vst [vmem:[#allocation7_spill] sm:$0xff] %v1458_v30  ;;  %v1468_v32 = vld [vmem:[%s1927_s3 + $0x4] ss:$0 sm:$0xff]  ;;  %v1473_v33 = vld [vmem:[%s1927_s3 + $0x5] ss:$0 sm:$0xff] }
  0x1d   :  { %1934 = vst [vmem:[#allocation8_spill] sm:$0xff] %v1463_v31  ;;  %1935 = vst [vmem:[#allocation9_spill] sm:$0xff] %v1468_v32  ;;  %v1478_v34 = vld [vmem:[%s1927_s3 + $0x6] ss:$0 sm:$0xff]  ;;  %v1483_v35 = vld [vmem:[%s1927_s3 + $0x7] ss:$0 sm:$0xff] }
  0x1e   :  { %1936 = vst [vmem:[#allocation10_spill] sm:$0xff] %v1473_v33  ;;  %1937 = vst [vmem:[#allocation11_spill] sm:$0xff] %v1478_v34  ;;  %v1488_v36 = vld [vmem:[%s1927_s3 + $0x8] ss:$0 sm:$0xff]  ;;  %v1493_v37 = vld [vmem:[%s1927_s3 + $0x9] ss:$0 sm:$0xff] }
  0x1f   :  { %1938 = vst [vmem:[#allocation12_spill] sm:$0xff] %v1483_v35  ;;  %1939 = vst [vmem:[#allocation13_spill] sm:$0xff] %v1488_v36  ;;  %v1498_v38 = vld [vmem:[%s1927_s3 + $0xa] ss:$0 sm:$0xff]  ;;  %v1503_v39 = vld [vmem:[%s1927_s3 + $0xb] ss:$0 sm:$0xff] }
  0x20   :  { %1940 = vst [vmem:[#allocation14_spill] sm:$0xff] %v1493_v37  ;;  %1941 = vst [vmem:[#allocation15_spill] sm:$0xff] %v1498_v38  ;;  %v1508_v40 = vld [vmem:[%s1927_s3 + $0xc] ss:$0 sm:$0xff]  ;;  %v1513_v41 = vld [vmem:[%s1927_s3 + $0xd] ss:$0 sm:$0xff] }
  0x21   :  { %1942 = vst [vmem:[#allocation16_spill] sm:$0xff] %v1503_v39  ;;  %1943 = vst [vmem:[#allocation17_spill] sm:$0xff] %v1508_v40  ;;  %v1518_v42 = vld [vmem:[%s1927_s3 + $0xe] ss:$0 sm:$0xff]  ;;  %v1523_v43 = vld [vmem:[%s1927_s3 + $0xf] ss:$0 sm:$0xff] }
  0x22   :  { %1944 = vst [vmem:[#allocation18_spill] sm:$0xff] %v1513_v41  ;;  %1945 = vst [vmem:[#allocation19_spill] sm:$0xff] %v1518_v42  ;;  %v1528_v44 = vld [vmem:[%s1927_s3 + $0x10] ss:$0 sm:$0xff]  ;;  %v1533_v45 = vld [vmem:[%s1927_s3 + $0x11] ss:$0 sm:$0xff] }
  0x23   :  { %1946 = vst [vmem:[#allocation20_spill] sm:$0xff] %v1523_v43  ;;  %1947 = vst [vmem:[#allocation21_spill] sm:$0xff] %v1528_v44  ;;  %v1538_v46 = vld [vmem:[%s1927_s3 + $0x12] ss:$0 sm:$0xff]  ;;  %v1543_v47 = vld [vmem:[%s1927_s3 + $0x13] ss:$0 sm:$0xff] }
  0x24   :  { %1948 = vst [vmem:[#allocation22_spill] sm:$0xff] %v1533_v45  ;;  %1949 = vst [vmem:[#allocation23_spill] sm:$0xff] %v1538_v46  ;;  %v1548_v48 = vld [vmem:[%s1927_s3 + $0x14] ss:$0 sm:$0xff]  ;;  %v1553_v49 = vld [vmem:[%s1927_s3 + $0x15] ss:$0 sm:$0xff] }
  0x25   :  { %1950 = vst [vmem:[#allocation24_spill] sm:$0xff] %v1543_v47  ;;  %1951 = vst [vmem:[#allocation25_spill] sm:$0xff] %v1548_v48  ;;  %v1558_v50 = vld [vmem:[%s1927_s3 + $0x16] ss:$0 sm:$0xff]  ;;  %v1563_v51 = vld [vmem:[%s1927_s3 + $0x17] ss:$0 sm:$0xff] }
  0x26   :  { %1952 = vst [vmem:[#allocation26_spill] sm:$0xff] %v1553_v49  ;;  %1953 = vst [vmem:[#allocation27_spill] sm:$0xff] %v1558_v50  ;;  %v1568_v52 = vld [vmem:[%s1927_s3 + $0x18] ss:$0 sm:$0xff] }
  0x27   :  { %1954 = vst [vmem:[#allocation28_spill] sm:$0xff] %v1563_v51  ;;  %1955 = vst [vmem:[#allocation29_spill] sm:$0xff] %v1568_v52 }
  0x28 LB: > { %p132_p0 = scmp.ge.s32.totalorder %s1225_s12, 1  ;;  %s980_s13 = sshll.u32 %s1225_s12, 3  ;;  %v1957_v27 = vld [vmem:[#allocation4_spill] sm:$0xff]  ;;  %vm365_vm2 = vcmask 60416   ;;  %s1225_s12 = sphi %s1570_s12, %s130_s12  }
  0x29   : > { %p133_p1 = scmp.le.s32.totalorder %s1225_s12, 4  ;;  %s1583_s3 = scalar_lea.vmem %s1922_s0, %s980_s13 }
  0x2a   : > { %v138_v53 = vld [vmem:[%s1583_s3] sm:$0xf]  ;;  %v983_v54 = vld [vmem:[%s1583_s3 + $0x38] sm:$0xf]  ;;  %v986_v55 = vld [vmem:[%s1583_s3 + $0x70] sm:$0xf] }
  0x2b   : > { %v143_v56 = vmul.f32 %v1275_v2, %v138_v53  ;;  %v152_v57 = vmul.f32 %v1328_v4, %v983_v54  ;;  %v161_v58 = vmul.f32 %v1333_v5, %v986_v55  ;;  %v989_v59 = vld [vmem:[%s1583_s3 + $0xa8] sm:$0xf]  ;;  %v172_v60 = vld [vmem:[%s1583_s3 + $0x1] sm:$0xf]  ;;  %v996_v53 = vld [vmem:[%s1583_s3 + $0x118] sm:$0xf]  ;;  %p1613_p2 = pnand %p133_p1, %p132_p0 }
  0x2c   : > { %v993_v61 = vld [vmem:[%s1583_s3 + $0xe0] sm:$0xf]  ;;  %v170_v62 = vmul.f32 %v1338_v6, %v989_v59  ;;  %v177_v63 = vmul.f32 %v1343_v7, %v172_v60  ;;  %v999_v1 = vld [vmem:[%s1583_s3 + $0x150] sm:$0xf]  ;;  %v1002_v52 = vld [vmem:[%s1583_s3 + $0x188] sm:$0xf]  ;;  %v195_v55 = vmul.f32 %v1353_v9, %v996_v53 }
  0x2d   : > { %v186_v3 = vmul.f32 %v1348_v8, %v993_v61  ;;  %v162_v54 = vadd.f32 %v161_v58, %v143_v56  ;;  %v1004_v51 = vld [vmem:[%s1583_s3 + $0xe1] sm:$0xf]  ;;  %v1010_v49 = vld [vmem:[%s1583_s3 + $0x1f8] sm:$0xf]  ;;  %v204_v48 = vmul.f32 %v1358_v10, %v999_v1  ;;  %v213_v60 = vmul.f32 %v1363_v11, %v1002_v52  ;;  %v1013_v47 = vld [vmem:[%s1583_s3 + $0x230] sm:$0xf] }
  0x2e   : > { %v1007_v50 = vld [vmem:[%s1583_s3 + $0x1c0] sm:$0xf]  ;;  %v171_v59 = vadd.f32 %v170_v62, %v152_v57  ;;  %v1016_v61 = vld [vmem:[%s1583_s3 + $0x268] sm:$0xf]  ;;  %v220_v58 = vmul.f32 %v1368_v12, %v1004_v51  ;;  %v238_v1 = vmul.f32 %v1378_v14, %v1010_v49  ;;  %v1024_v62 = vld [vmem:[%s1583_s3 + $0x2d8] sm:$0xf]  ;;  %v247_v44 = vmul.f32 %v1383_v15, %v1013_v47 }
  0x2f   : > { %v1018_v46 = vld [vmem:[%s1583_s3 + $0x1c1] sm:$0xf]  ;;  %v178_v56 = vadd.f32 %v177_v63, %v162_v54  ;;  %v229_v57 = vmul.f32 %v1373_v13, %v1007_v50  ;;  %v1027_v53 = vld [vmem:[%s1583_s3 + $0x310] sm:$0xf]  ;;  %v256_v43 = vmul.f32 %v1388_v16, %v1016_v61  ;;  %v1030_v51 = vld [vmem:[%s1583_s3 + $0x348] sm:$0xf]  ;;  %v1631_v41 = vmul.f32 %v1403_v19, %v1024_v62 }
  0x30   : > { %v1021_v52 = vld [vmem:[%s1583_s3 + $0x2a0] sm:$0xf]  ;;  %v187_v45 = vadd.f32 %v186_v3, %v171_v59  ;;  %v263_v63 = vmul.f32 %v1393_v17, %v1018_v46  ;;  %v1035_v50 = vld [vmem:[%s1583_s3 + $0x8] sm:$0xf]  ;;  %v1634_v3 = vmul.f32 %v1408_v20, %v1027_v53  ;;  %v1041_v59 = vld [vmem:[%s1583_s3 + $0x78] sm:$0xf]  ;;  %v1640_v40 = vmul.f32 %v1413_v21, %v1030_v51 }
  0x31   : > { %v1032_v54 = vld [vmem:[%s1583_s3 + $0x2a1] sm:$0xf]  ;;  %v196_v42 = vadd.f32 %v195_v55, %v178_v56  ;;  %v272_v49 = vmul.f32 %v1398_v18, %v1021_v52  ;;  %v1044_v61 = vld [vmem:[%s1583_s3 + $0xb0] sm:$0xf]  ;;  %v1646_v56 = vmul.f32 %v1423_v23, %v1035_v50  ;;  %v1046_v52 = vld [vmem:[%s1583_s3 + $0x9] sm:$0xf] }
  0x32   : > { %v1038_v47 = vld [vmem:[%s1583_s3 + $0x40] sm:$0xf]  ;;  %v205_v46 = vadd.f32 %v204_v48, %v187_v45  ;;  %v1643_v55 = vmul.f32 %v1418_v22, %v1032_v54  ;;  %v1050_v62 = vld [vmem:[%s1583_s3 + $0x70] sm:$0xf]  ;;  %v1654_v45 = vmul.f32 %v1433_v25, %v1041_v59  ;;  %s1049_s17 = scalar_select %p1613_p2, 0, 1  ;;  %v1662_v38 = vmul.f32 %v1438_v26, %v1044_v61 }
  0x33   : > { %v214_v53 = vadd.f32 %v213_v60, %v196_v42  ;;  %v1651_v39 = vmul.f32 %v1428_v24, %v1038_v47  ;;  %v368_v48 = vmul.f32 %v1050_v62, %v1275_v2  ;;  %v1051_v51 = vld [vmem:[%s1583_s3 + $0xa8] sm:$0xf]  ;;  %v373_v54 = vld [vmem:[%s1583_s3 + $0x1] sm:$0xf]  ;;  %v1052_v47 = vld [vmem:[%s1583_s3 + $0x39] sm:$0xf]  ;;  %v1670_v35 = vmul.f32 %v1957_v27, %v1046_v52 }
  0x34   : > { %v221_v50 = vadd.f32 %v220_v58, %v205_v46  ;;  %v371_v42 = vmul.f32 %v1051_v51, %v1328_v4  ;;  %v374_v60 = vmul.f32 %v1333_v5, %v373_v54  ;;  %v1053_v59 = vld [vmem:[%s1583_s3 + $0x71] sm:$0xf]  ;;  %v377_v58 = vmul.f32 %v1052_v47, %v1338_v6  ;;  %v1055_v46 = vld [vmem:[%s1583_s3 + $0x188] sm:$0xf]  ;;  %v1056_v62 = vld [vmem:[%s1583_s3 + $0xe1] sm:$0xf] }
  0x35   : > { %v1054_v37 = vld [vmem:[%s1583_s3 + $0x150] sm:$0xf]  ;;  %v230_v36 = vadd.f32 %v229_v57, %v214_v53  ;;  %v380_v61 = vmul.f32 %v1053_v59, %v1343_v7  ;;  %v386_v33 = vmul.f32 %v1055_v46, %v1353_v9  ;;  %v1057_v57 = vld [vmem:[%s1583_s3 + $0x119] sm:$0xf]  ;;  %v1681_v31 = vstv %s1049_s17  ;;  %v1060_v30 = vld [vmem:[%s1583_s3 + $0x268] sm:$0xf] }
  0x36   : > { %v239_v51 = vadd.f32 %v238_v1, %v221_v50  ;;  %v375_v34 = vadd.f32 %v374_v60, %v368_v48  ;;  %v383_v54 = vmul.f32 %v1054_v37, %v1348_v8  ;;  %v1058_v52 = vld [vmem:[%s1583_s3 + $0x151] sm:$0xf]  ;;  %v378_v47 = vadd.f32 %v377_v58, %v371_v42  ;;  %v1061_v1 = vld [vmem:[%s1583_s3 + $0x1c1] sm:$0xf]  ;;  %v1062_v48 = vld [vmem:[%s1583_s3 + $0x1f9] sm:$0xf] }
  0x37   : > { %v1059_v53 = vld [vmem:[%s1583_s3 + $0x230] sm:$0xf]  ;;  %v248_v32 = vadd.f32 %v247_v44, %v230_v36  ;;  %v389_v59 = vmul.f32 %v1056_v62, %v1358_v10  ;;  %v392_v60 = vmul.f32 %v1057_v57, %v1363_v11  ;;  %v395_v46 = vmul.f32 %v1058_v52, %v1368_v12  ;;  %v1065_v62 = vld [vmem:[%s1583_s3 + $0x348] sm:$0xf]  ;;  %v1066_v27 = vld [vmem:[%s1583_s3 + $0x2a1] sm:$0xf] }
  0x38   : > { %v257_v50 = vadd.f32 %v256_v43, %v239_v51  ;;  %v381_v37 = vadd.f32 %v380_v61, %v375_v34  ;;  %v1063_v29 = vld [vmem:[%s1583_s3 + $0x231] sm:$0xf]  ;;  %v384_v28 = vadd.f32 %v383_v54, %v378_v47  ;;  %v398_v42 = vmul.f32 %v1059_v53, %v1373_v13  ;;  %v1067_v57 = vld [vmem:[%s1583_s3 + $0x2d9] sm:$0xf]  ;;  %s1767_s18 = scalar_lea.vmem [#allocation2], %s980_s13  ;;  %s130_s12 = sadd.s32 1, %s1225_s12  }
  0x39   : > { %v1064_v36 = vld [vmem:[%s1583_s3 + $0x310] sm:$0xf]  ;;  %v264_v44 = vadd.f32 %v263_v63, %v248_v32  ;;  %v401_v58 = vmul.f32 %v1060_v30, %v1378_v14  ;;  %v404_v61 = vmul.f32 %v1061_v1, %v1383_v15  ;;  %v407_v51 = vmul.f32 %v1062_v48, %v1388_v16  ;;  %v1069_v53 = vld [vmem:[%s1583_s3 + $0x78] sm:$0xf]  ;;  %p127_p3 = scmp.ge.s32.totalorder %s130_s12, 6  }
  0x3a   : > { %v273_v43 = vadd.f32 %v272_v49, %v257_v50  ;;  %v387_v34 = vadd.f32 %v386_v33, %v381_v37  ;;  %v1068_v52 = vld [vmem:[%s1583_s3 + $0x311] sm:$0xf]  ;;  %v390_v63 = vadd.f32 %v389_v59, %v384_v28  ;;  %v410_v54 = vmul.f32 %v1063_v29, %v1393_v17  ;;  %v1071_v50 = vld [vmem:[%s1583_s3 + $0x9] sm:$0xf]  ;;  %s1855_s19 = smov (%p127_p3), 0  }
  0x3b   : > { %v282_v32 = vadd.f32 %v1631_v41, %v264_v44  ;;  %v413_v30 = vmul.f32 %v1064_v36, %v1398_v18  ;;  %v1070_v49 = vld [vmem:[%s1583_s3 + $0xb0] sm:$0xf]  ;;  %v416_v1 = vmul.f32 %v1065_v62, %v1403_v19  ;;  %v419_v48 = vmul.f32 %v1066_v27, %v1408_v20  ;;  %v1072_v41 = vld [vmem:[%s1583_s3 + $0x41] sm:$0xf] }
  0x3c   : > { %v291_v33 = vadd.f32 %v1634_v3, %v273_v43  ;;  %v393_v47 = vadd.f32 %v392_v60, %v387_v34  ;;  %v396_v59 = vadd.f32 %v395_v46, %v390_v63  ;;  %v422_v29 = vmul.f32 %v1067_v57, %v1413_v21  ;;  %v1076_v36 = vld [vmem:[%s1583_s3 + $0x1c0] sm:$0xf]  ;;  %v1077_v3 = vld [vmem:[%s1583_s3 + $0x1f8] sm:$0xf]  ;;  %v1078_v43 = vld [vmem:[%s1583_s3 + $0x230] sm:$0xf] }
  0x3d   : > { %v300_v28 = vadd.f32 %v1640_v40, %v282_v32  ;;  %v425_v37 = vmul.f32 %v1068_v52, %v1418_v22  ;;  %vm362_vm1 = vcmp.eq.s32.totalorder %v1681_v31, 1  ;;  %v428_v27 = vmul.f32 %v1069_v53, %v1423_v23  ;;  %v1079_v40 = vld [vmem:[%s1583_s3 + $0x268] sm:$0xf]  ;;  %v1080_v52 = vld [vmem:[%s1583_s3 + $0x1c1] sm:$0xf] }
  0x3e   : > { %v307_v60 = vadd.f32 %v1643_v55, %v291_v33  ;;  %v399_v44 = vadd.f32 %v398_v42, %v393_v47  ;;  %v431_v62 = vmul.f32 %v1070_v49, %v1428_v24  ;;  %v402_v34 = vadd.f32 %v401_v58, %v396_v59  ;;  %v1081_v42 = vld [vmem:[%s1583_s3 + $0x2a0] sm:$0xf] }
  0x3f   : > { %v317_v46 = vadd.f32 %v1646_v56, %v300_v28  ;;  %v434_v57 = vmul.f32 %v1071_v50, %v1433_v25  ;;  %v1723_v55 = vmul.f32 %v1072_v41, %v1438_v26  ;;  %v449_v53 = vmul.f32 %v1076_v36, %v1275_v2  ;;  %v1082_v50 = vld [vmem:[%s1583_s3 + $0x2d8] sm:$0xf]  ;;  %v1083_v41 = vld [vmem:[%s1583_s3 + $0x310] sm:$0xf]  ;;  %v1084_v28 = vld [vmem:[%s1583_s3 + $0x348] sm:$0xf] }
  0x40   : > { %v326_v32 = vadd.f32 %v1651_v39, %v307_v60  ;;  %v405_v63 = vadd.f32 %v404_v61, %v399_v44  ;;  %v452_v49 = vmul.f32 %v1077_v3, %v1328_v4  ;;  %v408_v33 = vadd.f32 %v407_v51, %v402_v34  ;;  %v1085_v44 = vld [vmem:[%s1583_s3 + $0x2a1] sm:$0xf] }
  0x41   : > { %v335_v56 = vadd.f32 %v1654_v45, %v317_v46  ;;  %v455_v58 = vmul.f32 %v1078_v43, %v1333_v5  ;;  %v458_v47 = vmul.f32 %v1079_v40, %v1338_v6  ;;  %v461_v59 = vmul.f32 %v1080_v52, %v1343_v7  ;;  %v1086_v43 = vld [vmem:[%s1583_s3 + $0x8] sm:$0xf]  ;;  %v1087_v40 = vld [vmem:[%s1583_s3 + $0x40] sm:$0xf] }
  0x42   : > { %v344_v39 = vadd.f32 %v1662_v38, %v326_v32  ;;  %v411_v61 = vadd.f32 %v410_v54, %v405_v63  ;;  %v464_v36 = vmul.f32 %v1081_v42, %v1348_v8  ;;  %v414_v51 = vadd.f32 %v413_v30, %v408_v33  ;;  %v1088_v63 = vld [vmem:[%s1583_s3 + $0x78] sm:$0xf] }
  0x43   : > { %v351_v45 = vadd.f32 %v1670_v35, %v335_v56  ;;  %v456_v3 = vadd.f32 %v455_v58, %v449_v53  ;;  %v459_v60 = vadd.f32 %v458_v47, %v452_v49  ;;  %v467_v34 = vmul.f32 %v1082_v50, %v1353_v9  ;;  %v1073_v35 = vld [vmem:[%s1583_s3 + $0x79] sm:$0xf]  ;;  %v1089_v53 = vld [vmem:[%s1583_s3 + $0xb0] sm:$0xf] }
  0x44   : > { %v417_v46 = vadd.f32 %v416_v1, %v411_v61  ;;  %v470_v38 = vmul.f32 %v1083_v41, %v1358_v10  ;;  %v473_v54 = vmul.f32 %v1084_v28, %v1363_v11  ;;  %v420_v42 = vadd.f32 %v419_v48, %v414_v51  ;;  %v1090_v41 = vld [vmem:[%s1583_s3 + $0x9] sm:$0xf]  ;;  %v1096_v51 = vld [vmem:[%s1583_s3 + $0x158] sm:$0xf] }
  0x45   : > { %v352_v52 = vadd.f32 %v351_v45, %v344_v39  ;;  %v462_v30 = vadd.f32 %v461_v59, %v456_v3  ;;  %v465_v32 = vadd.f32 %v464_v36, %v459_v60  ;;  %v476_v1 = vmul.f32 %v1085_v44, %v1368_v12  ;;  %v1092_v28 = vld [vmem:[%s1583_s3 + $0xe8] sm:$0xf]  ;;  %v1094_v39 = vld [vmem:[%s1583_s3 + $0x120] sm:$0xf]  ;;  %v1098_v3 = vld [vmem:[%s1583_s3 + $0x190] sm:$0xf] }
  0x46   : > { %v423_v49 = vadd.f32 %v422_v29, %v417_v46  ;;  %v479_v56 = vmul.f32 %v1086_v43, %v1373_v13  ;;  %v482_v33 = vmul.f32 %v1087_v40, %v1378_v14  ;;  %v426_v47 = vadd.f32 %v425_v37, %v420_v42  ;;  %v1958_v29 = vld [vmem:[#allocation4_spill] sm:$0xff] }
  0x47   : > { %v359_v58 = vadd.f32 %v1265_v0, %v352_v52  ;;  %v468_v48 = vadd.f32 %v467_v34, %v462_v30  ;;  %v471_v50 = vadd.f32 %v470_v38, %v465_v32  ;;  %v440_v59 = vmul.f32 %v1073_v35, %v1958_v29  ;;  %v1099_v40 = vld [vmem:[%s1583_s3 + $0xe9] sm:$0xf]  ;;  %v1105_v52 = vld [vmem:[%s1583_s3 + $0x238] sm:$0xf] }
  0x48   : > { %v429_v61 = vadd.f32 %v428_v27, %v423_v49  ;;  %v485_v36 = vmul.f32 %v1088_v63, %v1383_v15  ;;  %v488_v45 = vmul.f32 %v1089_v53, %v1388_v16  ;;  %v432_v60 = vadd.f32 %v431_v62, %v426_v47  ;;  %v1101_v27 = vld [vmem:[%s1583_s3 + $0x1c8] sm:$0xf]  ;;  %v1111_v63 = vld [vmem:[%s1583_s3 + $0x230] sm:$0xf] }
  0x49   : > { %v363_v37 = vsel %vm362_vm1, %v359_v58, 0.0  ;;  %v474_v44 = vadd.f32 %v473_v54, %v468_v48  ;;  %v477_v43 = vadd.f32 %v476_v1, %v471_v50  ;;  %v491_v34 = vmul.f32 %v1090_v41, %v1393_v17  ;;  %v1103_v54 = vld [vmem:[%s1583_s3 + $0x200] sm:$0xf]  ;;  %v1112_v53 = vld [vmem:[%s1583_s3 + $0x268] sm:$0xf] }
  0x4a   : > { %366 = vst.msk [vmem:[%s1767_s18 + $0x1] sm:$0xf] %vm365_vm2, %v363_v37  ;;  %v435_v46 = vadd.f32 %v434_v57, %v429_v61  ;;  %v496_v38 = vmul.f32 %v1092_v28, %v1398_v18  ;;  %v501_v62 = vmul.f32 %v1094_v39, %v1403_v19  ;;  %v438_v42 = vadd.f32 %v1723_v55, %v432_v60  ;;  %v1107_v57 = vld [vmem:[%s1583_s3 + $0x270] sm:$0xf]  ;;  %v1113_v48 = vld [vmem:[%s1583_s3 + $0x1c1] sm:$0xf] }
  0x4b   : > { %v480_v35 = vadd.f32 %v479_v56, %v474_v44  ;;  %v483_v30 = vadd.f32 %v482_v33, %v477_v43  ;;  %v506_v32 = vmul.f32 %v1096_v51, %v1408_v20  ;;  %v511_v1 = vmul.f32 %v1098_v3, %v1413_v21  ;;  %v1114_v50 = vld [vmem:[%s1583_s3 + $0x1f9] sm:$0xf]  ;;  %v1115_v28 = vld [vmem:[%s1583_s3 + $0x231] sm:$0xf]  ;;  %v1117_v61 = vld [vmem:[%s1583_s3 + $0x348] sm:$0xf] }
  0x4c   : > { %v441_v49 = vadd.f32 %v440_v59, %v435_v46  ;;  %v514_v58 = vmul.f32 %v1099_v40, %v1418_v22  ;;  %v519_v47 = vmul.f32 %v1101_v27, %v1423_v23  ;;  %v524_v33 = vmul.f32 %v1103_v54, %v1428_v24  ;;  %v1116_v39 = vld [vmem:[%s1583_s3 + $0x310] sm:$0xf]  ;;  %v1118_v43 = vld [vmem:[%s1583_s3 + $0x2a1] sm:$0xf]  ;;  %v1119_v40 = vld [vmem:[%s1583_s3 + $0x2d9] sm:$0xf] }
  0x4d   : > { %v486_v55 = vadd.f32 %v485_v36, %v480_v35  ;;  %v489_v56 = vadd.f32 %v488_v45, %v483_v30  ;;  %v529_v41 = vmul.f32 %v1105_v52, %v1433_v25  ;;  %v534_v51 = vmul.f32 %v1107_v57, %v1438_v26  ;;  %v1120_v27 = vld [vmem:[%s1583_s3 + $0x311] sm:$0xf]  ;;  %v1108_v35 = vld [vmem:[%s1583_s3 + $0x1c9] sm:$0xf] }
  0x4e   : > { %v442_v59 = vadd.f32 %v441_v49, %v438_v42  ;;  %v546_v3 = vmul.f32 %v1111_v63, %v1275_v2  ;;  %v549_v37 = vmul.f32 %v1112_v53, %v1328_v4  ;;  %v552_v45 = vmul.f32 %v1113_v48, %v1333_v5  ;;  %v1121_v63 = vld [vmem:[%s1583_s3 + $0x78] sm:$0xf]  ;;  %v1122_v53 = vld [vmem:[%s1583_s3 + $0xb0] sm:$0xf] }
  0x4f   : > { %v492_v60 = vadd.f32 %v491_v34, %v486_v55  ;;  %v497_v36 = vadd.f32 %v496_v38, %v489_v56  ;;  %v555_v44 = vmul.f32 %v1114_v50, %v1338_v6  ;;  %v558_v54 = vmul.f32 %v1115_v28, %v1343_v7 }
  0x50   : > { %v443_v46 = vadd.f32 %v1265_v0, %v442_v59  ;;  %v561_v52 = vmul.f32 %v1116_v39, %v1348_v8  ;;  %v564_v42 = vmul.f32 %v1117_v61, %v1353_v9  ;;  %v553_v30 = vadd.f32 %v552_v45, %v546_v3  ;;  %v1123_v39 = vld [vmem:[%s1583_s3 + $0x9] sm:$0xf]  ;;  %v1124_v61 = vld [vmem:[%s1583_s3 + $0x41] sm:$0xf] }
  0x51   : > { %v502_v34 = vadd.f32 %v501_v62, %v492_v60  ;;  %v507_v38 = vadd.f32 %v506_v32, %v497_v36  ;;  %v556_v57 = vadd.f32 %v555_v44, %v549_v37  ;;  %v567_v48 = vmul.f32 %v1118_v43, %v1358_v10 }
  0x52   : > { %v444_v49 = vsel %vm362_vm1, %v443_v46, 0.0  ;;  %v570_v50 = vmul.f32 %v1119_v40, %v1363_v11  ;;  %v573_v55 = vmul.f32 %v1120_v27, %v1368_v12  ;;  %v559_v56 = vadd.f32 %v558_v54, %v553_v30  ;;  %v1126_v40 = vld [vmem:[%s1583_s3 + $0x158] sm:$0xf] }
  0x53   : > { %1075 = vst.msk [vmem:[%s1767_s18 + $0x31] sm:$0xf] %vm365_vm2, %v444_v49  ;;  %v512_v62 = vadd.f32 %v511_v1, %v502_v34  ;;  %v515_v32 = vadd.f32 %v514_v58, %v507_v38  ;;  %v562_v28 = vadd.f32 %v561_v52, %v556_v57  ;;  %v537_v59 = vmul.f32 %v1108_v35, %v1958_v29  ;;  %v1125_v1 = vld [vmem:[%s1583_s3 + $0x79] sm:$0xf]  ;;  %v1127_v34 = vld [vmem:[%s1583_s3 + $0x190] sm:$0xf] }
  0x54   : > { %v576_v3 = vmul.f32 %v1121_v63, %v1373_v13  ;;  %v579_v37 = vmul.f32 %v1122_v53, %v1378_v14  ;;  %v565_v45 = vadd.f32 %v564_v42, %v559_v56  ;;  %v582_v58 = vmul.f32 %v1123_v39, %v1383_v15  ;;  %v1129_v57 = vld [vmem:[%s1583_s3 + $0x121] sm:$0xf] }
  0x55   : > { %v520_v60 = vadd.f32 %v519_v47, %v512_v62  ;;  %v525_v36 = vadd.f32 %v524_v33, %v515_v32  ;;  %v568_v44 = vadd.f32 %v567_v48, %v562_v28  ;;  %v585_v43 = vmul.f32 %v1124_v61, %v1388_v16  ;;  %v1128_v33 = vld [vmem:[%s1583_s3 + $0xe9] sm:$0xf]  ;;  %v1132_v62 = vld [vmem:[%s1583_s3 + $0x270] sm:$0xf] }
  0x56   : > { %v571_v54 = vadd.f32 %v570_v50, %v565_v45  ;;  %v588_v47 = vmul.f32 %v1125_v1, %v1393_v17  ;;  %v591_v30 = vmul.f32 %v1126_v40, %v1398_v18  ;;  %v594_v63 = vmul.f32 %v1127_v34, %v1403_v19  ;;  %v1131_v50 = vld [vmem:[%s1583_s3 + $0x238] sm:$0xf] }
  0x57   : > { %v530_v27 = vadd.f32 %v529_v41, %v520_v60  ;;  %v535_v46 = vadd.f32 %v534_v51, %v525_v36  ;;  %v574_v52 = vadd.f32 %v573_v55, %v568_v44  ;;  %v1130_v41 = vld [vmem:[%s1583_s3 + $0x159] sm:$0xf]  ;;  %v597_v48 = vmul.f32 %v1128_v33, %v1408_v20 }
  0x58   : > { %v577_v38 = vadd.f32 %v576_v3, %v571_v54  ;;  %v600_v55 = vmul.f32 %v1129_v57, %v1413_v21  ;;  %v603_v39 = vmul.f32 %v1130_v41, %v1418_v22  ;;  %v606_v61 = vmul.f32 %v1131_v50, %v1423_v23  ;;  %v1134_v3 = vld [vmem:[%s1583_s3 + $0x201] sm:$0xf]  ;;  %v1135_v44 = vld [vmem:[%s1583_s3 + $0x239] sm:$0xf] }
  0x59   : > { %v538_v42 = vadd.f32 %v537_v59, %v530_v27  ;;  %v580_v35 = vadd.f32 %v579_v37, %v574_v52  ;;  %v1133_v59 = vld [vmem:[%s1583_s3 + $0x1c9] sm:$0xf]  ;;  %v609_v45 = vmul.f32 %v1132_v62, %v1428_v24  ;;  %v615_v40 = vmul.f32 %v1134_v3, %v1438_v26 }
  0x5a   : > { %v583_v53 = vadd.f32 %v582_v58, %v577_v38  ;;  %v618_v54 = vmul.f32 %v1135_v44, %v1958_v29 }
  0x5b   : > { %v539_v51 = vadd.f32 %v538_v42, %v535_v46  ;;  %v586_v49 = vadd.f32 %v585_v43, %v580_v35  ;;  %v612_v43 = vmul.f32 %v1133_v59, %v1433_v25 }
  0x5c   : > { %v589_v56 = vadd.f32 %v588_v47, %v583_v53 }
  0x5d   : > { %v540_v32 = vadd.f32 %v1265_v0, %v539_v51  ;;  %v592_v28 = vadd.f32 %v591_v30, %v586_v49 }
  0x5e   : > { %v595_v60 = vadd.f32 %v594_v63, %v589_v56 }
  0x5f   : > { %v541_v37 = vsel %vm362_vm1, %v540_v32, 0.0  ;;  %v598_v36 = vadd.f32 %v597_v48, %v592_v28 }
  0x60   : > { %1110 = vst.msk [vmem:[%s1767_s18 + $0x61] sm:$0xf] %vm365_vm2, %v541_v37  ;;  %v601_v1 = vadd.f32 %v600_v55, %v595_v60 }
  0x61   : > { %v604_v58 = vadd.f32 %v603_v39, %v598_v36 }
  0x62   : > { %v607_v27 = vadd.f32 %v606_v61, %v601_v1 }
  0x63   : > { %v610_v46 = vadd.f32 %v609_v45, %v604_v58 }
  0x64   : > { %v613_v52 = vadd.f32 %v612_v43, %v607_v27 }
  0x65   : > { %v616_v34 = vadd.f32 %v615_v40, %v610_v46 }
  0x66   : > { %v619_v47 = vadd.f32 %v618_v54, %v613_v52 }
  0x67   :  { %129 = sbr.rel (!%p127_p3) target bundleno = 40 (0x28), region = 100 }
  0x68   : > { %v620_v33 = vadd.f32 %v619_v47, %v616_v34 }
  0x6a   : > { %v621_v42 = vadd.f32 %v1265_v0, %v620_v33 }
  0x6c   : > { %v622_v38 = vsel %vm362_vm1, %v621_v42, 0.0 }
  0x6d   : > { %1137 = vst.msk [vmem:[%s1767_s18 + $0x91] sm:$0xf] %vm365_vm2, %v622_v38 }
  0x6e LB: > { %s1138_s20 = sshll.u32 %s1229_s19, 3  ;;  %v1959_v5 = vld [vmem:[#allocation5_spill] sm:$0xff]  ;;  %v1960_v7 = vld [vmem:[#allocation6_spill] sm:$0xff]  ;;  %v1961_v9 = vld [vmem:[#allocation7_spill] sm:$0xff]  ;;  %s1197_s0 = sshll.u32 %s1229_s19, 2  ;;  %s1229_s19 = sphi %s1855_s19, %s631_s19  }
  0x6f   : > { %s1861_s21 = scalar_lea.vmem [#allocation2], %s1138_s20  ;;  %v1962_v14 = vld [vmem:[#allocation8_spill] sm:$0xff]  ;;  %v1963_v16 = vld [vmem:[#allocation9_spill] sm:$0xff]  ;;  %v1964_v18 = vld [vmem:[#allocation10_spill] sm:$0xff]  ;;  %s838_s2 = scalar_lea.vmem %s1926_s5, %s1197_s0 }
  0x70   : > { %v1965_v24 = vld [vmem:[#allocation11_spill] sm:$0xff]  ;;  %v1966_v29 = vld [vmem:[#allocation12_spill] sm:$0xff]  ;;  %v1967_v63 = vld [vmem:[#allocation13_spill] sm:$0xff]  ;;  %s631_s19 = sadd.s32 1, %s1229_s19  }
  0x71   : > { %v1968_v49 = vld [vmem:[#allocation14_spill] sm:$0xff]  ;;  %v1969_v62 = vld [vmem:[#allocation15_spill] sm:$0xff]  ;;  %v1970_v39 = vld [vmem:[#allocation16_spill] sm:$0xff]  ;;  %p628_p4 = scmp.ge.s32.totalorder %s631_s19, 4  }
  0x72   : > { %v1971_v37 = vld [vmem:[#allocation17_spill] sm:$0xff]  ;;  %v1972_v44 = vld [vmem:[#allocation18_spill] sm:$0xff]  ;;  %v1973_v40 = vld [vmem:[#allocation19_spill] sm:$0xff] }
  0x73   : > { %v1974_v52 = vld [vmem:[#allocation20_spill] sm:$0xff]  ;;  %v1975_v42 = vld [vmem:[#allocation21_spill] sm:$0xff] }
  0x74   : > { %v1140_v0 = vld [vmem:[%s1861_s21 + $0x30] sm:$0xf]  ;;  %v643_v2 = vld [vmem:[%s1861_s21 + $0x1] sm:$0xf]  ;;  %v1161_v30 = vld [vmem:[%s1861_s21 + $0x38] sm:$0xf] }
  0x75   : > { %v1143_v4 = vld [vmem:[%s1861_s21 + $0x31] sm:$0xf]  ;;  %v640_v6 = vmul.f32 %v1959_v5, %v1140_v0  ;;  %v648_v8 = vmul.f32 %v1960_v7, %v643_v2  ;;  %v657_v11 = vld [vmem:[%s1861_s21 + $0x2] sm:$0xf]  ;;  %v1164_v51 = vld [vmem:[%s1861_s21 + $0x9] sm:$0xf]  ;;  %v719_v32 = vmul.f32 %v1969_v62, %v1161_v30 }
  0x76   : > { %v655_v10 = vmul.f32 %v1961_v9, %v1143_v4  ;;  %v1146_v12 = vld [vmem:[%s1861_s21 + $0x32] sm:$0xf]  ;;  %v662_v15 = vmul.f32 %v1962_v14, %v657_v11  ;;  %v1152_v20 = vld [vmem:[%s1861_s21 + $0x61] sm:$0xf]  ;;  %v1166_v50 = vld [vmem:[%s1861_s21 + $0x39] sm:$0xf]  ;;  %v727_v61 = vmul.f32 %v1970_v39, %v1164_v51 }
  0x77   : > { %v1149_v13 = vld [vmem:[%s1861_s21 + $0x90] sm:$0xf]  ;;  %v669_v17 = vmul.f32 %v1963_v16, %v1146_v12  ;;  %v1156_v22 = vld [vmem:[%s1861_s21 + $0x62] sm:$0xf]  ;;  %v687_v25 = vmul.f32 %v1965_v24, %v1152_v20  ;;  %v1168_v56 = vld [vmem:[%s1861_s21 + $0xa] sm:$0xf]  ;;  %v734_v60 = vmul.f32 %v1971_v37, %v1166_v50 }
  0x78   : > { %v678_v19 = vmul.f32 %v1964_v18, %v1149_v13  ;;  %v1154_v21 = vld [vmem:[%s1861_s21 + $0x91] sm:$0xf]  ;;  %v656_v23 = vadd.f32 %v655_v10, %v640_v6  ;;  %v663_v31 = vadd.f32 %v662_v15, %v648_v8  ;;  %v701_v41 = vmul.f32 %v1967_v63, %v1156_v22  ;;  %v1170_v59 = vld [vmem:[%s1861_s21 + $0x3a] sm:$0xf]  ;;  %v1176_v58 = vld [vmem:[%s1861_s21 + $0x69] sm:$0xf] }
  0x79   : > { %v1158_v26 = vld [vmem:[%s1861_s21 + $0x92] sm:$0xf]  ;;  %v694_v35 = vmul.f32 %v1966_v29, %v1154_v21  ;;  %v1173_v36 = vld [vmem:[%s1861_s21 + $0x98] sm:$0xf]  ;;  %v741_v1 = vmul.f32 %v1972_v44, %v1168_v56  ;;  %v748_v27 = vmul.f32 %v1973_v40, %v1170_v59  ;;  %v1180_v47 = vld [vmem:[%s1861_s21 + $0x6a] sm:$0xf]  ;;  %v766_v38 = vmul.f32 %v1975_v42, %v1176_v58 }
  0x7a   : > { %v670_v57 = vadd.f32 %v669_v17, %v656_v23  ;;  %v679_v53 = vadd.f32 %v678_v19, %v663_v31  ;;  %v708_v48 = vmul.f32 %v1968_v49, %v1158_v26  ;;  %v1178_v46 = vld [vmem:[%s1861_s21 + $0x99] sm:$0xf]  ;;  %v757_v34 = vmul.f32 %v1974_v52, %v1173_v36  ;;  %v1185_v6 = vld [vmem:[%s1861_s21 + $0x40] sm:$0xf]  ;;  %v1188_v10 = vld [vmem:[%s1861_s21 + $0x11] sm:$0xf] }
  0x7b   : > { %v1182_v0 = vld [vmem:[%s1861_s21 + $0x9a] sm:$0xf]  ;;  %v1977_v8 = vld [vmem:[#allocation23_spill] sm:$0xff]  ;;  %v1978_v12 = vld [vmem:[#allocation24_spill] sm:$0xff] }
  0x7c   : > { %v688_v55 = vadd.f32 %v687_v25, %v670_v57  ;;  %v695_v28 = vadd.f32 %v694_v35, %v679_v53  ;;  %v1976_v4 = vld [vmem:[#allocation22_spill] sm:$0xff]  ;;  %v780_v9 = vmul.f32 %v1977_v8, %v1180_v47  ;;  %v787_v13 = vmul.f32 %v1978_v12, %v1182_v0  ;;  %v1190_v14 = vld [vmem:[%s1861_s21 + $0x41] sm:$0xf]  ;;  %v1979_v16 = vld [vmem:[#allocation25_spill] sm:$0xff] }
  0x7d   : > { %v773_v5 = vmul.f32 %v1976_v4, %v1178_v46  ;;  %v798_v17 = vmul.f32 %v1979_v16, %v1185_v6  ;;  %v1192_v18 = vld [vmem:[%s1861_s21 + $0x12] sm:$0xf]  ;;  %v1980_v20 = vld [vmem:[#allocation26_spill] sm:$0xff]  ;;  %v1194_v22 = vld [vmem:[%s1861_s21 + $0x42] sm:$0xf] }
  0x7e   : > { %v702_v3 = vadd.f32 %v701_v41, %v688_v55  ;;  %v709_v45 = vadd.f32 %v708_v48, %v695_v28  ;;  %v806_v21 = vmul.f32 %v1980_v20, %v1188_v10  ;;  %v1981_v24 = vld [vmem:[#allocation27_spill] sm:$0xff]  ;;  %v1982_v31 = vld [vmem:[#allocation28_spill] sm:$0xff]  ;;  %v1983_v30 = vld [vmem:[#allocation29_spill] sm:$0xff] }
  0x7f   : > { %v813_v25 = vmul.f32 %v1981_v24, %v1190_v14  ;;  %v820_v29 = vmul.f32 %v1982_v31, %v1192_v18  ;;  %v827_v57 = vmul.f32 %v1983_v30, %v1194_v22  ;;  %v1984_v48 = vld [vmem:[#allocation3_spill] sm:$0xff] }
  0x80   : > { %v720_v43 = vadd.f32 %v719_v32, %v702_v3  ;;  %v728_v54 = vadd.f32 %v727_v61, %v709_v45 }
  0x82   : > { %v735_v33 = vadd.f32 %v734_v60, %v720_v43  ;;  %v742_v2 = vadd.f32 %v741_v1, %v728_v54 }
  0x84   : > { %v749_v7 = vadd.f32 %v748_v27, %v735_v33  ;;  %v758_v11 = vadd.f32 %v757_v34, %v742_v2 }
  0x86   : > { %v767_v15 = vadd.f32 %v766_v38, %v749_v7  ;;  %v774_v19 = vadd.f32 %v773_v5, %v758_v11 }
  0x88   : > { %v781_v23 = vadd.f32 %v780_v9, %v767_v15  ;;  %v788_v26 = vadd.f32 %v787_v13, %v774_v19 }
  0x8a   : > { %v799_v35 = vadd.f32 %v798_v17, %v781_v23  ;;  %v807_v63 = vadd.f32 %v806_v21, %v788_v26 }
  0x8c   : > { %v814_v41 = vadd.f32 %v813_v25, %v799_v35  ;;  %v821_v51 = vadd.f32 %v820_v29, %v807_v63 }
  0x8e   : > { %v828_v53 = vadd.f32 %v827_v57, %v814_v41  ;;  %630 = sbr.rel (!%p628_p4) target bundleno = 110 (0x6e), region = 111 }
  0x90   : > { %v829_v49 = vadd.f32 %v828_v53, %v821_v51 }
  0x92   : > { %v836_v50 = vadd.f32 %v1984_v48, %v829_v49 }
  0x94   : > { %840 = vst.msk [vmem:[%s838_s2] sm:$0xf] %vm365_vm2, %v836_v50 }

</bundles_post_ra>
